<compile_context>
chip_gen: v7x
topology: tpu7x:2x2x1
jax: 0.10.0
libtpu: 0.0.40
codegen_flags: <defaults>
</compile_context>

<pallas_src>
import functools

import jax
import jax.numpy as jnp
from jax.experimental import pallas as pl
from jax.experimental.pallas import tpu as pltpu

BN_EPS = 1e-3  # timm EfficientNet BatchNorm eps

# synthetic backbone dims (single representative MBConv stage)
C_IN, C_STEM, C_EXP, C_SE, C_PROJ, C_HEAD = 3, 16, 64, 8, 24, 64
HEAD_PACK = 128  # packed lane-dense head output: [cls (1) | bbox (4) | zero pad]

# rows of the packed (8, 128) bias operand
_B_STEM, _B_EXP, _B_DW, _B_SE1, _B_SE2, _B_PROJ, _B_HEAD, _B_OUT = range(8)


def _silu(x):
    return x * jax.nn.sigmoid(x)


def _act(acc_f32, bias, dtype):
    """SiLU(acc + bias) computed in `dtype` (f32 on v5-class chips, bf16 on v6e/v7x)."""
    y = (acc_f32 + bias).astype(dtype)
    return _silu(y)


# ----------------------------------------------------------------------------
# Fused backbone + heads Pallas kernel (one grid step == TB images)
# ----------------------------------------------------------------------------
def _fused_backbone_kernel(
    x_ref,        # (TB, Hs+1, Ws+1, 4*C_IN) bf16  host-padded space-to-depth stem input
    w_stem_ref,   # (48, C_STEM)    bf16  K-packed 4-tap stem weight (BN folded)
    w_exp_ref,    # (C_STEM, C_EXP) bf16
    w_dw_ref,     # (3, 3, C_EXP)   f32
    w_se1_ref,    # (C_EXP, C_SE)   bf16
    w_se2_ref,    # (C_SE, C_EXP)   bf16
    w_proj_ref,   # (C_EXP, C_PROJ) bf16
    w_head_ref,   # (C_PROJ, C_HEAD) bf16
    w_out_ref,    # (C_HEAD, 128)   bf16  packed cls|bbox head
    bias_ref,     # (8, 128)        f32   packed per-layer biases (BN folded)
    out_ref,      # (TB, 1, 128)    f32
    dw_pad_ref,   # VMEM scratch (TB, Hs+2, Ws+2, C_EXP) f32
    *, TB, Hs, Ws, act_dtype,
):
    P = Hs * Ws
    M = TB * P
    f32, bf16 = jnp.float32, jnp.bfloat16

    # ---- stem: 3x3/stride-2 conv + folded BN + SiLU, as ONE (M,48)x(48,C_STEM) GEMM over
    #      the space-to-depth input (4 shifted 2x2 taps concatenated along K; the conv's
    #      1-pixel zero padding was applied on the host, so no halo scratch / memset).
    x_in = x_ref[...]                                               # (TB, Hs+1, Ws+1, 12)
    patches = jnp.concatenate(
        [x_in[:, a:a + Hs, b:b + Ws, :] for a in range(2) for b in range(2)],
        axis=-1,
    ).reshape(M, 4 * 4 * C_IN)                                      # (M, 48) bf16
    acc = jnp.dot(patches, w_stem_ref[...], preferred_element_type=f32)
    x = _act(acc, bias_ref[_B_STEM:_B_STEM + 1, :C_STEM], act_dtype)       # (M, C_STEM)

    # ---- MBConv expand 1x1 + folded BN + SiLU (output kept f32: feeds the f32 dw path)
    acc = jnp.dot(x.astype(bf16), w_exp_ref[...], preferred_element_type=f32)
    x = _act(acc, bias_ref[_B_EXP:_B_EXP + 1, :C_EXP], f32)                # (M, C_EXP)

    # ---- depthwise 3x3 (stride 1, pad 1) + folded BN + SiLU
    #      halo scratch: zero only the 1-wide border; interior fully overwritten each step
    zrow = jnp.zeros((TB, 1, Ws + 2, C_EXP), f32)
    zcol = jnp.zeros((TB, Hs + 2, 1, C_EXP), f32)
    dw_pad_ref[:, 0:1, :, :] = zrow
    dw_pad_ref[:, Hs + 1:Hs + 2, :, :] = zrow
    dw_pad_ref[:, :, 0:1, :] = zcol
    dw_pad_ref[:, :, Ws + 1:Ws + 2, :] = zcol
    dw_pad_ref[:, 1:Hs + 1, 1:Ws + 1, :] = x.reshape(TB, Hs, Ws, C_EXP)

    w_dw = w_dw_ref[...]                      # hoisted once above the 9 taps
    acc = jnp.zeros((TB, Hs, Ws, C_EXP), f32)
    for i in range(3):
        for j in range(3):
            acc += dw_pad_ref[:, i:i + Hs, j:j + Ws, :] * w_dw[i, j, :]
    x = _act(acc, bias_ref[_B_DW:_B_DW + 1, :C_EXP], act_dtype)            # (TB,Hs,Ws,C)
    x = x.reshape(TB, P, C_EXP)

    # ---- squeeze-and-excitation (per-image pooling; gate applied in VMEM before project)
    pooled = jnp.mean(x.astype(f32), axis=1)                               # (TB, C_EXP)
    h = _silu(jnp.dot(pooled.astype(bf16), w_se1_ref[...], preferred_element_type=f32)
              + bias_ref[_B_SE1:_B_SE1 + 1, :C_SE])                        # (TB, C_SE)
    gate = jax.nn.sigmoid(
        jnp.dot(h.astype(bf16), w_se2_ref[...], preferred_element_type=f32)
        + bias_ref[_B_SE2:_B_SE2 + 1, :C_EXP])                             # (TB, C_EXP)
    x = (x * gate[:, None, :].astype(act_dtype)).reshape(M, C_EXP)

    # ---- project 1x1 + folded BN (linear)
    x = (jnp.dot(x.astype(bf16), w_proj_ref[...], preferred_element_type=f32)
         + bias_ref[_B_PROJ:_B_PROJ + 1, :C_PROJ]).astype(act_dtype)       # (M, C_PROJ)

    # ---- head 1x1 conv + folded BN + SiLU
    acc = jnp.dot(x.astype(bf16), w_head_ref[...], preferred_element_type=f32)
    x = _act(acc, bias_ref[_B_HEAD:_B_HEAD + 1, :C_HEAD], act_dtype)       # (M, C_HEAD)

    # ---- global average pool + packed classifier/bbox heads (128-lane unmasked store)
    pooled = jnp.mean(x.reshape(TB, P, C_HEAD).astype(f32), axis=1)        # (TB, C_HEAD)
    heads = (jnp.dot(pooled.astype(bf16), w_out_ref[...], preferred_element_type=f32)
             + bias_ref[_B_OUT:_B_OUT + 1, :])                             # (TB, 128)
    out_ref[...] = heads[:, None, :].astype(out_ref.dtype)


def _full_spec(arr):
    """Whole-array BlockSpec (constant index map; weights are DMA'd once, not per step)."""
    zeros = (0,) * arr.ndim
    return pl.BlockSpec(arr.shape, lambda b: zeros)


def _pick_block_batch(n):
    """Images per grid step: prefer M = TB*64 >= 256 while keeping >=2 steps (megacore)."""
    for tb in (4, 2, 1):
        if n % tb == 0 and n // tb >= 2:
            return tb
    for tb in (4, 2, 1):
        if n % tb == 0:
            return tb
    return 1


def _bf16_elementwise_ok():
    """bf16 VPU/EUP exists on v6e/v7x but not on v5-class or older chips."""
    try:
        kind = jax.devices()[0].device_kind.lower()
    except Exception:
        return False
    return not any(v in kind for v in ("v2", "v3", "v4", "v5"))


def fused_forward(x_s2d, prep, *, bf16_act=None):
    n, hsp, wsp, c4 = x_s2d.shape
    hs, ws = hsp - 1, wsp - 1
    tb = _pick_block_batch(n)
    if bf16_act is None:
        bf16_act = _bf16_elementwise_ok()
    act_dtype = jnp.bfloat16 if bf16_act else jnp.float32

    weights = [prep["w_stem"], prep["w_exp"], prep["w_dw"], prep["w_se1"],
               prep["w_se2"], prep["w_proj"], prep["w_head"], prep["w_out"],
               prep["bias_pack"]]
    kernel = functools.partial(_fused_backbone_kernel,
                               TB=tb, Hs=hs, Ws=ws, act_dtype=act_dtype)
    return pl.pallas_call(
        kernel,
        out_shape=jax.ShapeDtypeStruct((n, 1, HEAD_PACK), jnp.float32),
        grid_spec=pltpu.PrefetchScalarGridSpec(
            num_scalar_prefetch=0,
            grid=(n // tb,),
            in_specs=[pl.BlockSpec((tb, hsp, wsp, c4), lambda b: (b, 0, 0, 0))]
                     + [_full_spec(w) for w in weights],
            out_specs=pl.BlockSpec((tb, 1, HEAD_PACK), lambda b: (b, 0, 0)),
            scratch_shapes=[
                pltpu.VMEM((tb, hs + 2, ws + 2, C_EXP), jnp.float32),  # dwconv halo buffer
            ],
        ),
        compiler_params=pltpu.CompilerParams(
            dimension_semantics=("parallel",),   # batch blocks shard across TCs on v7x
            # TODO(synk): at real EfficientNet-B5 resolutions add a spatial row-block grid
            # axis (with halo) and re-derive this budget against v7x's 64 MiB physical VMEM.
            vmem_limit_bytes=32 * 1024 * 1024,
        ),
    )(x_s2d, *weights)


# ----------------------------------------------------------------------------
# One-time parameter preparation: BN folding, stem remap, head/bias packing, bf16 casts
# ----------------------------------------------------------------------------
def fold_bn(bn):
    """(scale, bias) so that y = conv_out * scale + bias (eval-mode BatchNorm)."""
    gamma, beta, mean, var = bn
    scale = gamma / jnp.sqrt(var + BN_EPS)
    return scale, beta - mean * scale


def _remap_stem_weight(w):
    """(3,3,Cin,Cout) 3x3/stride-2 weight -> (4*4*Cin, Cout): the K-packed taps of an
    equivalent 2x2 stride-1 conv over the space-to-depth (dr,dc,Cin)-ordered padded input."""
    cin, cout = w.shape[2], w.shape[3]
    w2 = jnp.zeros((2, 2, 2, 2, cin, cout), w.dtype)   # (a, b, dr, dc, cin, cout)
    for a in range(2):
        for b in range(2):
            for dr in range(2):
                for dc in range(2):
                    i, j = 2 * a + dr, 2 * b + dc
                    if i < 3 and j < 3:
                        w2 = w2.at[a, b, dr, dc].set(w[i, j])
    return w2.reshape(4 * 4 * cin, cout)


def prepare_params(p):
    bf16 = jnp.bfloat16
    s_s, b_s = fold_bn(p["stem_bn"])
    s_e, b_e = fold_bn(p["exp_bn"])
    s_d, b_d = fold_bn(p["dw_bn"])
    s_p, b_p = fold_bn(p["proj_bn"])
    s_h, b_h = fold_bn(p["head_bn"])

    w_stem = _remap_stem_weight(p["stem_w"] * s_s)         # BN scale folded into weight

    # pack classifier (C,1) + bbox (C,4) into one zero-padded lane-dense (C,128) weight
    w_out = (jnp.zeros((C_HEAD, HEAD_PACK), jnp.float32)
             .at[:, 0:1].set(p["cls_w"]).at[:, 1:5].set(p["box_w"]))

    # pack all per-layer biases into one (8, 128) operand (one row per layer, zero padded)
    bias = jnp.zeros((8, HEAD_PACK), jnp.float32)
    bias = bias.at[_B_STEM, :C_STEM].set(b_s)
    bias = bias.at[_B_EXP, :C_EXP].set(b_e)
    bias = bias.at[_B_DW, :C_EXP].set(b_d)
    bias = bias.at[_B_SE1, :C_SE].set(p["se_b1"])
    bias = bias.at[_B_SE2, :C_EXP].set(p["se_b2"])
    bias = bias.at[_B_PROJ, :C_PROJ].set(b_p)
    bias = bias.at[_B_HEAD, :C_HEAD].set(b_h)
    bias = bias.at[_B_OUT, 0:1].set(p["cls_b"])
    bias = bias.at[_B_OUT, 1:5].set(p["box_b"])

    return dict(
        w_stem=w_stem.astype(bf16),
        w_exp=(p["exp_w"] * s_e).astype(bf16),
        w_dw=p["dw_w"] * s_d,                     # dw conv stays on the f32 VPU path
        w_se1=p["se_w1"].astype(bf16),
        w_se2=p["se_w2"].astype(bf16),
        w_proj=(p["proj_w"] * s_p).astype(bf16),
        w_head=(p["head_w"] * s_h).astype(bf16),
        w_out=w_out.astype(bf16),
        bias_pack=bias,
    )


def init_params(key):
    ks = iter(jax.random.split(key, 64))

    def nrm(shape, scale=0.1):
        return jax.random.normal(next(ks), shape, jnp.float32) * scale

    def bn(c):
        return (1.0 + 0.05 * jax.random.normal(next(ks), (c,), jnp.float32),   # gamma
                0.05 * jax.random.normal(next(ks), (c,), jnp.float32),         # beta
                0.05 * jax.random.normal(next(ks), (c,), jnp.float32),         # running_mean
                1.0 + 0.05 * jnp.abs(jax.random.normal(next(ks), (c,), jnp.float32)))  # var

    return dict(
        stem_w=nrm((3, 3, C_IN, C_STEM)), stem_bn=bn(C_STEM),
        exp_w=nrm((C_STEM, C_EXP)), exp_bn=bn(C_EXP),
        dw_w=nrm((3, 3, C_EXP)), dw_bn=bn(C_EXP),
        se_w1=nrm((C_EXP, C_SE)), se_b1=nrm((C_SE,)),
        se_w2=nrm((C_SE, C_EXP)), se_b2=nrm((C_EXP,)),
        proj_w=nrm((C_EXP, C_PROJ)), proj_bn=bn(C_PROJ),
        head_w=nrm((C_PROJ, C_HEAD)), head_bn=bn(C_HEAD),
        cls_w=nrm((C_HEAD, 1)), cls_b=nrm((1,)),
        box_w=nrm((C_HEAD, 4)), box_b=nrm((4,)),
    )


# ----------------------------------------------------------------------------
# Forward pass (mirrors EfficientNetWithBBox.forward)
# ----------------------------------------------------------------------------
@jax.jit
def efficientnet_with_bbox_forward(prep, x_nchw):
    # NCHW (PyTorch convention) -> NHWC
    x = jnp.transpose(x_nchw, (0, 2, 3, 1))
    n, h, w, c = x.shape
    assert h % 2 == 0 and w % 2 == 0, "stem space-to-depth needs even spatial dims"
    # apply the stem conv's 1-pixel zero padding here (tiny; removes the in-kernel halo
    # scratch + memset), then space-to-depth: pure layout transform, no 9x im2col.
    x = jnp.pad(x, ((0, 0), (1, 1), (1, 1), (0, 0)))
    hp, wp = h + 2, w + 2
    x = x.reshape(n, hp // 2, 2, wp // 2, 2, c)
    x = x.transpose(0, 1, 3, 2, 4, 5).reshape(n, hp // 2, wp // 2, 4 * c)
    x = x.astype(jnp.bfloat16)   # only consumed by the bf16 stem GEMM; halves input DMA

    out = fused_forward(x, prep).reshape(n, HEAD_PACK)   # (N, 128) packed heads
    class_score = out[:, 0:1]
    bbox = out[:, 1:5]
    return class_score, bbox


if __name__ == "__main__":
    key = jax.random.PRNGKey(0)
    k_param, k_x = jax.random.split(key)
    params = init_params(k_param)
    prep = prepare_params(params)   # BN fold / stem remap / head+bias pack / bf16 cast: once

    # small NCHW image batch; batch=8 -> TB=4 images per grid step, 2 grid steps
    x = jax.random.normal(k_x, (8, 3, 16, 16), jnp.float32)

    class_score, bbox = efficientnet_with_bbox_forward(prep, x)
    jax.block_until_ready((class_score, bbox))

    assert class_score.shape == (8, 1) and bbox.shape == (8, 4)
    assert class_score.dtype == jnp.float32 and bbox.dtype == jnp.float32
    print("KERNEL_OK")
</pallas_src>

<mosaic_0001>
module attributes {stable_mosaic.version = 11 : i64} {
  func.func @_fused_backbone_kernel(%arg0: i32, %arg1: memref<4x9x9x12xbf16, #tpu.memory_space<vmem>>, %arg2: memref<48x16xbf16, #tpu.memory_space<vmem>>, %arg3: memref<16x64xbf16, #tpu.memory_space<vmem>>, %arg4: memref<3x3x64xf32, #tpu.memory_space<vmem>>, %arg5: memref<64x8xbf16, #tpu.memory_space<vmem>>, %arg6: memref<8x64xbf16, #tpu.memory_space<vmem>>, %arg7: memref<64x24xbf16, #tpu.memory_space<vmem>>, %arg8: memref<24x64xbf16, #tpu.memory_space<vmem>>, %arg9: memref<64x128xbf16, #tpu.memory_space<vmem>>, %arg10: memref<8x128xf32, #tpu.memory_space<vmem>>, %arg11: memref<4x1x128xf32, #tpu.memory_space<vmem>>, %arg12: memref<4x10x10x64xf32, #tpu.memory_space<vmem>>) attributes {dimension_semantics = [#tpu.dimension_semantics<parallel>], iteration_bounds = array<i64: 2>, scalar_prefetch = 0 : i64, scratch_operands = 1 : i64, tpu.core_type = #tpu.core_type<tc>, window_params = [{transform_indices = @transform_0, window_bounds = array<i64: 4, 9, 9, 12>}, {pipeline_mode = #tpu.pipeline_mode<synchronous>, transform_indices = @transform_1, window_bounds = array<i64: 48, 16>}, {pipeline_mode = #tpu.pipeline_mode<synchronous>, transform_indices = @transform_2, window_bounds = array<i64: 16, 64>}, {pipeline_mode = #tpu.pipeline_mode<synchronous>, transform_indices = @transform_3, window_bounds = array<i64: 3, 3, 64>}, {pipeline_mode = #tpu.pipeline_mode<synchronous>, transform_indices = @transform_4, window_bounds = array<i64: 64, 8>}, {pipeline_mode = #tpu.pipeline_mode<synchronous>, transform_indices = @transform_5, window_bounds = array<i64: 8, 64>}, {pipeline_mode = #tpu.pipeline_mode<synchronous>, transform_indices = @transform_6, window_bounds = array<i64: 64, 24>}, {pipeline_mode = #tpu.pipeline_mode<synchronous>, transform_indices = @transform_7, window_bounds = array<i64: 24, 64>}, {pipeline_mode = #tpu.pipeline_mode<synchronous>, transform_indices = @transform_8, window_bounds = array<i64: 64, 128>}, {pipeline_mode = #tpu.pipeline_mode<synchronous>, transform_indices = @transform_9, window_bounds = array<i64: 8, 128>}, {transform_indices = @transform_10, window_bounds = array<i64: 4, 1, 128>}]} {
    %c0 = arith.constant 0 : index
    %c0_0 = arith.constant 0 : index
    %c0_1 = arith.constant 0 : index
    %c0_2 = arith.constant 0 : index
    %0 = vector.load %arg1[%c0, %c0_0, %c0_1, %c0_2] : memref<4x9x9x12xbf16, #tpu.memory_space<vmem>>, vector<4x9x9x12xbf16>
    %1 = vector.extract_strided_slice %0 {offsets = [0, 0, 0, 0], sizes = [4, 8, 8, 12], strides = [1, 1, 1, 1]} : vector<4x9x9x12xbf16> to vector<4x8x8x12xbf16>
    %2 = vector.extract_strided_slice %0 {offsets = [0, 0, 1, 0], sizes = [4, 8, 8, 12], strides = [1, 1, 1, 1]} : vector<4x9x9x12xbf16> to vector<4x8x8x12xbf16>
    %3 = vector.extract_strided_slice %0 {offsets = [0, 1, 0, 0], sizes = [4, 8, 8, 12], strides = [1, 1, 1, 1]} : vector<4x9x9x12xbf16> to vector<4x8x8x12xbf16>
    %4 = vector.extract_strided_slice %0 {offsets = [0, 1, 1, 0], sizes = [4, 8, 8, 12], strides = [1, 1, 1, 1]} : vector<4x9x9x12xbf16> to vector<4x8x8x12xbf16>
    %5 = tpu.concatenate %1, %2, %3, %4 in 3 : vector<4x8x8x12xbf16>, vector<4x8x8x12xbf16>, vector<4x8x8x12xbf16>, vector<4x8x8x12xbf16> -> vector<4x8x8x48xbf16>
    %6 = vector.shape_cast %5 : vector<4x8x8x48xbf16> to vector<256x48xbf16>
    %c0_3 = arith.constant 0 : index
    %c0_4 = arith.constant 0 : index
    %7 = vector.load %arg2[%c0_3, %c0_4] : memref<48x16xbf16, #tpu.memory_space<vmem>>, vector<48x16xbf16>
    %cst = arith.constant dense<0.000000e+00> : vector<256x16xf32>
    %8 = tpu.matmul %6, %7, %cst {dimension_numbers = #tpu.dot_dimension_numbers<[1], [0], [0], [1], [0, 0, 1, 1], [], []>} : vector<256x48xbf16>, vector<48x16xbf16>, vector<256x16xf32> -> vector<256x16xf32>
    %c0_5 = arith.constant 0 : index
    %c0_6 = arith.constant 0 : index
    %9 = vector.load %arg10[%c0_5, %c0_6] : memref<8x128xf32, #tpu.memory_space<vmem>>, vector<1x16xf32>
    %10 = vector.broadcast %9 : vector<1x16xf32> to vector<256x16xf32>
    %11 = arith.addf %8, %10 : vector<256x16xf32>
    %12 = arith.truncf %11 : vector<256x16xf32> to vector<256x16xbf16>
    %13 = arith.negf %12 : vector<256x16xbf16>
    %14 = math.exp %13 : vector<256x16xbf16>
    %cst_7 = arith.constant 1.000000e+00 : bf16
    %15 = vector.broadcast %cst_7 : bf16 to vector<256x16xbf16>
    %16 = arith.addf %15, %14 : vector<256x16xbf16>
    %17 = arith.divf %15, %16 : vector<256x16xbf16>
    %18 = arith.mulf %12, %17 : vector<256x16xbf16>
    %c0_8 = arith.constant 0 : index
    %c0_9 = arith.constant 0 : index
    %19 = vector.load %arg3[%c0_8, %c0_9] : memref<16x64xbf16, #tpu.memory_space<vmem>>, vector<16x64xbf16>
    %cst_10 = arith.constant dense<0.000000e+00> : vector<256x64xf32>
    %20 = tpu.matmul %18, %19, %cst_10 {dimension_numbers = #tpu.dot_dimension_numbers<[1], [0], [0], [1], [0, 0, 1, 1], [], []>} : vector<256x16xbf16>, vector<16x64xbf16>, vector<256x64xf32> -> vector<256x64xf32>
    %c1 = arith.constant 1 : index
    %c0_11 = arith.constant 0 : index
    %21 = vector.load %arg10[%c1, %c0_11] : memref<8x128xf32, #tpu.memory_space<vmem>>, vector<1x64xf32>
    %22 = vector.broadcast %21 : vector<1x64xf32> to vector<256x64xf32>
    %23 = arith.addf %20, %22 : vector<256x64xf32>
    %24 = arith.negf %23 : vector<256x64xf32>
    %25 = math.exp %24 : vector<256x64xf32>
    %cst_12 = arith.constant 1.000000e+00 : f32
    %26 = vector.broadcast %cst_12 : f32 to vector<256x64xf32>
    %27 = arith.addf %26, %25 : vector<256x64xf32>
    %28 = arith.divf %26, %27 : vector<256x64xf32>
    %29 = arith.mulf %23, %28 : vector<256x64xf32>
    %cst_13 = arith.constant 0.000000e+00 : f32
    %30 = vector.broadcast %cst_13 : f32 to vector<4x1x10x64xf32>
    %cst_14 = arith.constant 0.000000e+00 : f32
    %31 = vector.broadcast %cst_14 : f32 to vector<4x10x1x64xf32>
    %c0_15 = arith.constant 0 : index
    %c0_16 = arith.constant 0 : index
    %c0_17 = arith.constant 0 : index
    %c0_18 = arith.constant 0 : index
    %32 = vector.load %arg12[%c0_15, %c0_16, %c0_17, %c0_18] : memref<4x10x10x64xf32, #tpu.memory_space<vmem>>, vector<4x1x10x64xf32>
    tpu.vector_store %arg12[%c0_15, %c0_16, %c0_17, %c0_18], %30 {strides = array<i32>} : memref<4x10x10x64xf32, #tpu.memory_space<vmem>>, vector<4x1x10x64xf32>,
    %c0_19 = arith.constant 0 : index
    %c9 = arith.constant 9 : index
    %c0_20 = arith.constant 0 : index
    %c0_21 = arith.constant 0 : index
    %33 = vector.load %arg12[%c0_19, %c9, %c0_20, %c0_21] : memref<4x10x10x64xf32, #tpu.memory_space<vmem>>, vector<4x1x10x64xf32>
    tpu.vector_store %arg12[%c0_19, %c9, %c0_20, %c0_21], %30 {strides = array<i32>} : memref<4x10x10x64xf32, #tpu.memory_space<vmem>>, vector<4x1x10x64xf32>,
    %c0_22 = arith.constant 0 : index
    %c0_23 = arith.constant 0 : index
    %c0_24 = arith.constant 0 : index
    %c0_25 = arith.constant 0 : index
    %34 = vector.load %arg12[%c0_22, %c0_23, %c0_24, %c0_25] : memref<4x10x10x64xf32, #tpu.memory_space<vmem>>, vector<4x10x1x64xf32>
    tpu.vector_store %arg12[%c0_22, %c0_23, %c0_24, %c0_25], %31 {strides = array<i32>} : memref<4x10x10x64xf32, #tpu.memory_space<vmem>>, vector<4x10x1x64xf32>,
    %c0_26 = arith.constant 0 : index
    %c0_27 = arith.constant 0 : index
    %c9_28 = arith.constant 9 : index
    %c0_29 = arith.constant 0 : index
    %35 = vector.load %arg12[%c0_26, %c0_27, %c9_28, %c0_29] : memref<4x10x10x64xf32, #tpu.memory_space<vmem>>, vector<4x10x1x64xf32>
    tpu.vector_store %arg12[%c0_26, %c0_27, %c9_28, %c0_29], %31 {strides = array<i32>} : memref<4x10x10x64xf32, #tpu.memory_space<vmem>>, vector<4x10x1x64xf32>,
    %36 = vector.shape_cast %29 : vector<256x64xf32> to vector<4x8x8x64xf32>
    %c0_30 = arith.constant 0 : index
    %c1_31 = arith.constant 1 : index
    %c1_32 = arith.constant 1 : index
    %c0_33 = arith.constant 0 : index
    %37 = vector.load %arg12[%c0_30, %c1_31, %c1_32, %c0_33] : memref<4x10x10x64xf32, #tpu.memory_space<vmem>>, vector<4x8x8x64xf32>
    tpu.vector_store %arg12[%c0_30, %c1_31, %c1_32, %c0_33], %36 {strides = array<i32>} : memref<4x10x10x64xf32, #tpu.memory_space<vmem>>, vector<4x8x8x64xf32>,
    %c0_34 = arith.constant 0 : index
    %c0_35 = arith.constant 0 : index
    %c0_36 = arith.constant 0 : index
    %38 = vector.load %arg4[%c0_34, %c0_35, %c0_36] : memref<3x3x64xf32, #tpu.memory_space<vmem>>, vector<3x3x64xf32>
    %cst_37 = arith.constant 0.000000e+00 : f32
    %39 = vector.broadcast %cst_37 : f32 to vector<4x8x8x64xf32>
    %c0_38 = arith.constant 0 : index
    %c0_39 = arith.constant 0 : index
    %c0_40 = arith.constant 0 : index
    %c0_41 = arith.constant 0 : index
    %40 = vector.load %arg12[%c0_38, %c0_39, %c0_40, %c0_41] : memref<4x10x10x64xf32, #tpu.memory_space<vmem>>, vector<4x8x8x64xf32>
    %41 = vector.extract_strided_slice %38 {offsets = [0, 0, 0], sizes = [1, 1, 64], strides = [1, 1, 1]} : vector<3x3x64xf32> to vector<1x1x64xf32>
    %42 = vector.shape_cast %41 : vector<1x1x64xf32> to vector<64xf32>
    %43 = vector.shape_cast %42 : vector<64xf32> to vector<1x1x1x64xf32>
    %44 = vector.broadcast %43 : vector<1x1x1x64xf32> to vector<4x8x8x64xf32>
    %45 = arith.mulf %40, %44 : vector<4x8x8x64xf32>
    %46 = arith.addf %39, %45 : vector<4x8x8x64xf32>
    %c0_42 = arith.constant 0 : index
    %c0_43 = arith.constant 0 : index
    %c1_44 = arith.constant 1 : index
    %c0_45 = arith.constant 0 : index
    %47 = vector.load %arg12[%c0_42, %c0_43, %c1_44, %c0_45] : memref<4x10x10x64xf32, #tpu.memory_space<vmem>>, vector<4x8x8x64xf32>
    %48 = vector.extract_strided_slice %38 {offsets = [0, 1, 0], sizes = [1, 1, 64], strides = [1, 1, 1]} : vector<3x3x64xf32> to vector<1x1x64xf32>
    %49 = vector.shape_cast %48 : vector<1x1x64xf32> to vector<64xf32>
    %50 = vector.shape_cast %49 : vector<64xf32> to vector<1x1x1x64xf32>
    %51 = vector.broadcast %50 : vector<1x1x1x64xf32> to vector<4x8x8x64xf32>
    %52 = arith.mulf %47, %51 : vector<4x8x8x64xf32>
    %53 = arith.addf %46, %52 : vector<4x8x8x64xf32>
    %c0_46 = arith.constant 0 : index
    %c0_47 = arith.constant 0 : index
    %c2 = arith.constant 2 : index
    %c0_48 = arith.constant 0 : index
    %54 = vector.load %arg12[%c0_46, %c0_47, %c2, %c0_48] : memref<4x10x10x64xf32, #tpu.memory_space<vmem>>, vector<4x8x8x64xf32>
    %55 = vector.extract_strided_slice %38 {offsets = [0, 2, 0], sizes = [1, 1, 64], strides = [1, 1, 1]} : vector<3x3x64xf32> to vector<1x1x64xf32>
    %56 = vector.shape_cast %55 : vector<1x1x64xf32> to vector<64xf32>
    %57 = vector.shape_cast %56 : vector<64xf32> to vector<1x1x1x64xf32>
    %58 = vector.broadcast %57 : vector<1x1x1x64xf32> to vector<4x8x8x64xf32>
    %59 = arith.mulf %54, %58 : vector<4x8x8x64xf32>
    %60 = arith.addf %53, %59 : vector<4x8x8x64xf32>
    %c0_49 = arith.constant 0 : index
    %c1_50 = arith.constant 1 : index
    %c0_51 = arith.constant 0 : index
    %c0_52 = arith.constant 0 : index
    %61 = vector.load %arg12[%c0_49, %c1_50, %c0_51, %c0_52] : memref<4x10x10x64xf32, #tpu.memory_space<vmem>>, vector<4x8x8x64xf32>
    %62 = vector.extract_strided_slice %38 {offsets = [1, 0, 0], sizes = [1, 1, 64], strides = [1, 1, 1]} : vector<3x3x64xf32> to vector<1x1x64xf32>
    %63 = vector.shape_cast %62 : vector<1x1x64xf32> to vector<64xf32>
    %64 = vector.shape_cast %63 : vector<64xf32> to vector<1x1x1x64xf32>
    %65 = vector.broadcast %64 : vector<1x1x1x64xf32> to vector<4x8x8x64xf32>
    %66 = arith.mulf %61, %65 : vector<4x8x8x64xf32>
    %67 = arith.addf %60, %66 : vector<4x8x8x64xf32>
    %c0_53 = arith.constant 0 : index
    %c1_54 = arith.constant 1 : index
    %c1_55 = arith.constant 1 : index
    %c0_56 = arith.constant 0 : index
    %68 = vector.load %arg12[%c0_53, %c1_54, %c1_55, %c0_56] : memref<4x10x10x64xf32, #tpu.memory_space<vmem>>, vector<4x8x8x64xf32>
    %69 = vector.extract_strided_slice %38 {offsets = [1, 1, 0], sizes = [1, 1, 64], strides = [1, 1, 1]} : vector<3x3x64xf32> to vector<1x1x64xf32>
    %70 = vector.shape_cast %69 : vector<1x1x64xf32> to vector<64xf32>
    %71 = vector.shape_cast %70 : vector<64xf32> to vector<1x1x1x64xf32>
    %72 = vector.broadcast %71 : vector<1x1x1x64xf32> to vector<4x8x8x64xf32>
    %73 = arith.mulf %68, %72 : vector<4x8x8x64xf32>
    %74 = arith.addf %67, %73 : vector<4x8x8x64xf32>
    %c0_57 = arith.constant 0 : index
    %c1_58 = arith.constant 1 : index
    %c2_59 = arith.constant 2 : index
    %c0_60 = arith.constant 0 : index
    %75 = vector.load %arg12[%c0_57, %c1_58, %c2_59, %c0_60] : memref<4x10x10x64xf32, #tpu.memory_space<vmem>>, vector<4x8x8x64xf32>
    %76 = vector.extract_strided_slice %38 {offsets = [1, 2, 0], sizes = [1, 1, 64], strides = [1, 1, 1]} : vector<3x3x64xf32> to vector<1x1x64xf32>
    %77 = vector.shape_cast %76 : vector<1x1x64xf32> to vector<64xf32>
    %78 = vector.shape_cast %77 : vector<64xf32> to vector<1x1x1x64xf32>
    %79 = vector.broadcast %78 : vector<1x1x1x64xf32> to vector<4x8x8x64xf32>
    %80 = arith.mulf %75, %79 : vector<4x8x8x64xf32>
    %81 = arith.addf %74, %80 : vector<4x8x8x64xf32>
    %c0_61 = arith.constant 0 : index
    %c2_62 = arith.constant 2 : index
    %c0_63 = arith.constant 0 : index
    %c0_64 = arith.constant 0 : index
    %82 = vector.load %arg12[%c0_61, %c2_62, %c0_63, %c0_64] : memref<4x10x10x64xf32, #tpu.memory_space<vmem>>, vector<4x8x8x64xf32>
    %83 = vector.extract_strided_slice %38 {offsets = [2, 0, 0], sizes = [1, 1, 64], strides = [1, 1, 1]} : vector<3x3x64xf32> to vector<1x1x64xf32>
    %84 = vector.shape_cast %83 : vector<1x1x64xf32> to vector<64xf32>
    %85 = vector.shape_cast %84 : vector<64xf32> to vector<1x1x1x64xf32>
    %86 = vector.broadcast %85 : vector<1x1x1x64xf32> to vector<4x8x8x64xf32>
    %87 = arith.mulf %82, %86 : vector<4x8x8x64xf32>
    %88 = arith.addf %81, %87 : vector<4x8x8x64xf32>
    %c0_65 = arith.constant 0 : index
    %c2_66 = arith.constant 2 : index
    %c1_67 = arith.constant 1 : index
    %c0_68 = arith.constant 0 : index
    %89 = vector.load %arg12[%c0_65, %c2_66, %c1_67, %c0_68] : memref<4x10x10x64xf32, #tpu.memory_space<vmem>>, vector<4x8x8x64xf32>
    %90 = vector.extract_strided_slice %38 {offsets = [2, 1, 0], sizes = [1, 1, 64], strides = [1, 1, 1]} : vector<3x3x64xf32> to vector<1x1x64xf32>
    %91 = vector.shape_cast %90 : vector<1x1x64xf32> to vector<64xf32>
    %92 = vector.shape_cast %91 : vector<64xf32> to vector<1x1x1x64xf32>
    %93 = vector.broadcast %92 : vector<1x1x1x64xf32> to vector<4x8x8x64xf32>
    %94 = arith.mulf %89, %93 : vector<4x8x8x64xf32>
    %95 = arith.addf %88, %94 : vector<4x8x8x64xf32>
    %c0_69 = arith.constant 0 : index
    %c2_70 = arith.constant 2 : index
    %c2_71 = arith.constant 2 : index
    %c0_72 = arith.constant 0 : index
    %96 = vector.load %arg12[%c0_69, %c2_70, %c2_71, %c0_72] : memref<4x10x10x64xf32, #tpu.memory_space<vmem>>, vector<4x8x8x64xf32>
    %97 = vector.extract_strided_slice %38 {offsets = [2, 2, 0], sizes = [1, 1, 64], strides = [1, 1, 1]} : vector<3x3x64xf32> to vector<1x1x64xf32>
    %98 = vector.shape_cast %97 : vector<1x1x64xf32> to vector<64xf32>
    %99 = vector.shape_cast %98 : vector<64xf32> to vector<1x1x1x64xf32>
    %100 = vector.broadcast %99 : vector<1x1x1x64xf32> to vector<4x8x8x64xf32>
    %101 = arith.mulf %96, %100 : vector<4x8x8x64xf32>
    %102 = arith.addf %95, %101 : vector<4x8x8x64xf32>
    %c2_73 = arith.constant 2 : index
    %c0_74 = arith.constant 0 : index
    %103 = vector.load %arg10[%c2_73, %c0_74] : memref<8x128xf32, #tpu.memory_space<vmem>>, vector<1x64xf32>
    %104 = vector.shape_cast %103 : vector<1x64xf32> to vector<1x1x1x64xf32>
    %105 = vector.broadcast %104 : vector<1x1x1x64xf32> to vector<4x8x8x64xf32>
    %106 = arith.addf %102, %105 : vector<4x8x8x64xf32>
    %107 = arith.truncf %106 : vector<4x8x8x64xf32> to vector<4x8x8x64xbf16>
    %108 = arith.negf %107 : vector<4x8x8x64xbf16>
    %109 = math.exp %108 : vector<4x8x8x64xbf16>
    %cst_75 = arith.constant 1.000000e+00 : bf16
    %110 = vector.broadcast %cst_75 : bf16 to vector<4x8x8x64xbf16>
    %111 = arith.addf %110, %109 : vector<4x8x8x64xbf16>
    %112 = arith.divf %110, %111 : vector<4x8x8x64xbf16>
    %113 = arith.mulf %107, %112 : vector<4x8x8x64xbf16>
    %114 = vector.shape_cast %113 : vector<4x8x8x64xbf16> to vector<4x64x64xbf16>
    %115 = arith.extf %114 : vector<4x64x64xbf16> to vector<4x64x64xf32>
    %cst_76 = arith.constant dense<0.000000e+00> : vector<4x64xf32>
    %116 = vector.multi_reduction <add>, %115, %cst_76 [1] : vector<4x64x64xf32> to vector<4x64xf32>
    %cst_77 = arith.constant 6.400000e+01 : f32
    %117 = vector.broadcast %cst_77 : f32 to vector<4x64xf32>
    %118 = arith.divf %116, %117 : vector<4x64xf32>
    %119 = arith.truncf %118 : vector<4x64xf32> to vector<4x64xbf16>
    %c0_78 = arith.constant 0 : index
    %c0_79 = arith.constant 0 : index
    %120 = vector.load %arg5[%c0_78, %c0_79] : memref<64x8xbf16, #tpu.memory_space<vmem>>, vector<64x8xbf16>
    %cst_80 = arith.constant dense<0.000000e+00> : vector<4x8xf32>
    %121 = tpu.matmul %119, %120, %cst_80 {dimension_numbers = #tpu.dot_dimension_numbers<[1], [0], [0], [1], [0, 0, 1, 1], [], []>} : vector<4x64xbf16>, vector<64x8xbf16>, vector<4x8xf32> -> vector<4x8xf32>
    %c3 = arith.constant 3 : index
    %c0_81 = arith.constant 0 : index
    %122 = vector.load %arg10[%c3, %c0_81] : memref<8x128xf32, #tpu.memory_space<vmem>>, vector<1x8xf32>
    %123 = vector.broadcast %122 : vector<1x8xf32> to vector<4x8xf32>
    %124 = arith.addf %121, %123 : vector<4x8xf32>
    %125 = arith.negf %124 : vector<4x8xf32>
    %126 = math.exp %125 : vector<4x8xf32>
    %cst_82 = arith.constant 1.000000e+00 : f32
    %127 = vector.broadcast %cst_82 : f32 to vector<4x8xf32>
    %128 = arith.addf %127, %126 : vector<4x8xf32>
    %129 = arith.divf %127, %128 : vector<4x8xf32>
    %130 = arith.mulf %124, %129 : vector<4x8xf32>
    %131 = arith.truncf %130 : vector<4x8xf32> to vector<4x8xbf16>
    %c0_83 = arith.constant 0 : index
    %c0_84 = arith.constant 0 : index
    %132 = vector.load %arg6[%c0_83, %c0_84] : memref<8x64xbf16, #tpu.memory_space<vmem>>, vector<8x64xbf16>
    %cst_85 = arith.constant dense<0.000000e+00> : vector<4x64xf32>
    %133 = tpu.matmul %131, %132, %cst_85 {dimension_numbers = #tpu.dot_dimension_numbers<[1], [0], [0], [1], [0, 0, 1, 1], [], []>} : vector<4x8xbf16>, vector<8x64xbf16>, vector<4x64xf32> -> vector<4x64xf32>
    %c4 = arith.constant 4 : index
    %c0_86 = arith.constant 0 : index
    %134 = vector.load %arg10[%c4, %c0_86] : memref<8x128xf32, #tpu.memory_space<vmem>>, vector<1x64xf32>
    %135 = vector.broadcast %134 : vector<1x64xf32> to vector<4x64xf32>
    %136 = arith.addf %133, %135 : vector<4x64xf32>
    %137 = arith.negf %136 : vector<4x64xf32>
    %138 = math.exp %137 : vector<4x64xf32>
    %cst_87 = arith.constant 1.000000e+00 : f32
    %139 = vector.broadcast %cst_87 : f32 to vector<4x64xf32>
    %140 = arith.addf %139, %138 : vector<4x64xf32>
    %141 = arith.divf %139, %140 : vector<4x64xf32>
    %142 = vector.shape_cast %141 : vector<4x64xf32> to vector<4x1x64xf32>
    %143 = arith.truncf %142 : vector<4x1x64xf32> to vector<4x1x64xbf16>
    %144 = vector.broadcast %143 : vector<4x1x64xbf16> to vector<4x64x64xbf16>
    %145 = arith.mulf %114, %144 : vector<4x64x64xbf16>
    %146 = vector.shape_cast %145 : vector<4x64x64xbf16> to vector<256x64xbf16>
    %c0_88 = arith.constant 0 : index
    %c0_89 = arith.constant 0 : index
    %147 = vector.load %arg7[%c0_88, %c0_89] : memref<64x24xbf16, #tpu.memory_space<vmem>>, vector<64x24xbf16>
    %cst_90 = arith.constant dense<0.000000e+00> : vector<256x24xf32>
    %148 = tpu.matmul %146, %147, %cst_90 {dimension_numbers = #tpu.dot_dimension_numbers<[1], [0], [0], [1], [0, 0, 1, 1], [], []>} : vector<256x64xbf16>, vector<64x24xbf16>, vector<256x24xf32> -> vector<256x24xf32>
    %c5 = arith.constant 5 : index
    %c0_91 = arith.constant 0 : index
    %149 = vector.load %arg10[%c5, %c0_91] : memref<8x128xf32, #tpu.memory_space<vmem>>, vector<1x24xf32>
    %150 = vector.broadcast %149 : vector<1x24xf32> to vector<256x24xf32>
    %151 = arith.addf %148, %150 : vector<256x24xf32>
    %152 = arith.truncf %151 : vector<256x24xf32> to vector<256x24xbf16>
    %c0_92 = arith.constant 0 : index
    %c0_93 = arith.constant 0 : index
    %153 = vector.load %arg8[%c0_92, %c0_93] : memref<24x64xbf16, #tpu.memory_space<vmem>>, vector<24x64xbf16>
    %cst_94 = arith.constant dense<0.000000e+00> : vector<256x64xf32>
    %154 = tpu.matmul %152, %153, %cst_94 {dimension_numbers = #tpu.dot_dimension_numbers<[1], [0], [0], [1], [0, 0, 1, 1], [], []>} : vector<256x24xbf16>, vector<24x64xbf16>, vector<256x64xf32> -> vector<256x64xf32>
    %c6 = arith.constant 6 : index
    %c0_95 = arith.constant 0 : index
    %155 = vector.load %arg10[%c6, %c0_95] : memref<8x128xf32, #tpu.memory_space<vmem>>, vector<1x64xf32>
    %156 = vector.broadcast %155 : vector<1x64xf32> to vector<256x64xf32>
    %157 = arith.addf %154, %156 : vector<256x64xf32>
    %158 = arith.truncf %157 : vector<256x64xf32> to vector<256x64xbf16>
    %159 = arith.negf %158 : vector<256x64xbf16>
    %160 = math.exp %159 : vector<256x64xbf16>
    %cst_96 = arith.constant 1.000000e+00 : bf16
    %161 = vector.broadcast %cst_96 : bf16 to vector<256x64xbf16>
    %162 = arith.addf %161, %160 : vector<256x64xbf16>
    %163 = arith.divf %161, %162 : vector<256x64xbf16>
    %164 = arith.mulf %158, %163 : vector<256x64xbf16>
    %165 = vector.shape_cast %164 : vector<256x64xbf16> to vector<4x64x64xbf16>
    %166 = arith.extf %165 : vector<4x64x64xbf16> to vector<4x64x64xf32>
    %cst_97 = arith.constant dense<0.000000e+00> : vector<4x64xf32>
    %167 = vector.multi_reduction <add>, %166, %cst_97 [1] : vector<4x64x64xf32> to vector<4x64xf32>
    %cst_98 = arith.constant 6.400000e+01 : f32
    %168 = vector.broadcast %cst_98 : f32 to vector<4x64xf32>
    %169 = arith.divf %167, %168 : vector<4x64xf32>
    %170 = arith.truncf %169 : vector<4x64xf32> to vector<4x64xbf16>
    %c0_99 = arith.constant 0 : index
    %c0_100 = arith.constant 0 : index
    %171 = vector.load %arg9[%c0_99, %c0_100] : memref<64x128xbf16, #tpu.memory_space<vmem>>, vector<64x128xbf16>
    %cst_101 = arith.constant dense<0.000000e+00> : vector<4x128xf32>
    %172 = tpu.matmul %170, %171, %cst_101 {dimension_numbers = #tpu.dot_dimension_numbers<[1], [0], [0], [1], [0, 0, 1, 1], [], []>} : vector<4x64xbf16>, vector<64x128xbf16>, vector<4x128xf32> -> vector<4x128xf32>
    %c7 = arith.constant 7 : index
    %c0_102 = arith.constant 0 : index
    %173 = vector.load %arg10[%c7, %c0_102] : memref<8x128xf32, #tpu.memory_space<vmem>>, vector<1x128xf32>
    %174 = vector.broadcast %173 : vector<1x128xf32> to vector<4x128xf32>
    %175 = arith.addf %172, %174 : vector<4x128xf32>
    %176 = vector.shape_cast %175 : vector<4x128xf32> to vector<4x1x128xf32>
    %c0_103 = arith.constant 0 : index
    %c0_104 = arith.constant 0 : index
    %c0_105 = arith.constant 0 : index
    %177 = vector.load %arg11[%c0_103, %c0_104, %c0_105] : memref<4x1x128xf32, #tpu.memory_space<vmem>>, vector<4x1x128xf32>
    tpu.vector_store %arg11[%c0_103, %c0_104, %c0_105], %176 {strides = array<i32>} : memref<4x1x128xf32, #tpu.memory_space<vmem>>, vector<4x1x128xf32>,
    return
  }
  func.func @transform_0(%arg0: i32) -> (i32, i32, i32, i32) {
    %c0_i32 = arith.constant 0 : i32
    %c0_i32_0 = arith.constant 0 : i32
    %c0_i32_1 = arith.constant 0 : i32
    %c0_i32_2 = arith.constant 0 : i32
    return %arg0, %c0_i32, %c0_i32_0, %c0_i32_1 : i32, i32, i32, i32
  }
  func.func @transform_1(%arg0: i32) -> (i32, i32) {
    %c0_i32 = arith.constant 0 : i32
    %c0_i32_0 = arith.constant 0 : i32
    %c0_i32_1 = arith.constant 0 : i32
    return %c0_i32, %c0_i32_0 : i32, i32
  }
  func.func @transform_2(%arg0: i32) -> (i32, i32) {
    %c0_i32 = arith.constant 0 : i32
    %c0_i32_0 = arith.constant 0 : i32
    %c0_i32_1 = arith.constant 0 : i32
    return %c0_i32, %c0_i32_0 : i32, i32
  }
  func.func @transform_3(%arg0: i32) -> (i32, i32, i32) {
    %c0_i32 = arith.constant 0 : i32
    %c0_i32_0 = arith.constant 0 : i32
    %c0_i32_1 = arith.constant 0 : i32
    %c0_i32_2 = arith.constant 0 : i32
    return %c0_i32, %c0_i32_0, %c0_i32_1 : i32, i32, i32
  }
  func.func @transform_4(%arg0: i32) -> (i32, i32) {
    %c0_i32 = arith.constant 0 : i32
    %c0_i32_0 = arith.constant 0 : i32
    %c0_i32_1 = arith.constant 0 : i32
    return %c0_i32, %c0_i32_0 : i32, i32
  }
  func.func @transform_5(%arg0: i32) -> (i32, i32) {
    %c0_i32 = arith.constant 0 : i32
    %c0_i32_0 = arith.constant 0 : i32
    %c0_i32_1 = arith.constant 0 : i32
    return %c0_i32, %c0_i32_0 : i32, i32
  }
  func.func @transform_6(%arg0: i32) -> (i32, i32) {
    %c0_i32 = arith.constant 0 : i32
    %c0_i32_0 = arith.constant 0 : i32
    %c0_i32_1 = arith.constant 0 : i32
    return %c0_i32, %c0_i32_0 : i32, i32
  }
  func.func @transform_7(%arg0: i32) -> (i32, i32) {
    %c0_i32 = arith.constant 0 : i32
    %c0_i32_0 = arith.constant 0 : i32
    %c0_i32_1 = arith.constant 0 : i32
    return %c0_i32, %c0_i32_0 : i32, i32
  }
  func.func @transform_8(%arg0: i32) -> (i32, i32) {
    %c0_i32 = arith.constant 0 : i32
    %c0_i32_0 = arith.constant 0 : i32
    %c0_i32_1 = arith.constant 0 : i32
    return %c0_i32, %c0_i32_0 : i32, i32
  }
  func.func @transform_9(%arg0: i32) -> (i32, i32) {
    %c0_i32 = arith.constant 0 : i32
    %c0_i32_0 = arith.constant 0 : i32
    %c0_i32_1 = arith.constant 0 : i32
    return %c0_i32, %c0_i32_0 : i32, i32
  }
  func.func @transform_10(%arg0: i32) -> (i32, i32, i32) {
    %c0_i32 = arith.constant 0 : i32
    %c0_i32_0 = arith.constant 0 : i32
    %c0_i32_1 = arith.constant 0 : i32
    return %arg0, %c0_i32, %c0_i32_0 : i32, i32, i32
  }
}

</mosaic_0001>

<bundles_post_ra>
// kernel: efficientnet_with_bbox_forward.1
= control target key start
LH: loop header
LB: loop body
LE: loop exit
PB: predicated region body
PF: predicated region fallthrough
CT: control target
= control target key end

     0   :  { %s6141_s13 = smov 0   ;;  %s8513_s0 = inlined_call_operand.vmem [shape: bf16[8,9,9,12], index: 0, kind: input, shape index: {}]   ;;  %s8514_s1 = inlined_call_operand.vmem [shape: bf16[48,16], index: 1, kind: input, shape index: {}]   ;;  %s8515_s2 = inlined_call_operand.vmem [shape: bf16[16,64], index: 2, kind: input, shape index: {}]   ;;  %s8516_s3 = inlined_call_operand.vmem [shape: f32[3,3,64], index: 3, kind: input, shape index: {}]   ;;  %s8517_s4 = inlined_call_operand.vmem [shape: bf16[64,8], index: 4, kind: input, shape index: {}]   ;;  %s8518_s5 = inlined_call_operand.vmem [shape: bf16[8,64], index: 5, kind: input, shape index: {}]   ;;  %s8519_s6 = inlined_call_operand.vmem [shape: bf16[64,24], index: 6, kind: input, shape index: {}]   ;;  %s8520_s7 = inlined_call_operand.vmem [shape: bf16[24,64], index: 7, kind: input, shape index: {}]   ;;  %s8521_s8 = inlined_call_operand.vmem [shape: bf16[64,128], index: 8, kind: input, shape index: {}]   ;;  %s8522_s9 = inlined_call_operand.vmem [shape: f32[8,128], index: 9, kind: input, shape index: {}]   ;;  %s8523_s10 = inlined_call_operand.vmem [shape: f32[8,1,128], index: 10, kind: output, shape index: {}]  }
   0x1 LB: > { %s5004_s14 = sadd.s32 4294967295, %s6078_s13   ;;  %p5008_p0 = scmp.ge.s32.totalorder %s6078_s13, 1  ;;  %s6078_s13 = sphi %s6141_s13, %s20_s13  }
   0x2   : > { %p314_p1 = scmp.lt.s32.totalorder %s6078_s13, 3 }
   0x4   : > { %p315_p2 = pnand %p5008_p0, %p314_p1 }
   0x6   : > { %318 = sbr.rel (%p315_p2) target bundleno = 2242 (0x8c2), region = 60 }
   0xd   : > { %s5009_s15 = sshll.u32 %s5004_s14, 2  ;;  %v5637_v0 = vld [vmem:[%s8514_s1] sm:$0xff]   ;;  %s6080_s22 = smov 24   ;;  %v5640_v36 = vld [vmem:[%s8514_s1 + $0x8] sm:$0xff]   ;;  %v5644_v45 = vld [vmem:[%s8514_s1 + $0x10] sm:$0xff]   ;;  %vm1094_vm0 = vcmask 97280  }
   0xe   : > { %p353_p3 = scmp.lt.s32.totalorder %s5009_s15, 7  ;;  %5397 = vmatprep.subr.bf16.mxu0 %v5637_v0  ;;  %s6081_s25 = smov 12   ;;  %vm1191_vm1 = vcmask 195584   ;;  %vm1256_vm2 = vcmask 293888   ;;  %vm1430_vm3 = vcmask 392192   ;;  %vm1797_vm4 = vcmask 130048  }
   0xf   : > { %5398 = vmatpush3.bf16.msra.mxu0 %v5637_v0  ;;  %s6082_s28 = smov 36   ;;  %vm2231_vm5 = vcmask 523264   ;;  %vm2250_vm6 = vcmask 516096   ;;  %vm2233_vm7 = vcmask 517120   ;;  %vm6084_vm8 = vmmov 0  }
  0x10   : > { %s8678_s15 = smov (!%p353_p3, %s5009_s15), 7  ;;  %5399 = vmatprep.subr.bf16.mxu0 %v5640_v36  ;;  %vm3831_vm9 = vcmask 1043456   ;;  %vm3739_vm10 = vcmask 1041409   ;;  %vm3741_vm11 = vcmask 1042434   ;;  %vm3743_vm12 = vcmask 1043459  }
  0x11   : > { %s5576_s16 = smul.u32 72, %s8678_s15  ;;  %vm3827_vm13 = vcmask 64512  }
  0x13   : > { %s6155_s19 = scalar_lea.vmem %s8513_s0, %s5576_s16  ;;  %5400 = vmatpush3.bf16.msra.mxu0 %v5640_v36 }
  0x14   : > { %v6161_v1 = vld [vmem:[%s6155_s19 + $0x10] sm:$0xf]  ;;  %v371_v2 = vld [vmem:[%s6155_s19 + $0x14] sm:$0x1]  ;;  %v6165_v3 = vld [vmem:[%s6155_s19 + $0x8] sm:$0xf]  ;;  %5401 = vmatprep.subr.bf16.mxu0 %v5644_v45 }
  0x15   : > { %v5045_v4 = vcombine.low %v6161_v1, %v6161_v1  ;;  %v5014_v5 = vcombine.low %v6161_v1, %v371_v2  ;;  %v369_v6 = vld [vmem:[%s6155_s19 + $0xc] sm:$0x1]  ;;  %v5044_v7 = vcombine.low %v6165_v3, %v6165_v3  ;;  %v6174_v8 = vld [vmem:[%s6155_s19 + $0x20] sm:$0xf]  ;;  %v6177_v9 = vld [vmem:[%s6155_s19 + $0x18] sm:$0xf] }
  0x16   : > { %v5013_v10 = vcombine.low %v6165_v3, %v369_v6  ;;  %v5047_v11 = vcombine.low %v6174_v8, %v6174_v8  ;;  %v5046_v12 = vcombine.low %v6177_v9, %v6177_v9  ;;  %v6185_v13 = vld [vmem:[%s6155_s19] sm:$0xf]  ;;  %v367_v14 = vld [vmem:[%s6155_s19 + $0x4] sm:$0x1]  ;;  %v373_v15 = vld [vmem:[%s6155_s19 + $0x1c] sm:$0x1] }
  0x17   : > { %928 = vrot.lane.b32.xlu1 %v5045_v4, %s6080_s22  ;;  %926 = vrot.lane.b32.xlu0 %v5044_v7, %s6080_s22  ;;  %v613_v16 = vshrl.u32 %v5014_v5, 16  ;;  %v615_v17 = vshll.u32 %v5014_v5, 16  ;;  %v5012_v18 = vcombine.low %v6185_v13, %v367_v14  ;;  %v5015_v19 = vcombine.low %v6177_v9, %v373_v15  ;;  %v375_v20 = vld [vmem:[%s6155_s19 + $0x24] sm:$0x1]  ;;  %v6198_v33 = vld [vmem:[%s6155_s19 + $0x28] sm:$0xf] }
  0x18   : > { %v608_v21 = vshll.u32 %v5013_v10, 16  ;;  %v606_v26 = vshrl.u32 %v5013_v10, 16  ;;  %v5016_v27 = vcombine.low %v6174_v8, %v375_v20  ;;  %v377_v34 = vld [vmem:[%s6155_s19 + $0x2c] sm:$0x1]  ;;  %v6208_v41 = vld [vmem:[%s6155_s19 + $0x38] sm:$0xf]  ;;  %5402 = vmatpush3.bf16.msra.mxu0 %v5644_v45  ;;  %v5048_v4 = vcombine.low %v6198_v33, %v6198_v33 }
  0x19   : > { %v617_v22 = vrot.slane %v615_v17, 1  ;;  %v599_v23 = vshrl.u32 %v5012_v18, 16  ;;  %v601_v24 = vshll.u32 %v5012_v18, 16  ;;  %v622_v25 = vshll.u32 %v5015_v19, 16  ;;  %v381_v42 = vld [vmem:[%s6155_s19 + $0x3c] sm:$0x1] }
  0x1a   : > { %v620_v30 = vshrl.u32 %v5015_v19, 16  ;;  %v610_v31 = vrot.slane %v608_v21, 1  ;;  %v629_v39 = vshll.u32 %v5016_v27, 16  ;;  %v5017_v40 = vcombine.low %v6198_v33, %v377_v34  ;;  %v6212_v43 = vld [vmem:[%s6155_s19 + $0x30] sm:$0xf] }
  0x1b   : > { %932 = vrot.lane.b32.xlu1 %v5047_v11, %s6080_s22  ;;  %930 = vrot.lane.b32.xlu0 %v5046_v12, %s6080_s22  ;;  %v618_v28 = vor.u32 %v617_v22, %v613_v16  ;;  %v603_v29 = vrot.slane %v601_v24, 1  ;;  %v624_v32 = vrot.slane %v622_v25, 1  ;;  %v379_v44 = vld [vmem:[%s6155_s19 + $0x34] sm:$0x1]  ;;  %v627_v46 = vshrl.u32 %v5016_v27, 16 }
  0x1c   : > { %v611_v38 = vor.u32 %v610_v31, %v606_v26  ;;  %v631_v47 = vrot.slane %v629_v39, 1  ;;  %v636_v48 = vshll.u32 %v5017_v40, 16  ;;  %v5019_v49 = vcombine.low %v6208_v41, %v381_v42  ;;  %v383_v63 = vld [vmem:[%s6155_s19 + $0x44] sm:$0x1]  ;;  %v382_v0 = vld [vmem:[%s6155_s19 + $0x40] sm:$0xf] }
  0x1d   : > { %v604_v35 = vor.u32 %v603_v29, %v599_v23  ;;  %v625_v37 = vor.u32 %v624_v32, %v620_v30  ;;  %v5018_v50 = vcombine.low %v6212_v43, %v379_v44  ;;  %v634_v51 = vshrl.u32 %v5017_v40, 16  ;;  %v6237_v6 = vld [vmem:[%s6155_s19 + $0x50] sm:$0xf]  ;;  %v387_v7 = vld [vmem:[%s6155_s19 + $0x54] sm:$0x1] }
  0x1e   : > { %v632_v52 = vor.u32 %v631_v47, %v627_v46  ;;  %v638_v53 = vrot.slane %v636_v48, 1  ;;  %v650_v54 = vshll.u32 %v5019_v49, 16  ;;  %v648_v56 = vshrl.u32 %v5019_v49, 16  ;;  %v6241_v10 = vld [vmem:[%s6155_s19 + $0x48] sm:$0xf] }
  0x1f   : > { %826 = vrot.lane.b32.xlu1 %v618_v28, %s6081_s25  ;;  %822 = vrot.lane.b32.xlu0 %v604_v35, %s6081_s25  ;;  %v643_v55 = vshll.u32 %v5018_v50, 16  ;;  %v641_v59 = vshrl.u32 %v5018_v50, 16  ;;  %v5049_v2 = vcombine.low %v6212_v43, %v6212_v43  ;;  %v5076_v5 = vcombine.low %v382_v0, %v383_v63  ;;  %v385_v11 = vld [vmem:[%s6155_s19 + $0x4c] sm:$0x1]  ;;  %v6251_v18 = vld [vmem:[%s6155_s19 + $0x60] sm:$0xf] }
  0x20   : > { %v639_v57 = vor.u32 %v638_v53, %v634_v51  ;;  %v652_v58 = vrot.slane %v650_v54, 1  ;;  %v5051_v12 = vcombine.low %v382_v0, %v382_v0  ;;  %v5050_v14 = vcombine.low %v6208_v41, %v6208_v41  ;;  %v391_v19 = vld [vmem:[%s6155_s19 + $0x64] sm:$0x1]  ;;  %v6255_v20 = vld [vmem:[%s6155_s19 + $0x58] sm:$0xf] }
  0x21   : > { %v645_v60 = vrot.slane %v643_v55, 1  ;;  %v1005_v15 = vshll.u32 %v5076_v5, 16  ;;  %v5021_v16 = vcombine.low %v6237_v6, %v387_v7  ;;  %v5020_v17 = vcombine.low %v6241_v10, %v385_v11  ;;  %v389_v21 = vld [vmem:[%s6155_s19 + $0x5c] sm:$0x1]  ;;  %v393_v46 = vld [vmem:[%s6155_s19 + $0x6c] sm:$0x1] }
  0x22   : > { %v653_v61 = vor.u32 %v652_v58, %v648_v56  ;;  %v1003_v22 = vshrl.u32 %v5076_v5, 16  ;;  %v5023_v23 = vcombine.low %v6251_v18, %v391_v19  ;;  %v5022_v27 = vcombine.low %v6255_v20, %v389_v21  ;;  %v6270_v47 = vld [vmem:[%s6155_s19 + $0x68] sm:$0xf]  ;;  %v6280_v51 = vld [vmem:[%s6155_s19 + $0x70] sm:$0xf] }
  0x23   : > { %828 = vrot.lane.b32.xlu1 %v625_v37, %s6081_s25  ;;  %824 = vrot.lane.b32.xlu0 %v611_v38, %s6081_s25  ;;  %v646_v62 = vor.u32 %v645_v60, %v641_v59  ;;  %v1007_v24 = vrot.slane %v1005_v15, 1  ;;  %v664_v25 = vshll.u32 %v5021_v16, 16  ;;  %v657_v26 = vshll.u32 %v5020_v17, 16  ;;  %v399_v58 = vld [vmem:[%s6155_s19 + $0x84] sm:$0x1] }
  0x24   : > { %v655_v29 = vshrl.u32 %v5020_v17, 16  ;;  %v678_v30 = vshll.u32 %v5023_v23, 16  ;;  %v671_v35 = vshll.u32 %v5022_v27, 16  ;;  %v676_v36 = vshrl.u32 %v5023_v23, 16  ;;  %v6295_v59 = vld [vmem:[%s6155_s19 + $0x78] sm:$0xf] }
  0x25   : > { %v1008_v31 = vor.u32 %v1007_v24, %v1003_v22  ;;  %v666_v32 = vrot.slane %v664_v25, 1  ;;  %v659_v34 = vrot.slane %v657_v26, 1  ;;  %v669_v40 = vshrl.u32 %v5022_v27, 16  ;;  %v397_v60 = vld [vmem:[%s6155_s19 + $0x7c] sm:$0x1] }
  0x26   : > { %v673_v42 = vrot.slane %v671_v35, 1  ;;  %v5053_v48 = vcombine.low %v6255_v20, %v6255_v20  ;;  %v5052_v49 = vcombine.low %v6237_v6, %v6237_v6  ;;  %v5024_v50 = vcombine.low %v6270_v47, %v393_v46  ;;  %v401_v23 = vld [vmem:[%s6155_s19 + $0x8c] sm:$0x1]  ;;  %v400_v24 = vld [vmem:[%s6155_s19 + $0x88] sm:$0xf] }
  0x27   : > { %1032 = vrot.lane.b32.xlu1 %v618_v28, %s6082_s28  ;;  %1030 = vrot.lane.b32.xlu0 %v611_v38, %s6082_s28  ;;  %v662_v28 = vshrl.u32 %v5021_v16, 16  ;;  %v660_v39 = vor.u32 %v659_v34, %v655_v29  ;;  %v5055_v53 = vcombine.low %v6270_v47, %v6270_v47  ;;  %v5054_v54 = vcombine.low %v6251_v18, %v6251_v18  ;;  %v405_v29 = vld [vmem:[%s6155_s19 + $0x9c] sm:$0x1] }
  0x28   : > { %v674_v45 = vor.u32 %v673_v42, %v669_v40  ;;  %v685_v55 = vshll.u32 %v5024_v50, 16  ;;  %v5057_v25 = vcombine.low %v6295_v59, %v6295_v59  ;;  %v5056_v26 = vcombine.low %v6280_v51, %v6280_v51  ;;  %v6335_v40 = vld [vmem:[%s6155_s19 + $0xa0] sm:$0xf]  ;;  %v407_v42 = vld [vmem:[%s6155_s19 + $0xa4] sm:$0x1] }
  0x29   : > { %v667_v38 = vor.u32 %v666_v32, %v662_v28  ;;  %v5077_v27 = vcombine.low %v400_v24, %v401_v23  ;;  %v6317_v28 = vld [vmem:[%s6155_s19 + $0x98] sm:$0xf]  ;;  %v5059_v34 = vcombine.low %v400_v24, %v400_v24 }
  0x2a   : > { %v687_v63 = vrot.slane %v685_v55, 1  ;;  %v5029_v32 = vcombine.low %v6317_v28, %v405_v29  ;;  %v415_v29 = vld [vmem:[%s6155_s19 + $0xc4] sm:$0x1] }
  0x2b   : > { %1036 = vrot.lane.b32.xlu1 %v632_v52, %s6082_s28  ;;  %1034 = vrot.lane.b32.xlu0 %v625_v37, %s6082_s28  ;;  %v680_v37 = vrot.slane %v678_v30, 1  ;;  %v6321_v30 = vld [vmem:[%s6155_s19 + $0x90] sm:$0xf] }
  0x2d   : > { %v681_v44 = vor.u32 %v680_v37, %v676_v36  ;;  %v1012_v36 = vshll.u32 %v5077_v27, 16 }
  0x2f   : > { %832 = vrot.lane.b32.xlu1 %v639_v57, %s6081_s25  ;;  %830 = vrot.lane.b32.xlu0 %v632_v52, %s6081_s25  ;;  %v395_v52 = vld [vmem:[%s6155_s19 + $0x74] sm:$0x1]  ;;  %v1014_v46 = vrot.slane %v1012_v36, 1 }
  0x30   : > { %v5025_v56 = vcombine.low %v6280_v51, %v395_v52  ;;  %v718_v52 = vshrl.u32 %v5029_v32, 16 }
  0x32   : > { %v692_v0 = vshll.u32 %v5025_v56, 16 }
  0x33   : > { %836 = vrot.lane.b32.xlu1 %v653_v61, %s6081_s25  ;;  %834 = vrot.lane.b32.xlu0 %v646_v62, %s6081_s25 }
  0x34   : > { %v694_v7 = vrot.slane %v692_v0, 1 }
  0x37   : > { %936 = vrot.lane.b32.xlu1 %v5049_v2, %s6080_s22  ;;  %934 = vrot.lane.b32.xlu0 %v5048_v4, %s6080_s22  ;;  %v5026_v2 = vcombine.low %v6295_v59, %v397_v60  ;;  %v690_v4 = vshrl.u32 %v5025_v56, 16 }
  0x39   : > { %v695_v15 = vor.u32 %v694_v7, %v690_v4  ;;  %v697_v17 = vshrl.u32 %v5026_v2, 16 }
  0x3b   : > { %940 = vrot.lane.b32.xlu1 %v5051_v12, %s6080_s22  ;;  %938 = vrot.lane.b32.xlu0 %v5050_v14, %s6080_s22  ;;  %v699_v12 = vshll.u32 %v5026_v2, 16 }
  0x3d   : > { %v701_v19 = vrot.slane %v699_v12, 1  ;;  %v6350_v12 = vld [vmem:[%s6155_s19 + $0xb0] sm:$0xf] }
  0x3f   : > { %1040 = vrot.lane.b32.xlu1 %v646_v62, %s6082_s28  ;;  %1038 = vrot.lane.b32.xlu0 %v639_v57, %s6082_s28  ;;  %v6291_v57 = vld [vmem:[%s6155_s19 + $0x80] sm:$0xf]  ;;  %v683_v62 = vshrl.u32 %v5024_v50, 16  ;;  %v702_v22 = vor.u32 %v701_v19, %v697_v17  ;;  %v5030_v50 = vcombine.low %v6335_v40, %v407_v42  ;;  %v6360_v17 = vld [vmem:[%s6155_s19 + $0xb8] sm:$0xf] }
  0x40   : > { %v5058_v35 = vcombine.low %v6291_v57, %v6291_v57  ;;  %v413_v19 = vld [vmem:[%s6155_s19 + $0xbc] sm:$0x1] }
  0x41   : > { %v688_v5 = vor.u32 %v687_v63, %v683_v62  ;;  %v727_v60 = vshll.u32 %v5030_v50, 16  ;;  %v725_v2 = vshrl.u32 %v5030_v50, 16  ;;  %v5033_v24 = vcombine.low %v6360_v17, %v413_v19 }
  0x43   : > { %1044 = vrot.lane.b32.xlu1 %v1008_v31, %s6082_s28  ;;  %1042 = vrot.lane.b32.xlu0 %v653_v61, %s6082_s28  ;;  %v5027_v61 = vcombine.low %v6291_v57, %v399_v58  ;;  %v403_v31 = vld [vmem:[%s6155_s19 + $0x94] sm:$0x1]  ;;  %v729_v4 = vrot.slane %v727_v60, 1 }
  0x44   : > { %v5028_v37 = vcombine.low %v6321_v30, %v403_v31 }
  0x45   : > { %v706_v11 = vshll.u32 %v5027_v61, 16  ;;  %v704_v14 = vshrl.u32 %v5027_v61, 16  ;;  %v730_v7 = vor.u32 %v729_v4, %v725_v2 }
  0x47   : > { %840 = vrot.lane.b32.xlu1 %v667_v38, %s6081_s25  ;;  %838 = vrot.lane.b32.xlu0 %v660_v39, %s6081_s25  ;;  %v708_v16 = vrot.slane %v706_v11, 1  ;;  %v409_v39 = vld [vmem:[%s6155_s19 + $0xac] sm:$0x1]  ;;  %v411_v11 = vld [vmem:[%s6155_s19 + $0xb4] sm:$0x1] }
  0x49   : > { %v709_v21 = vor.u32 %v708_v16, %v704_v14  ;;  %v5061_v14 = vcombine.low %v6335_v40, %v6335_v40  ;;  %v5032_v16 = vcombine.low %v6350_v12, %v411_v11  ;;  %v423_v11 = vld [vmem:[%s6155_s19 + $0xe4] sm:$0x1] }
  0x4b   : > { %844 = vrot.lane.b32.xlu1 %v681_v44, %s6081_s25  ;;  %842 = vrot.lane.b32.xlu0 %v674_v45, %s6081_s25  ;;  %v741_v23 = vshll.u32 %v5032_v16, 16 }
  0x4f   : > { %944 = vrot.lane.b32.xlu1 %v5053_v48, %s6080_s22  ;;  %942 = vrot.lane.b32.xlu0 %v5052_v49, %s6080_s22  ;;  %v713_v48 = vshll.u32 %v5028_v37, 16 }
  0x51   : > { %v715_v56 = vrot.slane %v713_v48, 1 }
  0x53   : > { %948 = vrot.lane.b32.xlu1 %v5055_v53, %s6080_s22  ;;  %946 = vrot.lane.b32.xlu0 %v5054_v54, %s6080_s22  ;;  %v711_v54 = vshrl.u32 %v5028_v37, 16  ;;  %v746_v37 = vshrl.u32 %v5033_v24, 16 }
  0x55   : > { %v716_v63 = vor.u32 %v715_v56, %v711_v54 }
  0x57   : > { %1048 = vrot.lane.b32.xlu1 %v674_v45, %s6082_s28  ;;  %1046 = vrot.lane.b32.xlu0 %v667_v38, %s6082_s28  ;;  %v6331_v38 = vld [vmem:[%s6155_s19 + $0xa8] sm:$0xf]  ;;  %v720_v45 = vshll.u32 %v5029_v32, 16  ;;  %v739_v32 = vshrl.u32 %v5032_v16, 16 }
  0x58   : > { %v5031_v49 = vcombine.low %v6331_v38, %v409_v39 }
  0x59   : > { %v722_v53 = vrot.slane %v720_v45, 1 }
  0x5a   : > { %v734_v58 = vshll.u32 %v5031_v49, 16  ;;  %v732_v62 = vshrl.u32 %v5031_v49, 16 }
  0x5b   : > { %1052 = vrot.lane.b32.xlu1 %v688_v5, %s6082_s28  ;;  %1050 = vrot.lane.b32.xlu0 %v681_v44, %s6082_s28  ;;  %v1010_v44 = vshrl.u32 %v5077_v27, 16  ;;  %v723_v61 = vor.u32 %v722_v53, %v718_v52  ;;  %v6375_v27 = vld [vmem:[%s6155_s19 + $0xc0] sm:$0xf] }
  0x5c   : > { %v736_v0 = vrot.slane %v734_v58, 1  ;;  %v5034_v36 = vcombine.low %v6375_v27, %v415_v29  ;;  %v419_v58 = vld [vmem:[%s6155_s19 + $0xd4] sm:$0x1]  ;;  %v5065_v4 = vcombine.low %v6375_v27, %v6375_v27 }
  0x5d   : > { %v1015_v55 = vor.u32 %v1014_v46, %v1010_v44  ;;  %v427_v29 = vld [vmem:[%s6155_s19 + $0xf4] sm:$0x1] }
  0x5e   : > { %v755_v45 = vshll.u32 %v5034_v36, 16  ;;  %v753_v53 = vshrl.u32 %v5034_v36, 16 }
  0x5f   : > { %848 = vrot.lane.b32.xlu1 %v695_v15, %s6081_s25  ;;  %846 = vrot.lane.b32.xlu0 %v688_v5, %s6081_s25  ;;  %v737_v5 = vor.u32 %v736_v0, %v732_v62  ;;  %v418_v62 = vld [vmem:[%s6155_s19 + $0xd0] sm:$0xf] }
  0x60   : > { %v757_v54 = vrot.slane %v755_v45, 1  ;;  %v5078_v2 = vcombine.low %v418_v62, %v419_v58 }
  0x63   : > { %852 = vrot.lane.b32.xlu1 %v709_v21, %s6081_s25  ;;  %850 = vrot.lane.b32.xlu0 %v702_v22, %s6081_s25 }
  0x67   : > { %952 = vrot.lane.b32.xlu1 %v5057_v25, %s6080_s22  ;;  %950 = vrot.lane.b32.xlu0 %v5056_v26, %s6080_s22  ;;  %v6371_v25 = vld [vmem:[%s6155_s19 + $0xc8] sm:$0xf]  ;;  %v417_v26 = vld [vmem:[%s6155_s19 + $0xcc] sm:$0x1] }
  0x68   : > { %v5035_v31 = vcombine.low %v6371_v25, %v417_v26  ;;  %v6415_v26 = vld [vmem:[%s6155_s19 + $0xf0] sm:$0xf] }
  0x69   : > { %v5039_v45 = vcombine.low %v6415_v26, %v427_v29 }
  0x6a   : > { %v762_v44 = vshll.u32 %v5035_v31, 16  ;;  %v760_v49 = vshrl.u32 %v5035_v31, 16  ;;  %v5066_v31 = vcombine.low %v6371_v25, %v6371_v25 }
  0x6b   : > { %956 = vrot.lane.b32.xlu1 %v5059_v34, %s6080_s22  ;;  %954 = vrot.lane.b32.xlu0 %v5058_v35, %s6080_s22  ;;  %v743_v34 = vrot.slane %v741_v23, 1  ;;  %v748_v35 = vshll.u32 %v5033_v24, 16  ;;  %v5067_v24 = vcombine.low %v418_v62, %v418_v62 }
  0x6c   : > { %v764_v52 = vrot.slane %v762_v44, 1 }
  0x6d   : > { %v744_v39 = vor.u32 %v743_v34, %v739_v32  ;;  %v750_v42 = vrot.slane %v748_v35, 1  ;;  %v1017_v34 = vshrl.u32 %v5078_v2, 16  ;;  %v425_v35 = vld [vmem:[%s6155_s19 + $0xec] sm:$0x1] }
  0x6e   : > { %v6392_v60 = vor.u32 %v764_v52, %v760_v49 }
  0x6f   : > { %1056 = vrot.lane.b32.xlu1 %v702_v22, %s6082_s28  ;;  %1054 = vrot.lane.b32.xlu0 %v695_v15, %s6082_s28  ;;  %v5060_v15 = vcombine.low %v6317_v28, %v6317_v28  ;;  %v5062_v22 = vcombine.low %v6331_v38, %v6331_v38  ;;  %v6386_v50 = vor.u32 %v750_v42, %v746_v37 }
  0x73   : > { %1060 = vrot.lane.b32.xlu1 %v1015_v55, %s6082_s28  ;;  %1058 = vrot.lane.b32.xlu0 %v709_v21, %s6082_s28  ;;  %v5063_v21 = vcombine.low %v6350_v12, %v6350_v12 }
  0x77   : > { %856 = vrot.lane.b32.xlu1 %v723_v61, %s6081_s25  ;;  %854 = vrot.lane.b32.xlu0 %v716_v63, %s6081_s25 }
  0x7b   : > { %860 = vrot.lane.b32.xlu1 %v737_v5, %s6081_s25  ;;  %858 = vrot.lane.b32.xlu0 %v730_v7, %s6081_s25 }
  0x7f   : > { %960 = vrot.lane.b32.xlu1 %v5061_v14, %s6080_s22  ;;  %958 = vrot.lane.b32.xlu0 %v5060_v15, %s6080_s22  ;;  %v6407_v14 = vld [vmem:[%s6155_s19 + $0xd8] sm:$0xf]  ;;  %v421_v15 = vld [vmem:[%s6155_s19 + $0xdc] sm:$0x1] }
  0x83   : > { %964 = vrot.lane.b32.xlu1 %v5063_v21, %s6080_s22  ;;  %962 = vrot.lane.b32.xlu0 %v5062_v22, %s6080_s22  ;;  %v1019_v21 = vshll.u32 %v5078_v2, 16 }
  0x85   : > { %v1021_v44 = vrot.slane %v1019_v21, 1 }
  0x87   : > { %1064 = vrot.lane.b32.xlu1 %v730_v7, %s6082_s28  ;;  %1062 = vrot.lane.b32.xlu0 %v723_v61, %s6082_s28  ;;  %v758_v61 = vor.u32 %v757_v54, %v753_v53  ;;  %v6403_v7 = vld [vmem:[%s6155_s19 + $0xe0] sm:$0xf] }
  0x88   : > { %v5037_v32 = vcombine.low %v6403_v7, %v423_v11 }
  0x89   : > { %v929_v46 = vpop.permute.xlu1 %928  ;;  %v927_v48 = vpop.permute.xlu0 %926 }
  0x8b   : > { %1068 = vrot.lane.b32.xlu1 %v744_v39, %s6082_s28  ;;  %1066 = vrot.lane.b32.xlu0 %v737_v5, %s6082_s28  ;;  %v5064_v5 = vcombine.low %v6360_v17, %v6360_v17 }
  0x8d   : > { %v933_v55 = vpop.permute.xlu1 %932  ;;  %v931_v56 = vpop.permute.xlu0 %930 }
  0x8f   : > { %864 = vrot.lane.b32.xlu1 %v6386_v50, %s6081_s25  ;;  %862 = vrot.lane.b32.xlu0 %v744_v39, %s6081_s25 }
  0x91   : > { %v827_v63 = vpop.permute.xlu1 %826  ;;  %v823_v0 = vpop.permute.xlu0 %822 }
  0x92   : > { %v1097_v22 = vsel %vm1094_vm0, %v6185_v13, %v823_v0  ;;  %v5036_v13 = vcombine.low %v6407_v14, %v421_v15  ;;  %v1103_v49 = vsel %vm1094_vm0, %v6161_v1, %v827_v63  ;;  %v774_v63 = vshrl.u32 %v5037_v32, 16 }
  0x93   : > { %868 = vrot.lane.b32.xlu1 %v6392_v60, %s6081_s25  ;;  %866 = vrot.lane.b32.xlu0 %v758_v61, %s6081_s25  ;;  %v1193_v39 = vsel %vm1191_vm1, %v1097_v22, %v927_v48  ;;  %v776_v48 = vshll.u32 %v5037_v32, 16  ;;  %v1197_v1 = vsel %vm1191_vm1, %v1103_v49, %v931_v56  ;;  %v1022_v15 = vor.u32 %v1021_v44, %v1017_v34  ;;  %v6456_v44 = vld [vmem:[%s6155_s19 + $0xf8] sm:$0xf] }
  0x94   : > { %v769_v58 = vshll.u32 %v5036_v13, 16 }
  0x95   : > { %v829_v16 = vpop.permute.xlu1 %828  ;;  %v825_v19 = vpop.permute.xlu0 %824 }
  0x96   : > { %v1100_v23 = vsel %vm1094_vm0, %v6165_v3, %v825_v19  ;;  %v6425_v3 = vld [vmem:[%s6155_s19 + $0xe8] sm:$0xf]  ;;  %v1106_v52 = vsel %vm1094_vm0, %v6177_v9, %v829_v16  ;;  %v790_v16 = vshll.u32 %v5039_v45, 16  ;;  %v771_v21 = vrot.slane %v769_v58, 1 }
  0x97   : > { %968 = vrot.lane.b32.xlu1 %v5065_v4, %s6080_s22  ;;  %966 = vrot.lane.b32.xlu0 %v5064_v5, %s6080_s22  ;;  %v1195_v37 = vsel %vm1191_vm1, %v1100_v23, %v929_v46  ;;  %v5038_v62 = vcombine.low %v6425_v3, %v425_v35  ;;  %v1199_v0 = vsel %vm1191_vm1, %v1106_v52, %v933_v55  ;;  %v767_v4 = vshrl.u32 %v5036_v13, 16  ;;  %v6466_v52 = vld [vmem:[%s6155_s19 + $0x100] sm:$0xf] }
  0x98   : > { %v778_v55 = vrot.slane %v776_v48, 1  ;;  %v792_v32 = vrot.slane %v790_v16, 1  ;;  %v5071_v48 = vcombine.low %v6456_v44, %v6456_v44  ;;  %v5070_v58 = vcombine.low %v6415_v26, %v6415_v26 }
  0x99   : > { %v1033_v36 = vpop.permute.xlu1 %1032  ;;  %v1031_v42 = vpop.permute.xlu0 %1030  ;;  %v783_v22 = vshll.u32 %v5038_v62, 16  ;;  %v781_v29 = vshrl.u32 %v5038_v62, 16 }
  0x9a   : > { %v1260_v53 = vsel %vm1256_vm2, %v1195_v37, %v1033_v36  ;;  %v1258_v54 = vsel %vm1256_vm2, %v1193_v39, %v1031_v42  ;;  %v429_v37 = vld [vmem:[%s6155_s19 + $0xfc] sm:$0x1] }
  0x9b   : > { %972 = vrot.lane.b32.xlu1 %v5067_v24, %s6080_s22  ;;  %970 = vrot.lane.b32.xlu0 %v5066_v31, %s6080_s22  ;;  %v5081_v46 = vcombine.low %v1258_v54, %v1260_v53  ;;  %v788_v24 = vshrl.u32 %v5039_v45, 16  ;;  %v772_v31 = vor.u32 %v771_v21, %v767_v4  ;;  %v5068_v45 = vcombine.low %v6403_v7, %v6403_v7  ;;  %v431_v53 = vld [vmem:[%s6155_s19 + $0x104] sm:$0x1]  ;;  %v6485_v4 = vld [vmem:[%s6155_s19 + $0x108] sm:$0xf] }
  0x9c   : > { %v5040_v49 = vcombine.low %v6456_v44, %v429_v37 }
  0x9d   : > { %v1037_v2 = vpop.permute.xlu1 %1036  ;;  %5403 = vmatprep.mubr.msk.bf16.mxu0 %vm1430_vm3, %v5081_v46  ;;  %v1035_v9 = vpop.permute.xlu0 %1034  ;;  %v793_v35 = vor.u32 %v792_v32, %v788_v24 }
  0x9e   : > { %v1264_v5 = vsel %vm1256_vm2, %v1199_v0, %v1037_v2  ;;  %v1262_v11 = vsel %vm1256_vm2, %v1197_v1, %v1035_v9  ;;  %v797_v62 = vshll.u32 %v5040_v49, 16  ;;  %v5041_v0 = vcombine.low %v6466_v52, %v431_v53  ;;  %v6477_v2 = vld [vmem:[%s6155_s19 + $0x110] sm:$0xf]  ;;  %v435_v1 = vld [vmem:[%s6155_s19 + $0x114] sm:$0x1] }
  0x9f   : > { %v5082_v19 = vcombine.low %v1262_v11, %v1264_v5  ;;  %1072 = vrot.lane.b32.xlu1 %v758_v61, %s6082_s28  ;;  %1070 = vrot.lane.b32.xlu0 %v6386_v50, %s6082_s28  ;;  %v779_v61 = vor.u32 %v778_v55, %v774_v63  ;;  %v785_v50 = vrot.slane %v783_v22, 1  ;;  %v433_v5 = vld [vmem:[%s6155_s19 + $0x10c] sm:$0x1]  ;;  %v795_v22 = vshrl.u32 %v5040_v49, 16 }
  0xa0   : > { %v5043_v24 = vcombine.low %v6477_v2, %v435_v1 }
  0xa1   : > { %v833_v23 = vpop.permute.xlu1 %832  ;;  %5404 = vmatmul.mubr.msk.bf16.vlgmr.msra.gmra.mrb[0].mxu0 %vm1430_vm3, %v5082_v19  ;;  %v831_v56 = vpop.permute.xlu0 %830  ;;  %v786_v36 = vor.u32 %v785_v50, %v781_v29 }
  0xa2   : > { %v1112_v9 = vsel %vm1094_vm0, %v6198_v33, %v833_v23  ;;  %v1109_v63 = vsel %vm1094_vm0, %v6174_v8, %v831_v56  ;;  %v799_v8 = vrot.slane %v797_v62, 1  ;;  %v804_v23 = vshll.u32 %v5041_v0, 16 }
  0xa3   : > { %1076 = vrot.lane.b32.xlu1 %v1022_v15, %s6082_s28  ;;  %1074 = vrot.lane.b32.xlu0 %v6392_v60, %s6082_s28  ;;  %v5069_v60 = vcombine.low %v6425_v3, %v6425_v3  ;;  %v5042_v56 = vcombine.low %v6485_v4, %v433_v5  ;;  %v818_v49 = vshll.u32 %v5043_v24, 16 }
  0xa5   : > { %v837_v13 = vpop.permute.xlu1 %836  ;;  %v835_v34 = vpop.permute.xlu0 %834  ;;  %v809_v62 = vshrl.u32 %v5042_v56, 16 }
  0xa6   : > { %v1118_v29 = vsel %vm1094_vm0, %v6208_v41, %v837_v13  ;;  %v800_v41 = vor.u32 %v799_v8, %v795_v22  ;;  %v811_v13 = vshll.u32 %v5042_v56, 16 }
  0xa7   : > { %872 = vrot.lane.b32.xlu1 %v779_v61, %s6081_s25  ;;  %870 = vrot.lane.b32.xlu0 %v772_v31, %s6081_s25  ;;  %v1115_v31 = vsel %vm1094_vm0, %v6212_v43, %v835_v34  ;;  %v806_v43 = vrot.slane %v804_v23, 1 }
  0xa9   : > { %v937_v39 = vpop.permute.xlu1 %936  ;;  %v935_v42 = vpop.permute.xlu0 %934 }
  0xaa   : > { %v1203_v11 = vsel %vm1191_vm1, %v1112_v9, %v937_v39  ;;  %v1201_v15 = vsel %vm1191_vm1, %v1109_v63, %v935_v42  ;;  %v437_v63 = vld [vmem:[%s6155_s19 + $0x11c] sm:$0x1] }
  0xab   : > { %876 = vrot.lane.b32.xlu1 %v793_v35, %s6081_s25  ;;  %874 = vrot.lane.b32.xlu0 %v786_v36, %s6081_s25 }
  0xad   : > { %v941_v54 = vpop.permute.xlu1 %940  ;;  %v939_v46 = vpop.permute.xlu0 %938 }
  0xae   : > { %v1207_v32 = vsel %vm1191_vm1, %v1118_v29, %v941_v54  ;;  %v1205_v50 = vsel %vm1191_vm1, %v1115_v31, %v939_v46  ;;  %v816_v46 = vshrl.u32 %v5043_v24, 16  ;;  %v5074_v24 = vcombine.low %v6477_v2, %v6477_v2 }
  0xaf   : > { %976 = vrot.lane.b32.xlu1 %v5069_v60, %s6080_s22  ;;  %974 = vrot.lane.b32.xlu0 %v5068_v45, %s6080_s22  ;;  %v802_v45 = vshrl.u32 %v5041_v0, 16 }
  0xb1   : > { %v1041_v16 = vpop.permute.xlu1 %1040  ;;  %v1039_v19 = vpop.permute.xlu0 %1038 }
  0xb2   : > { %v1268_v55 = vsel %vm1256_vm2, %v1203_v11, %v1041_v16  ;;  %v1266_v21 = vsel %vm1256_vm2, %v1201_v15, %v1039_v19  ;;  %v436_v15 = vld [vmem:[%s6155_s19 + $0x118] sm:$0xf]  ;;  %v5072_v16 = vcombine.low %v6466_v52, %v6466_v52  ;;  %s362_s19 = scalar_lea.vmem %s8523_s10, %s8678_s15 }
  0xb3   : > { %v5083_v33 = vcombine.low %v1266_v21, %v1268_v55  ;;  %980 = vrot.lane.b32.xlu1 %v5071_v48, %s6080_s22  ;;  %978 = vrot.lane.b32.xlu0 %v5070_v58, %s6080_s22  ;;  %v807_v48 = vor.u32 %v806_v43, %v802_v45  ;;  %v820_v58 = vrot.slane %v818_v49, 1  ;;  %v5079_v19 = vcombine.low %v436_v15, %v437_v63 }
  0xb4   : > { %v5075_v22 = vcombine.low %v436_v15, %v436_v15 }
  0xb5   : > { %v1045_v37 = vpop.permute.xlu1 %1044  ;;  %5407 = vmatprep.mubr.msk.bf16.mxu0 %vm1430_vm3, %v5083_v33  ;;  %v1043_v39 = vpop.permute.xlu0 %1042  ;;  %v821_v1 = vor.u32 %v820_v58, %v816_v46  ;;  %v1026_v33 = vshll.u32 %v5079_v19, 16 }
  0xb6   : > { %v1272_v42 = vsel %vm1256_vm2, %v1207_v32, %v1045_v37  ;;  %v1270_v60 = vsel %vm1256_vm2, %v1205_v50, %v1043_v39 }
  0xb7   : > { %v5084_v53 = vcombine.low %v1270_v60, %v1272_v42  ;;  %1080 = vrot.lane.b32.xlu1 %v786_v36, %s6082_s28  ;;  %1078 = vrot.lane.b32.xlu0 %v779_v61, %s6082_s28  ;;  %v813_v36 = vrot.slane %v811_v13, 1  ;;  %v1024_v42 = vshrl.u32 %v5079_v19, 16 }
  0xb9   : > { %v841_v34 = vpop.permute.xlu1 %840  ;;  %5408 = vmatmul.mubr.msk.bf16.gmra.mrb[4].mxu0 %vm1430_vm3, %v5084_v53  ;;  %v839_v54 = vpop.permute.xlu0 %838  ;;  %v814_v9 = vor.u32 %v813_v36, %v809_v62 }
  0xba   : > { %v1124_v8 = vsel %vm1094_vm0, %v6237_v6, %v841_v34  ;;  %v1121_v23 = vsel %vm1094_vm0, %v6241_v10, %v839_v54  ;;  %v1028_v6 = vrot.slane %v1026_v33, 1 }
  0xbb   : > { %1084 = vrot.lane.b32.xlu1 %v800_v41, %s6082_s28  ;;  %1082 = vrot.lane.b32.xlu0 %v793_v35, %s6082_s28  ;;  %v5073_v35 = vcombine.low %v6485_v4, %v6485_v4 }
  0xbd   : > { %v845_v0 = vpop.permute.xlu1 %844  ;;  %v843_v61 = vpop.permute.xlu0 %842 }
  0xbe   : > { %v1130_v10 = vsel %vm1094_vm0, %v6251_v18, %v845_v0  ;;  %v1127_v60 = vsel %vm1094_vm0, %v6255_v20, %v843_v61  ;;  %v1029_v18 = vor.u32 %v1028_v6, %v1024_v42 }
  0xbf   : > { %880 = vrot.lane.b32.xlu1 %v807_v48, %s6081_s25  ;;  %878 = vrot.lane.b32.xlu0 %v800_v41, %s6081_s25 }
  0xc1   : > { %v945_v5 = vpop.permute.xlu1 %944  ;;  %v943_v11 = vpop.permute.xlu0 %942 }
  0xc2   : > { %v1211_v56 = vsel %vm1191_vm1, %v1124_v8, %v945_v5  ;;  %v1209_v29 = vsel %vm1191_vm1, %v1121_v23, %v943_v11 }
  0xc3   : > { %884 = vrot.lane.b32.xlu1 %v821_v1, %s6081_s25  ;;  %882 = vrot.lane.b32.xlu0 %v814_v9, %s6081_s25 }
  0xc5   : > { %v949_v55 = vpop.permute.xlu1 %948  ;;  %v947_v21 = vpop.permute.xlu0 %946 }
  0xc6   : > { %v1215_v45 = vsel %vm1191_vm1, %v1130_v10, %v949_v55  ;;  %v1213_v49 = vsel %vm1191_vm1, %v1127_v60, %v947_v21 }
  0xc7   : > { %984 = vrot.lane.b32.xlu1 %v5073_v35, %s6080_s22  ;;  %982 = vrot.lane.b32.xlu0 %v5072_v16, %s6080_s22 }
  0xc9   : > { %v1049_v31 = vpop.permute.xlu1 %1048  ;;  %v1047_v32 = vpop.permute.xlu0 %1046 }
  0xca   : > { %v1276_v50 = vsel %vm1256_vm2, %v1211_v56, %v1049_v31  ;;  %v1274_v37 = vsel %vm1256_vm2, %v1209_v29, %v1047_v32 }
  0xcb   : > { %v5085_v39 = vcombine.low %v1274_v37, %v1276_v50  ;;  %988 = vrot.lane.b32.xlu1 %v5075_v22, %s6080_s22  ;;  %986 = vrot.lane.b32.xlu0 %v5074_v24, %s6080_s22 }
  0xcd   : > { %v1053_v53 = vpop.permute.xlu1 %1052  ;;  %5411 = vmatprep.mubr.msk.bf16.mxu0 %vm1430_vm3, %v5085_v39  ;;  %v1051_v41 = vpop.permute.xlu0 %1050 }
  0xce   : > { %v1280_v43 = vsel %vm1256_vm2, %v1215_v45, %v1053_v53  ;;  %v1278_v13 = vsel %vm1256_vm2, %v1213_v49, %v1051_v41 }
  0xcf   : > { %v5086_v34 = vcombine.low %v1278_v13, %v1280_v43  ;;  %1088 = vrot.lane.b32.xlu1 %v814_v9, %s6082_s28  ;;  %1086 = vrot.lane.b32.xlu0 %v807_v48, %s6082_s28 }
  0xd1   : > { %v849_v54 = vpop.permute.xlu1 %848  ;;  %5412 = vmatmul.mubr.msk.bf16.gmra.mrb[8].mxu0 %vm1430_vm3, %v5086_v34  ;;  %v847_v20 = vpop.permute.xlu0 %846 }
  0xd2   : > { %v1136_v9 = vsel %vm1094_vm0, %v6280_v51, %v849_v54  ;;  %v1133_v48 = vsel %vm1094_vm0, %v6270_v47, %v847_v20 }
  0xd3   : > { %1092 = vrot.lane.b32.xlu1 %v1029_v18, %s6082_s28  ;;  %1090 = vrot.lane.b32.xlu0 %v821_v1, %s6082_s28 }
  0xd5   : > { %v853_v46 = vpop.permute.xlu1 %852  ;;  %v851_v58 = vpop.permute.xlu0 %850 }
  0xd6   : > { %v1142_v19 = vsel %vm1094_vm0, %v6291_v57, %v853_v46  ;;  %v1139_v51 = vsel %vm1094_vm0, %v6295_v59, %v851_v58 }
  0xd9   : > { %v953_v62 = vpop.permute.xlu1 %952  ;;  %v951_v36 = vpop.permute.xlu0 %950 }
  0xda   : > { %v1219_v63 = vsel %vm1191_vm1, %v1136_v9, %v953_v62  ;;  %v1217_v5 = vsel %vm1191_vm1, %v1133_v48, %v951_v36 }
  0xdd   : > { %v957_v0 = vpop.permute.xlu1 %956  ;;  %v955_v61 = vpop.permute.xlu0 %954 }
  0xde   : > { %v1223_v55 = vsel %vm1191_vm1, %v1142_v19, %v957_v0  ;;  %v1221_v47 = vsel %vm1191_vm1, %v1139_v51, %v955_v61 }
  0xe1   : > { %v1057_v11 = vpop.permute.xlu1 %1056  ;;  %v1055_v15 = vpop.permute.xlu0 %1054 }
  0xe2   : > { %v1284_v1 = vsel %vm1256_vm2, %v1219_v63, %v1057_v11  ;;  %v1282_v35 = vsel %vm1256_vm2, %v1217_v5, %v1055_v15 }
  0xe3   : > { %v5087_v16 = vcombine.low %v1282_v35, %v1284_v1 }
  0xe5   : > { %v1061_v21 = vpop.permute.xlu1 %1060  ;;  %5415 = vmatprep.mubr.msk.bf16.mxu0 %vm1430_vm3, %v5087_v16  ;;  %v1059_v22 = vpop.permute.xlu0 %1058 }
  0xe6   : > { %v1288_v24 = vsel %vm1256_vm2, %v1223_v55, %v1061_v21  ;;  %v1286_v33 = vsel %vm1256_vm2, %v1221_v47, %v1059_v22 }
  0xe7   : > { %v5088_v8 = vcombine.low %v1286_v33, %v1288_v24 }
  0xe9   : > { %v857_v23 = vpop.permute.xlu1 %856  ;;  %5416 = vmatmul.mubr.msk.bf16.gmra.mrb[12].mxu0 %vm1430_vm3, %v5088_v8  ;;  %v855_v57 = vpop.permute.xlu0 %854 }
  0xea   : > { %v1148_v37 = vsel %vm1094_vm0, %v6317_v28, %v857_v23  ;;  %v1145_v39 = vsel %vm1094_vm0, %v6321_v30, %v855_v57 }
  0xed   : > { %v861_v56 = vpop.permute.xlu1 %860  ;;  %v859_v29 = vpop.permute.xlu0 %858 }
  0xee   : > { %v1154_v41 = vsel %vm1094_vm0, %v6331_v38, %v861_v56  ;;  %v1151_v28 = vsel %vm1094_vm0, %v6335_v40, %v859_v29 }
  0xf1   : > { %v961_v59 = vpop.permute.xlu1 %960  ;;  %v959_v31 = vpop.permute.xlu0 %958 }
  0xf2   : > { %v1227_v42 = vsel %vm1191_vm1, %v1148_v37, %v961_v59  ;;  %v1225_v6 = vsel %vm1191_vm1, %v1145_v39, %v959_v31 }
  0xf5   : > { %v965_v32 = vpop.permute.xlu1 %964  ;;  %v963_v50 = vpop.permute.xlu0 %962 }
  0xf6   : > { %v1231_v43 = vsel %vm1191_vm1, %v1154_v41, %v965_v32  ;;  %v1229_v30 = vsel %vm1191_vm1, %v1151_v28, %v963_v50 }
  0xf9   : > { %v1065_v10 = vpop.permute.xlu1 %1064  ;;  %v1063_v60 = vpop.permute.xlu0 %1062 }
  0xfa   : > { %v1292_v45 = vsel %vm1256_vm2, %v1227_v42, %v1065_v10  ;;  %v1290_v49 = vsel %vm1256_vm2, %v1225_v6, %v1063_v60 }
  0xfb   : > { %v5089_v53 = vcombine.low %v1290_v49, %v1292_v45 }
  0xfd   : > { %v1069_v13 = vpop.permute.xlu1 %1068  ;;  %5419 = vmatprep.mubr.msk.bf16.mxu0 %vm1430_vm3, %v5089_v53  ;;  %v1067_v34 = vpop.permute.xlu0 %1066 }
  0xfe   : > { %v1296_v18 = vsel %vm1256_vm2, %v1231_v43, %v1069_v13  ;;  %v1294_v54 = vsel %vm1256_vm2, %v1229_v30, %v1067_v34 }
  0xff   : > { %v5090_v20 = vcombine.low %v1294_v54, %v1296_v18 }
 0x101   : > { %v865_v46 = vpop.permute.xlu1 %864  ;;  %5420 = vmatmul.mubr.msk.bf16.gmra.mrb[16].mxu0 %vm1430_vm3, %v5090_v20  ;;  %v863_v38 = vpop.permute.xlu0 %862 }
 0x102   : > { %v1160_v9 = vsel %vm1094_vm0, %v6360_v17, %v865_v46  ;;  %v1157_v48 = vsel %vm1094_vm0, %v6350_v12, %v863_v38 }
 0x105   : > { %v869_v58 = vpop.permute.xlu1 %868  ;;  %v867_v62 = vpop.permute.xlu0 %866 }
 0x106   : > { %v1166_v19 = vsel %vm1094_vm0, %v6371_v25, %v869_v58  ;;  %v1163_v17 = vsel %vm1094_vm0, %v6375_v27, %v867_v62  ;;  %v5662_v25 = vld [vmem:[%s8515_s2] sm:$0xff]  }
 0x107   : > { %5435 = vmatprep.subr.bf16.mxu1 %v5662_v25 }
 0x108   : > { %5436 = vmatpush3.bf16.msra.mxu1 %v5662_v25 }
 0x109   : > { %v969_v40 = vpop.permute.xlu1 %968  ;;  %v967_v36 = vpop.permute.xlu0 %966 }
 0x10a   : > { %v1235_v63 = vsel %vm1191_vm1, %v1160_v9, %v969_v40  ;;  %v1233_v5 = vsel %vm1191_vm1, %v1157_v48, %v967_v36 }
 0x10d   : > { %v973_v0 = vpop.permute.xlu1 %972  ;;  %v971_v61 = vpop.permute.xlu0 %970 }
 0x10e   : > { %v1239_v51 = vsel %vm1191_vm1, %v1166_v19, %v973_v0  ;;  %v1237_v12 = vsel %vm1191_vm1, %v1163_v17, %v971_v61 }
 0x111   : > { %v1073_v11 = vpop.permute.xlu1 %1072  ;;  %v1071_v15 = vpop.permute.xlu0 %1070 }
 0x112   : > { %v1300_v1 = vsel %vm1256_vm2, %v1235_v63, %v1073_v11  ;;  %v1298_v35 = vsel %vm1256_vm2, %v1233_v5, %v1071_v15 }
 0x113   : > { %v5091_v16 = vcombine.low %v1298_v35, %v1300_v1 }
 0x115   : > { %v1077_v55 = vpop.permute.xlu1 %1076  ;;  %5423 = vmatprep.mubr.msk.bf16.mxu0 %vm1430_vm3, %v5091_v16  ;;  %v1075_v47 = vpop.permute.xlu0 %1074 }
 0x116   : > { %v1304_v21 = vsel %vm1256_vm2, %v1239_v51, %v1077_v55  ;;  %v1302_v22 = vsel %vm1256_vm2, %v1237_v12, %v1075_v47 }
 0x117   : > { %v5092_v24 = vcombine.low %v1302_v22, %v1304_v21 }
 0x119   : > { %v873_v33 = vpop.permute.xlu1 %872  ;;  %5424 = vmatmul.mubr.msk.bf16.gmra.mrb[20].mxu0 %vm1430_vm3, %v5092_v24  ;;  %v871_v27 = vpop.permute.xlu0 %870 }
 0x11a   : > { %v1172_v31 = vsel %vm1094_vm0, %v6403_v7, %v873_v33  ;;  %v1169_v32 = vsel %vm1094_vm0, %v6407_v14, %v871_v27 }
 0x11d   : > { %v877_v8 = vpop.permute.xlu1 %876  ;;  %v875_v23 = vpop.permute.xlu0 %874 }
 0x11e   : > { %v1178_v45 = vsel %vm1094_vm0, %v6415_v26, %v877_v8  ;;  %v1175_v7 = vsel %vm1094_vm0, %v6425_v3, %v875_v23 }
 0x121   : > { %v977_v57 = vpop.permute.xlu1 %976  ;;  %v975_v56 = vpop.permute.xlu0 %974 }
 0x122   : > { %v1243_v50 = vsel %vm1191_vm1, %v1172_v31, %v977_v57  ;;  %v1241_v37 = vsel %vm1191_vm1, %v1169_v32, %v975_v56 }
 0x125   : > { %v981_v29 = vpop.permute.xlu1 %980  ;;  %v979_v59 = vpop.permute.xlu0 %978 }
 0x126   : > { %v1247_v49 = vsel %vm1191_vm1, %v1178_v45, %v981_v29  ;;  %v1245_v14 = vsel %vm1191_vm1, %v1175_v7, %v979_v59 }
 0x129   : > { %v1081_v39 = vpop.permute.xlu1 %1080  ;;  %v1079_v42 = vpop.permute.xlu0 %1078 }
 0x12a   : > { %v1308_v6 = vsel %vm1256_vm2, %v1243_v50, %v1081_v39  ;;  %v1306_v10 = vsel %vm1256_vm2, %v1241_v37, %v1079_v42 }
 0x12b   : > { %v5093_v60 = vcombine.low %v1306_v10, %v1308_v6 }
 0x12d   : > { %v1085_v53 = vpop.permute.xlu1 %1084  ;;  %5427 = vmatprep.mubr.msk.bf16.mxu0 %vm1430_vm3, %v5093_v60  ;;  %v1083_v41 = vpop.permute.xlu0 %1082 }
 0x12e   : > { %v1312_v28 = vsel %vm1256_vm2, %v1247_v49, %v1085_v53  ;;  %v1310_v43 = vsel %vm1256_vm2, %v1245_v14, %v1083_v41 }
 0x12f   : > { %v5094_v30 = vcombine.low %v1310_v43, %v1312_v28 }
 0x131   : > { %v881_v13 = vpop.permute.xlu1 %880  ;;  %5428 = vmatmul.mubr.msk.bf16.gmra.mrb[24].mxu0 %vm1430_vm3, %v5094_v30  ;;  %v879_v26 = vpop.permute.xlu0 %878 }
 0x132   : > { %v1184_v38 = vsel %vm1094_vm0, %v6466_v52, %v881_v13  ;;  %v1181_v58 = vsel %vm1094_vm0, %v6456_v44, %v879_v26 }
 0x135   : > { %v885_v34 = vpop.permute.xlu1 %884  ;;  %v883_v18 = vpop.permute.xlu0 %882 }
 0x136   : > { %v1190_v63 = vsel %vm1094_vm0, %v6477_v2, %v885_v34  ;;  %v1187_v52 = vsel %vm1094_vm0, %v6485_v4, %v883_v18  ;;  %v6644_v2 = vld [vmem:[%s8522_s9] ss:$0 sm:$0xff] }
 0x139   : > { %v985_v3 = vpop.permute.xlu1 %984  ;;  %v983_v54 = vpop.permute.xlu0 %982 }
 0x13a   : > { %v1251_v62 = vsel %vm1191_vm1, %v1184_v38, %v985_v3  ;;  %v1249_v40 = vsel %vm1191_vm1, %v1181_v58, %v983_v54 }
 0x13d   : > { %v989_v20 = vpop.permute.xlu1 %988  ;;  %v987_v46 = vpop.permute.xlu0 %986 }
 0x13e   : > { %v1255_v5 = vsel %vm1191_vm1, %v1190_v63, %v989_v20  ;;  %v1253_v44 = vsel %vm1191_vm1, %v1187_v52, %v987_v46 }
 0x141   : > { %v1089_v36 = vpop.permute.xlu1 %1088  ;;  %v1087_v0 = vpop.permute.xlu0 %1086 }
 0x142   : > { %v1316_v61 = vsel %vm1256_vm2, %v1251_v62, %v1089_v36  ;;  %v1314_v9 = vsel %vm1256_vm2, %v1249_v40, %v1087_v0 }
 0x143   : > { %v5095_v48 = vcombine.low %v1314_v9, %v1316_v61 }
 0x145   : > { %v1093_v11 = vpop.permute.xlu1 %1092  ;;  %5431 = vmatprep.mubr.msk.bf16.mxu0 %vm1430_vm3, %v5095_v48  ;;  %v1091_v15 = vpop.permute.xlu0 %1090 }
 0x146   : > { %v1320_v1 = vsel %vm1256_vm2, %v1255_v5, %v1093_v11  ;;  %v1318_v35 = vsel %vm1256_vm2, %v1253_v44, %v1091_v15 }
 0x147   : > { %v5096_v16 = vcombine.low %v1318_v35, %v1320_v1 }
 0x149   : > { %5432 = vmatmul.mubr.msk.bf16.gmra.mrb[28].mxu0 %vm1430_vm3, %v5096_v16 }
 0x174   : > { %v5405_v19 = vpop.f32.mrb[0].mxu0 }
 0x175   : > { %v1513_v4 = vpop.f32.mrb[1].mxu0  ;;  %v1522_v51 = vadd.f32 %v5405_v19, %v6644_v2 }
 0x176   : > { %v5406_v17 = vpop.f32.mrb[2].mxu0  ;;  %v1514_v47 = vadd.f32 %v6644_v2, %v1513_v4 }
 0x177   : > { %v1525_v12 = vadd.f32 %v5406_v17, %v6644_v2  ;;  %v1516_v55 = vpop.f32.mrb[3].mxu0 }
 0x178   : > { %v1517_v21 = vadd.f32 %v6644_v2, %v1516_v55 }
 0x179   : > { %v1641_v22 = vpack.c.bf16 %v1525_v12, %v1522_v51 }
 0x17a   : > { %v1640_v24 = vpack.c.bf16 %v1517_v21, %v1514_v47 }
 0x17b   : > { %v5117_v25 = vmul.bf16 3216621497, %v1641_v22 }
 0x17c   : > { %v5116_v33 = vmul.bf16 3216621497, %v1640_v24 }
 0x17d   : > { %5677 = vpow.bf16 %v5117_v25 }
 0x17e   : > { %5679 = vpow.bf16 %v5116_v33 }
 0x188   : > { %v5678_v27 = vpop.eup %5677 }
 0x189   : > { %v5680_v8 = vpop.eup %5679  ;;  %v1721_v23 = vadd.bf16 1065369472, %v5678_v27 }
 0x18a   : > { %v1720_v57 = vadd.bf16 1065369472, %v5680_v8 }
 0x18b   : > { %5681 = vrcp.bf16 %v1721_v23 }
 0x18c   : > { %v5409_v56 = vpop.f32.mrb[4].mxu0  ;;  %5683 = vrcp.bf16 %v1720_v57 }
 0x18d   : > { %v1529_v29 = vpop.f32.mrb[5].mxu0  ;;  %v1538_v31 = vadd.f32 %v5409_v56, %v6644_v2 }
 0x18e   : > { %v5410_v59 = vpop.f32.mrb[6].mxu0  ;;  %v1530_v37 = vadd.f32 %v6644_v2, %v1529_v29 }
 0x18f   : > { %v1541_v32 = vadd.f32 %v5410_v59, %v6644_v2  ;;  %v1532_v50 = vpop.f32.mrb[7].mxu0 }
 0x190   : > { %v1533_v39 = vadd.f32 %v6644_v2, %v1532_v50 }
 0x191   : > { %v1643_v42 = vpack.c.bf16 %v1541_v32, %v1538_v31 }
 0x192   : > { %v1642_v6 = vpack.c.bf16 %v1533_v39, %v1530_v37 }
 0x193   : > { %v5119_v10 = vmul.bf16 3216621497, %v1643_v42 }
 0x194   : > { %v5118_v60 = vmul.bf16 3216621497, %v1642_v6 }
 0x195   : > { %5685 = vpow.bf16 %v5119_v10 }
 0x196   : > { %v5682_v45 = vpop.eup %5681  ;;  %5687 = vpow.bf16 %v5118_v60 }
 0x197   : > { %v5684_v7 = vpop.eup %5683  ;;  %v1739_v49 = vmul.bf16 1065369472, %v5682_v45 }
 0x198   : > { %v1737_v14 = vmul.bf16 1065369472, %v5684_v7 }
 0x199   : > { %v1769_v41 = vmul.bf16 %v1739_v49, %v1641_v22 }
 0x19a   : > { %v1768_v53 = vmul.bf16 %v1737_v14, %v1640_v24 }
 0x19c   : > { %5437 = vmatprep.mubr.msk.bf16.mxu1 %vm1797_vm4, %v1768_v53 }
 0x19d   : > { %5438 = vmatmul.mubr.msk.bf16.vlgmr.msra.gmra.mrb[0].mxu1 %vm1797_vm4, %v1769_v41 }
 0x1a0   : > { %v5686_v28 = vpop.eup %5685 }
 0x1a1   : > { %v5688_v43 = vpop.eup %5687  ;;  %v1723_v30 = vadd.bf16 1065369472, %v5686_v28 }
 0x1a2   : > { %v1722_v13 = vadd.bf16 1065369472, %v5688_v43 }
 0x1a3   : > { %5689 = vrcp.bf16 %v1723_v30 }
 0x1a4   : > { %5691 = vrcp.bf16 %v1722_v13  ;;  %v5413_v26 = vpop.f32.mrb[8].mxu0 }
 0x1a5   : > { %v1545_v34 = vpop.f32.mrb[9].mxu0  ;;  %v1554_v3 = vadd.f32 %v5413_v26, %v6644_v2 }
 0x1a6   : > { %v5414_v18 = vpop.f32.mrb[10].mxu0  ;;  %v1546_v46 = vadd.f32 %v6644_v2, %v1545_v34 }
 0x1a7   : > { %v1557_v54 = vadd.f32 %v5414_v18, %v6644_v2  ;;  %v1548_v20 = vpop.f32.mrb[11].mxu0 }
 0x1a8   : > { %v1549_v38 = vadd.f32 %v6644_v2, %v1548_v20 }
 0x1a9   : > { %v1645_v58 = vpack.c.bf16 %v1557_v54, %v1554_v3 }
 0x1aa   : > { %v1644_v62 = vpack.c.bf16 %v1549_v38, %v1546_v46 }
 0x1ab   : > { %v5121_v40 = vmul.bf16 3216621497, %v1645_v58 }
 0x1ac   : > { %v5120_v36 = vmul.bf16 3216621497, %v1644_v62 }
 0x1ad   : > { %5693 = vpow.bf16 %v5121_v40 }
 0x1ae   : > { %v5690_v0 = vpop.eup %5689  ;;  %5695 = vpow.bf16 %v5120_v36 }
 0x1af   : > { %v5692_v61 = vpop.eup %5691  ;;  %v1743_v9 = vmul.bf16 1065369472, %v5690_v0 }
 0x1b0   : > { %v1741_v48 = vmul.bf16 1065369472, %v5692_v61 }
 0x1b1   : > { %v1771_v52 = vmul.bf16 %v1743_v9, %v1643_v42 }
 0x1b2   : > { %v1770_v63 = vmul.bf16 %v1741_v48, %v1642_v6 }
 0x1b4   : > { %5441 = vmatprep.mubr.msk.bf16.mxu1 %vm1797_vm4, %v1770_v63 }
 0x1b5   : > { %5442 = vmatmul.mubr.msk.bf16.gmra.mrb[4].mxu1 %vm1797_vm4, %v1771_v52 }
 0x1b8   : > { %v5694_v5 = vpop.eup %5693 }
 0x1b9   : > { %v5696_v44 = vpop.eup %5695  ;;  %v1725_v11 = vadd.bf16 1065369472, %v5694_v5 }
 0x1ba   : > { %v1724_v15 = vadd.bf16 1065369472, %v5696_v44 }
 0x1bb   : > { %5697 = vrcp.bf16 %v1725_v11 }
 0x1bc   : > { %5699 = vrcp.bf16 %v1724_v15  ;;  %v5417_v1 = vpop.f32.mrb[12].mxu0 }
 0x1bd   : > { %v1561_v35 = vpop.f32.mrb[13].mxu0  ;;  %v1570_v19 = vadd.f32 %v5417_v1, %v6644_v2 }
 0x1be   : > { %v5418_v16 = vpop.f32.mrb[14].mxu0  ;;  %v1562_v51 = vadd.f32 %v6644_v2, %v1561_v35 }
 0x1bf   : > { %v1573_v4 = vadd.f32 %v5418_v16, %v6644_v2  ;;  %v1564_v17 = vpop.f32.mrb[15].mxu0 }
 0x1c0   : > { %v1565_v12 = vadd.f32 %v6644_v2, %v1564_v17 }
 0x1c1   : > { %v1647_v55 = vpack.c.bf16 %v1573_v4, %v1570_v19 }
 0x1c2   : > { %v1646_v47 = vpack.c.bf16 %v1565_v12, %v1562_v51 }
 0x1c3   : > { %v5123_v21 = vmul.bf16 3216621497, %v1647_v55 }
 0x1c4   : > { %v5122_v22 = vmul.bf16 3216621497, %v1646_v47 }
 0x1c5   : > { %5701 = vpow.bf16 %v5123_v21 }
 0x1c6   : > { %v5698_v24 = vpop.eup %5697  ;;  %5703 = vpow.bf16 %v5122_v22 }
 0x1c7   : > { %v5700_v25 = vpop.eup %5699  ;;  %v1747_v33 = vmul.bf16 1065369472, %v5698_v24 }
 0x1c8   : > { %v1745_v27 = vmul.bf16 1065369472, %v5700_v25 }
 0x1c9   : > { %v1773_v23 = vmul.bf16 %v1747_v33, %v1645_v58  ;;  %v8524_v33 = vmov 0.0  }
 0x1ca   : > { %v1772_v8 = vmul.bf16 %v1745_v27, %v1644_v62  ;;  %2232 = vst.msk [vmem:[#allocation2] sm:$0xff] %vm2231_vm5, %v8524_v33  ;;  %2235 = vst.msk [vmem:[#allocation2 + $0xa0] sm:$0xff] %vm2231_vm5, %v8524_v33  ;;  %5469 = vmatprep.subr.bf16.mxu1 %v8524_v33  ;;  %5481 = vmatprep.subr.bf16.mxu0 %v8524_v33 }
 0x1cb   : > { %2237 = vst.msk [vmem:[#allocation2 + $0x140] sm:$0xff] %vm2231_vm5, %v8524_v33  ;;  %2239 = vst.msk [vmem:[#allocation2 + $0x1e0] sm:$0xff] %vm2231_vm5, %v8524_v33 }
 0x1cc   : > { %5445 = vmatprep.mubr.msk.bf16.mxu1 %vm1797_vm4, %v1772_v8  ;;  %2242 = vst.msk [vmem:[#allocation2 + $0x90] sm:$0xff] %vm2231_vm5, %v8524_v33  ;;  %2244 = vst.msk [vmem:[#allocation2 + $0x130] sm:$0xff] %vm2231_vm5, %v8524_v33 }
 0x1cd   : > { %5446 = vmatmul.mubr.msk.bf16.gmra.mrb[8].mxu1 %vm1797_vm4, %v1773_v23  ;;  %2246 = vst.msk [vmem:[#allocation2 + $0x1d0] sm:$0xff] %vm2231_vm5, %v8524_v33  ;;  %2248 = vst.msk [vmem:[#allocation2 + $0x270] sm:$0xff] %vm2231_vm5, %v8524_v33 }
 0x1ce   : > { %2254 = vst.msk [vmem:[#allocation2 + $0x30] sm:$0x1] %vm2250_vm6, %v8524_v33  ;;  %2294 = vst.msk [vmem:[#allocation2 + $0x39] sm:$0x1] %vm2250_vm6, %v8524_v33 }
 0x1cf   : > { %2252 = vst.msk [vmem:[#allocation2 + $0x10] sm:$0x1] %vm2250_vm6, %v8524_v33  ;;  %2253 = vst.msk [vmem:[#allocation2 + $0x20] sm:$0x1] %vm2250_vm6, %v8524_v33 }
 0x1d0   : > { %v5702_v57 = vpop.eup %5701  ;;  %2255 = vst.msk [vmem:[#allocation2 + $0x40] sm:$0x1] %vm2250_vm6, %v8524_v33  ;;  %2256 = vst.msk [vmem:[#allocation2 + $0x50] sm:$0x1] %vm2250_vm6, %v8524_v33 }
 0x1d1   : > { %v5704_v56 = vpop.eup %5703  ;;  %v1727_v29 = vadd.bf16 1065369472, %v5702_v57  ;;  %2257 = vst.msk [vmem:[#allocation2 + $0x60] sm:$0x1] %vm2250_vm6, %v8524_v33  ;;  %2258 = vst.msk [vmem:[#allocation2 + $0x70] sm:$0x1] %vm2250_vm6, %v8524_v33 }
 0x1d2   : > { %v1726_v59 = vadd.bf16 1065369472, %v5704_v56  ;;  %2259 = vst.msk [vmem:[#allocation2 + $0x80] sm:$0x1] %vm2250_vm6, %v8524_v33  ;;  %2262 = vst.msk [vmem:[#allocation2 + $0xb0] sm:$0x1] %vm2250_vm6, %v8524_v33 }
 0x1d3   : > { %5705 = vrcp.bf16 %v1727_v29  ;;  %2263 = vst.msk [vmem:[#allocation2 + $0xc0] sm:$0x1] %vm2250_vm6, %v8524_v33  ;;  %2264 = vst.msk [vmem:[#allocation2 + $0xd0] sm:$0x1] %vm2250_vm6, %v8524_v33 }
 0x1d4   : > { %5707 = vrcp.bf16 %v1726_v59  ;;  %v5421_v31 = vpop.f32.mrb[16].mxu0  ;;  %2265 = vst.msk [vmem:[#allocation2 + $0xe0] sm:$0x1] %vm2250_vm6, %v8524_v33  ;;  %2266 = vst.msk [vmem:[#allocation2 + $0xf0] sm:$0x1] %vm2250_vm6, %v8524_v33 }
 0x1d5   : > { %v1577_v32 = vpop.f32.mrb[17].mxu0  ;;  %v1586_v37 = vadd.f32 %v5421_v31, %v6644_v2  ;;  %2267 = vst.msk [vmem:[#allocation2 + $0x100] sm:$0x1] %vm2250_vm6, %v8524_v33  ;;  %2268 = vst.msk [vmem:[#allocation2 + $0x110] sm:$0x1] %vm2250_vm6, %v8524_v33 }
 0x1d6   : > { %v5422_v50 = vpop.f32.mrb[18].mxu0  ;;  %v1578_v6 = vadd.f32 %v6644_v2, %v1577_v32  ;;  %2269 = vst.msk [vmem:[#allocation2 + $0x120] sm:$0x1] %vm2250_vm6, %v8524_v33  ;;  %2272 = vst.msk [vmem:[#allocation2 + $0x150] sm:$0x1] %vm2250_vm6, %v8524_v33 }
 0x1d7   : > { %v1589_v39 = vadd.f32 %v5422_v50, %v6644_v2  ;;  %v1580_v42 = vpop.f32.mrb[19].mxu0  ;;  %2273 = vst.msk [vmem:[#allocation2 + $0x160] sm:$0x1] %vm2250_vm6, %v8524_v33  ;;  %2274 = vst.msk [vmem:[#allocation2 + $0x170] sm:$0x1] %vm2250_vm6, %v8524_v33 }
 0x1d8   : > { %v1581_v10 = vadd.f32 %v6644_v2, %v1580_v42  ;;  %2275 = vst.msk [vmem:[#allocation2 + $0x180] sm:$0x1] %vm2250_vm6, %v8524_v33  ;;  %2276 = vst.msk [vmem:[#allocation2 + $0x190] sm:$0x1] %vm2250_vm6, %v8524_v33 }
 0x1d9   : > { %v1649_v60 = vpack.c.bf16 %v1589_v39, %v1586_v37  ;;  %2277 = vst.msk [vmem:[#allocation2 + $0x1a0] sm:$0x1] %vm2250_vm6, %v8524_v33  ;;  %2278 = vst.msk [vmem:[#allocation2 + $0x1b0] sm:$0x1] %vm2250_vm6, %v8524_v33 }
 0x1da   : > { %v1648_v45 = vpack.c.bf16 %v1581_v10, %v1578_v6  ;;  %2279 = vst.msk [vmem:[#allocation2 + $0x1c0] sm:$0x1] %vm2250_vm6, %v8524_v33  ;;  %2282 = vst.msk [vmem:[#allocation2 + $0x1f0] sm:$0x1] %vm2250_vm6, %v8524_v33 }
 0x1db   : > { %v5125_v7 = vmul.bf16 3216621497, %v1649_v60  ;;  %2283 = vst.msk [vmem:[#allocation2 + $0x200] sm:$0x1] %vm2250_vm6, %v8524_v33  ;;  %2284 = vst.msk [vmem:[#allocation2 + $0x210] sm:$0x1] %vm2250_vm6, %v8524_v33 }
 0x1dc   : > { %v5124_v49 = vmul.bf16 3216621497, %v1648_v45  ;;  %2285 = vst.msk [vmem:[#allocation2 + $0x220] sm:$0x1] %vm2250_vm6, %v8524_v33  ;;  %2286 = vst.msk [vmem:[#allocation2 + $0x230] sm:$0x1] %vm2250_vm6, %v8524_v33 }
 0x1dd   : > { %5709 = vpow.bf16 %v5125_v7  ;;  %2287 = vst.msk [vmem:[#allocation2 + $0x240] sm:$0x1] %vm2250_vm6, %v8524_v33  ;;  %2288 = vst.msk [vmem:[#allocation2 + $0x250] sm:$0x1] %vm2250_vm6, %v8524_v33 }
 0x1de   : > { %v5706_v14 = vpop.eup %5705  ;;  %5711 = vpow.bf16 %v5124_v49  ;;  %2289 = vst.msk [vmem:[#allocation2 + $0x260] sm:$0x1] %vm2250_vm6, %v8524_v33  ;;  %2292 = vst.msk [vmem:[#allocation2 + $0x19] sm:$0x1] %vm2250_vm6, %v8524_v33 }
 0x1df   : > { %v5708_v53 = vpop.eup %5707  ;;  %v1751_v41 = vmul.bf16 1065369472, %v5706_v14  ;;  %2293 = vst.msk [vmem:[#allocation2 + $0x29] sm:$0x1] %vm2250_vm6, %v8524_v33  ;;  %2295 = vst.msk [vmem:[#allocation2 + $0x49] sm:$0x1] %vm2250_vm6, %v8524_v33 }
 0x1e0   : > { %v1749_v28 = vmul.bf16 1065369472, %v5708_v53  ;;  %2296 = vst.msk [vmem:[#allocation2 + $0x59] sm:$0x1] %vm2250_vm6, %v8524_v33  ;;  %2297 = vst.msk [vmem:[#allocation2 + $0x69] sm:$0x1] %vm2250_vm6, %v8524_v33 }
 0x1e1   : > { %v1775_v30 = vmul.bf16 %v1751_v41, %v1647_v55  ;;  %2298 = vst.msk [vmem:[#allocation2 + $0x79] sm:$0x1] %vm2250_vm6, %v8524_v33  ;;  %2299 = vst.msk [vmem:[#allocation2 + $0x89] sm:$0x1] %vm2250_vm6, %v8524_v33 }
 0x1e2   : > { %v1774_v43 = vmul.bf16 %v1749_v28, %v1646_v47  ;;  %2302 = vst.msk [vmem:[#allocation2 + $0xb9] sm:$0x1] %vm2250_vm6, %v8524_v33  ;;  %2303 = vst.msk [vmem:[#allocation2 + $0xc9] sm:$0x1] %vm2250_vm6, %v8524_v33 }
 0x1e3   : > { %2304 = vst.msk [vmem:[#allocation2 + $0xd9] sm:$0x1] %vm2250_vm6, %v8524_v33  ;;  %2305 = vst.msk [vmem:[#allocation2 + $0xe9] sm:$0x1] %vm2250_vm6, %v8524_v33 }
 0x1e4   : > { %5449 = vmatprep.mubr.msk.bf16.mxu1 %vm1797_vm4, %v1774_v43  ;;  %2306 = vst.msk [vmem:[#allocation2 + $0xf9] sm:$0x1] %vm2250_vm6, %v8524_v33  ;;  %2307 = vst.msk [vmem:[#allocation2 + $0x109] sm:$0x1] %vm2250_vm6, %v8524_v33 }
 0x1e5   : > { %5450 = vmatmul.mubr.msk.bf16.gmra.mrb[12].mxu1 %vm1797_vm4, %v1775_v30  ;;  %2308 = vst.msk [vmem:[#allocation2 + $0x119] sm:$0x1] %vm2250_vm6, %v8524_v33  ;;  %2309 = vst.msk [vmem:[#allocation2 + $0x129] sm:$0x1] %vm2250_vm6, %v8524_v33 }
 0x1e6   : > { %2312 = vst.msk [vmem:[#allocation2 + $0x159] sm:$0x1] %vm2250_vm6, %v8524_v33  ;;  %2313 = vst.msk [vmem:[#allocation2 + $0x169] sm:$0x1] %vm2250_vm6, %v8524_v33 }
 0x1e7   : > { %2314 = vst.msk [vmem:[#allocation2 + $0x179] sm:$0x1] %vm2250_vm6, %v8524_v33  ;;  %2315 = vst.msk [vmem:[#allocation2 + $0x189] sm:$0x1] %vm2250_vm6, %v8524_v33 }
 0x1e8   : > { %v5710_v13 = vpop.eup %5709  ;;  %2316 = vst.msk [vmem:[#allocation2 + $0x199] sm:$0x1] %vm2250_vm6, %v8524_v33  ;;  %2317 = vst.msk [vmem:[#allocation2 + $0x1a9] sm:$0x1] %vm2250_vm6, %v8524_v33 }
 0x1e9   : > { %v5712_v26 = vpop.eup %5711  ;;  %v1729_v34 = vadd.bf16 1065369472, %v5710_v13  ;;  %2318 = vst.msk [vmem:[#allocation2 + $0x1b9] sm:$0x1] %vm2250_vm6, %v8524_v33  ;;  %2319 = vst.msk [vmem:[#allocation2 + $0x1c9] sm:$0x1] %vm2250_vm6, %v8524_v33 }
 0x1ea   : > { %v1728_v18 = vadd.bf16 1065369472, %v5712_v26  ;;  %2322 = vst.msk [vmem:[#allocation2 + $0x1f9] sm:$0x1] %vm2250_vm6, %v8524_v33  ;;  %2323 = vst.msk [vmem:[#allocation2 + $0x209] sm:$0x1] %vm2250_vm6, %v8524_v33 }
 0x1eb   : > { %5713 = vrcp.bf16 %v1729_v34  ;;  %2324 = vst.msk [vmem:[#allocation2 + $0x219] sm:$0x1] %vm2250_vm6, %v8524_v33  ;;  %2325 = vst.msk [vmem:[#allocation2 + $0x229] sm:$0x1] %vm2250_vm6, %v8524_v33 }
 0x1ec   : > { %5715 = vrcp.bf16 %v1728_v18  ;;  %v5425_v3 = vpop.f32.mrb[20].mxu0  ;;  %2326 = vst.msk [vmem:[#allocation2 + $0x239] sm:$0x1] %vm2250_vm6, %v8524_v33  ;;  %2327 = vst.msk [vmem:[#allocation2 + $0x249] sm:$0x1] %vm2250_vm6, %v8524_v33 }
 0x1ed   : > { %v1593_v54 = vpop.f32.mrb[21].mxu0  ;;  %v1602_v46 = vadd.f32 %v5425_v3, %v6644_v2  ;;  %2328 = vst.msk [vmem:[#allocation2 + $0x259] sm:$0x1] %vm2250_vm6, %v8524_v33  ;;  %2329 = vst.msk [vmem:[#allocation2 + $0x269] sm:$0x1] %vm2250_vm6, %v8524_v33 }
 0x1ee   : > { %v5426_v20 = vpop.f32.mrb[22].mxu0  ;;  %v1594_v62 = vadd.f32 %v6644_v2, %v1593_v54  ;;  %2251 = vst.msk [vmem:[#allocation2] sm:$0x1] %vm2250_vm6, %v8524_v33  ;;  %2260 = vst.msk [vmem:[#allocation2 + $0x90] sm:$0x1] %vm2250_vm6, %v8524_v33 }
 0x1ef   : > { %v1605_v38 = vadd.f32 %v5426_v20, %v6644_v2  ;;  %v1596_v58 = vpop.f32.mrb[23].mxu0  ;;  %2261 = vst.msk [vmem:[#allocation2 + $0xa0] sm:$0x1] %vm2250_vm6, %v8524_v33  ;;  %2270 = vst.msk [vmem:[#allocation2 + $0x130] sm:$0x1] %vm2250_vm6, %v8524_v33 }
 0x1f0   : > { %v1597_v40 = vadd.f32 %v6644_v2, %v1596_v58  ;;  %2271 = vst.msk [vmem:[#allocation2 + $0x140] sm:$0x1] %vm2250_vm6, %v8524_v33  ;;  %2280 = vst.msk [vmem:[#allocation2 + $0x1d0] sm:$0x1] %vm2250_vm6, %v8524_v33 }
 0x1f1   : > { %v6678_v36 = vpack.c.bf16 %v1605_v38, %v1602_v46  ;;  %2281 = vst.msk [vmem:[#allocation2 + $0x1e0] sm:$0x1] %vm2250_vm6, %v8524_v33  ;;  %2290 = vst.msk [vmem:[#allocation2 + $0x270] sm:$0x1] %vm2250_vm6, %v8524_v33 }
 0x1f2   : > { %v6680_v0 = vpack.c.bf16 %v1597_v40, %v1594_v62  ;;  %2234 = vst.msk [vmem:[#allocation2 + $0x8] sm:$0x3] %vm2233_vm7, %v8524_v33  ;;  %2236 = vst.msk [vmem:[#allocation2 + $0xa8] sm:$0x3] %vm2233_vm7, %v8524_v33 }
 0x1f3   : > { %v5127_v61 = vmul.bf16 3216621497, %v6678_v36  ;;  %2238 = vst.msk [vmem:[#allocation2 + $0x148] sm:$0x3] %vm2233_vm7, %v8524_v33  ;;  %2240 = vst.msk [vmem:[#allocation2 + $0x1e8] sm:$0x3] %vm2233_vm7, %v8524_v33 }
 0x1f4   : > { %v5126_v9 = vmul.bf16 3216621497, %v6680_v0  ;;  %2243 = vst.msk [vmem:[#allocation2 + $0x98] sm:$0x3] %vm2233_vm7, %v8524_v33  ;;  %2245 = vst.msk [vmem:[#allocation2 + $0x138] sm:$0x3] %vm2233_vm7, %v8524_v33 }
 0x1f5   : > { %5717 = vpow.bf16 %v5127_v61  ;;  %2247 = vst.msk [vmem:[#allocation2 + $0x1d8] sm:$0x3] %vm2233_vm7, %v8524_v33  ;;  %2249 = vst.msk [vmem:[#allocation2 + $0x278] sm:$0x3] %vm2233_vm7, %v8524_v33 }
 0x1f6   : > { %v5714_v48 = vpop.eup %5713  ;;  %5719 = vpow.bf16 %v5126_v9  ;;  %2291 = vst.msk [vmem:[#allocation2 + $0x9] sm:$0x1] %vm2250_vm6, %v8524_v33  ;;  %2300 = vst.msk [vmem:[#allocation2 + $0x99] sm:$0x1] %vm2250_vm6, %v8524_v33 }
 0x1f7   : > { %v5716_v63 = vpop.eup %5715  ;;  %v1755_v52 = vmul.bf16 1065369472, %v5714_v48  ;;  %2301 = vst.msk [vmem:[#allocation2 + $0xa9] sm:$0x1] %vm2250_vm6, %v8524_v33  ;;  %2310 = vst.msk [vmem:[#allocation2 + $0x139] sm:$0x1] %vm2250_vm6, %v8524_v33 }
 0x1f8   : > { %v1753_v5 = vmul.bf16 1065369472, %v5716_v63  ;;  %2311 = vst.msk [vmem:[#allocation2 + $0x149] sm:$0x1] %vm2250_vm6, %v8524_v33  ;;  %2320 = vst.msk [vmem:[#allocation2 + $0x1d9] sm:$0x1] %vm2250_vm6, %v8524_v33 }
 0x1f9   : > { %v1777_v11 = vmul.bf16 %v1755_v52, %v1649_v60  ;;  %2321 = vst.msk [vmem:[#allocation2 + $0x1e9] sm:$0x1] %vm2250_vm6, %v8524_v33  ;;  %2330 = vst.msk [vmem:[#allocation2 + $0x279] sm:$0x1] %vm2250_vm6, %v8524_v33 }
 0x1fa   : > { %v1776_v44 = vmul.bf16 %v1753_v5, %v1648_v45 }
 0x1fc   : > { %5453 = vmatprep.mubr.msk.bf16.mxu1 %vm1797_vm4, %v1776_v44 }
 0x1fd   : > { %5454 = vmatmul.mubr.msk.bf16.gmra.mrb[16].mxu1 %vm1797_vm4, %v1777_v11 }
 0x200   : > { %v5718_v15 = vpop.eup %5717 }
 0x201   : > { %v5720_v1 = vpop.eup %5719  ;;  %v1731_v35 = vadd.bf16 1065369472, %v5718_v15 }
 0x202   : > { %v1730_v16 = vadd.bf16 1065369472, %v5720_v1 }
 0x203   : > { %5721 = vrcp.bf16 %v1731_v35 }
 0x204   : > { %5723 = vrcp.bf16 %v1730_v16  ;;  %v5429_v19 = vpop.f32.mrb[24].mxu0 }
 0x205   : > { %v1609_v4 = vpop.f32.mrb[25].mxu0  ;;  %v1618_v51 = vadd.f32 %v5429_v19, %v6644_v2 }
 0x206   : > { %v5430_v17 = vpop.f32.mrb[26].mxu0  ;;  %v1610_v47 = vadd.f32 %v6644_v2, %v1609_v4 }
 0x207   : > { %v1621_v12 = vadd.f32 %v5430_v17, %v6644_v2  ;;  %v1612_v55 = vpop.f32.mrb[27].mxu0 }
 0x208   : > { %v1613_v21 = vadd.f32 %v6644_v2, %v1612_v55 }
 0x209   : > { %v6690_v22 = vpack.c.bf16 %v1621_v12, %v1618_v51  ;;  %v2399_v51 = vlaneseq }
 0x20a   : > { %v6692_v24 = vpack.c.bf16 %v1613_v21, %v1610_v47 }
 0x20b   : > { %v5129_v25 = vmul.bf16 3216621497, %v6690_v22 }
 0x20c   : > { %v5128_v27 = vmul.bf16 3216621497, %v6692_v24 }
 0x20d   : > { %5725 = vpow.bf16 %v5129_v25 }
 0x20e   : > { %v5722_v8 = vpop.eup %5721  ;;  %5727 = vpow.bf16 %v5128_v27 }
 0x20f   : > { %v5724_v23 = vpop.eup %5723  ;;  %v1759_v57 = vmul.bf16 1065369472, %v5722_v8 }
 0x210   : > { %v1757_v56 = vmul.bf16 1065369472, %v5724_v23  ;;  %v2364_v23 = vld [vmem:[%s8516_s3] sm:$0x7] }
 0x211   : > { %v1779_v59 = vmul.bf16 %v1759_v57, %v6678_v36 }
 0x212   : > { %v1778_v29 = vmul.bf16 %v1757_v56, %v6680_v0  ;;  %v6903_v0 = vld [vmem:[%s8522_s9 + $0x1] ss:$0 sm:$0xff] }
 0x214   : > { %5457 = vmatprep.mubr.msk.bf16.mxu1 %vm1797_vm4, %v1778_v29 }
 0x215   : > { %5458 = vmatmul.mubr.msk.bf16.gmra.mrb[20].mxu1 %vm1797_vm4, %v1779_v59 }
 0x218   : > { %v5726_v31 = vpop.eup %5725 }
 0x219   : > { %v5728_v32 = vpop.eup %5727  ;;  %v1733_v50 = vadd.bf16 1065369472, %v5726_v31 }
 0x21a   : > { %v1732_v37 = vadd.bf16 1065369472, %v5728_v32 }
 0x21b   : > { %5729 = vrcp.bf16 %v1733_v50 }
 0x21c   : > { %5731 = vrcp.bf16 %v1732_v37  ;;  %v5433_v39 = vpop.f32.mrb[28].mxu0 }
 0x21d   : > { %v1625_v42 = vpop.f32.mrb[29].mxu0  ;;  %v1634_v10 = vadd.f32 %v5433_v39, %v6644_v2 }
 0x21e   : > { %v5434_v6 = vpop.f32.mrb[30].mxu0  ;;  %v1626_v7 = vadd.f32 %v6644_v2, %v1625_v42 }
 0x21f   : > { %v1637_v60 = vadd.f32 %v5434_v6, %v6644_v2  ;;  %v1628_v45 = vpop.f32.mrb[31].mxu0  ;;  %v2367_v6 = vld [vmem:[#allocation2] sm:$0xff] }
 0x220   : > { %v1629_v49 = vadd.f32 %v6644_v2, %v1628_v45 }
 0x221   : > { %v1655_v14 = vpack.c.bf16 %v1637_v60, %v1634_v10  ;;  %v2467_v10 = vld [vmem:[#allocation2 + $0x1] sm:$0xff] }
 0x222   : > { %v1654_v53 = vpack.c.bf16 %v1629_v49, %v1626_v7 }
 0x223   : > { %v5131_v41 = vmul.bf16 3216621497, %v1655_v14 }
 0x224   : > { %v5130_v28 = vmul.bf16 3216621497, %v1654_v53 }
 0x225   : > { %5733 = vpow.bf16 %v5131_v41 }
 0x226   : > { %v5730_v43 = vpop.eup %5729  ;;  %5735 = vpow.bf16 %v5130_v28 }
 0x227   : > { %v5732_v30 = vpop.eup %5731  ;;  %v1763_v13 = vmul.bf16 1065369472, %v5730_v43 }
 0x228   : > { %v1761_v26 = vmul.bf16 1065369472, %v5732_v30 }
 0x229   : > { %v1781_v18 = vmul.bf16 %v1763_v13, %v6690_v22 }
 0x22a   : > { %v1780_v34 = vmul.bf16 %v1761_v26, %v6692_v24  ;;  %v6909_v24 = vshrl.u32 %v2399_v51, 7 }
 0x22c   : > { %5461 = vmatprep.mubr.msk.bf16.mxu1 %vm1797_vm4, %v1780_v34  ;;  %8565 = vst [vmem:[#allocation3_spill] sm:$0xff] %v6909_v24  ;;  %v6912_v25 = vsub.s32 0, %v6909_v24  ;;  %v2501_v27 = vsub.s32 1, %v6909_v24  ;;  %v2601_v29 = vsub.s32 2, %v6909_v24  ;;  %v2567_v34 = vld [vmem:[#allocation2 + $0x2] sm:$0xff] }
 0x22d   : > { %5462 = vmatmul.mubr.msk.bf16.gmra.mrb[24].mxu1 %vm1797_vm4, %v1781_v18 }
 0x22e   : > { %8566 = vst [vmem:[#allocation4_spill] sm:$0xff] %v6912_v25  ;;  %v6920_v32 = vrot.slane %v2364_v23, %v6912_v25  ;;  %v6922_v50 = vrot.slane %v2364_v23, %v2501_v27 }
 0x230   : > { %v5734_v3 = vpop.eup %5733  ;;  %v2403_v43 = vmul.f32 %v6920_v32, %v2367_v6  ;;  %v2503_v30 = vmul.f32 %v6922_v50, %v2467_v10 }
 0x231   : > { %v5736_v2 = vpop.eup %5735  ;;  %v1735_v54 = vadd.bf16 1065369472, %v5734_v3 }
 0x232   : > { %v1734_v20 = vadd.bf16 1065369472, %v5736_v2  ;;  %v2365_v2 = vld [vmem:[%s8516_s3 + $0x4] sm:$0x7] }
 0x233   : > { %5737 = vrcp.bf16 %v1735_v54 }
 0x234   : > { %5739 = vrcp.bf16 %v1734_v20  ;;  %v2535_v20 = vadd.f32 %v2503_v30, %v2403_v43 }
 0x23e   : > { %v5738_v46 = vpop.eup %5737 }
 0x23f   : > { %v5740_v38 = vpop.eup %5739  ;;  %v1767_v58 = vmul.bf16 1065369472, %v5738_v46 }
 0x240   : > { %v1765_v62 = vmul.bf16 1065369472, %v5740_v38  ;;  %v6953_v38 = vrot.slane %v2365_v2, %v6912_v25 }
 0x241   : > { %v1783_v36 = vmul.bf16 %v1767_v58, %v1655_v14 }
 0x242   : > { %v1782_v40 = vmul.bf16 %v1765_v62, %v1654_v53  ;;  %v6934_v53 = vrot.slane %v2364_v23, %v2601_v29 }
 0x244   : > { %5465 = vmatprep.mubr.msk.bf16.mxu1 %vm1797_vm4, %v1782_v40  ;;  %v2603_v46 = vmul.f32 %v6934_v53, %v2567_v34  ;;  %v2366_v40 = vld [vmem:[%s8516_s3 + $0x8] sm:$0x7] }
 0x245   : > { %5466 = vmatmul.mubr.msk.bf16.gmra.mrb[28].mxu1 %vm1797_vm4, %v1783_v36  ;;  %v6958_v36 = vrot.slane %v2365_v2, %v2501_v27 }
 0x270   : > { %v5439_v61 = vpop.f32.mrb[0].mxu1 }
 0x271   : > { %v1889_v9 = vadd.f32 %v5439_v61, %v6903_v0  ;;  %v1880_v48 = vpop.f32.mrb[1].mxu1  ;;  %v2635_v61 = vadd.f32 %v2603_v46, %v2535_v20 }
 0x272   : > { %v1881_v63 = vadd.f32 %v6903_v0, %v1880_v48  ;;  %v5440_v52 = vpop.f32.mrb[2].mxu1 }
 0x273   : > { %v5152_v5 = vmul.f32 -1.442695, %v1889_v9  ;;  %v1892_v44 = vadd.f32 %v5440_v52, %v6903_v0  ;;  %v1883_v11 = vpop.f32.mrb[3].mxu1 }
 0x274   : > { %v5150_v15 = vmul.f32 -1.442695, %v1881_v63  ;;  %v1884_v1 = vadd.f32 %v6903_v0, %v1883_v11 }
 0x275   : > { %5741 = vpow2.f32 %v5152_v5  ;;  %v5153_v35 = vmul.f32 -1.442695, %v1892_v44 }
 0x276   : > { %5743 = vpow2.f32 %v5150_v15  ;;  %v5151_v16 = vmul.f32 -1.442695, %v1884_v1  ;;  %v2375_v15 = vld [vmem:[#allocation2 + $0xa0] sm:$0xff] }
 0x277   : > { %5745 = vpow2.f32 %v5153_v35  ;;  %v6968_v35 = vrot.slane %v2366_v40, %v2501_v27  ;;  %v6984_v23 = vmul.f32 %v6920_v32, %v2375_v15 }
 0x278   : > { %5747 = vpow2.f32 %v5151_v16 }
 0x27f   : > { %v5742_v19 = vpop.eup %5741 }
 0x280   : > { %v5744_v4 = vpop.eup %5743  ;;  %v2105_v17 = vadd.f32 1.0, %v5742_v19 }
 0x281   : > { %v5746_v12 = vpop.eup %5745  ;;  %v2103_v55 = vadd.f32 1.0, %v5744_v4  ;;  %v6972_v4 = vrot.slane %v2366_v40, %v2601_v29 }
 0x282   : > { %v5748_v47 = vpop.eup %5747  ;;  %5749 = vrcp.f32 %v2105_v17  ;;  %v2106_v21 = vadd.f32 1.0, %v5746_v12 }
 0x283   : > { %5751 = vrcp.f32 %v2103_v55  ;;  %v2104_v22 = vadd.f32 1.0, %v5748_v47 }
 0x284   : > { %5753 = vrcp.f32 %v2106_v21 }
 0x285   : > { %5755 = vrcp.f32 %v2104_v22 }
 0x288   : > { %v5443_v8 = vpop.f32.mrb[4].mxu1 }
 0x289   : > { %v1896_v57 = vpop.f32.mrb[5].mxu1  ;;  %v6925_v37 = vadd.f32 %v5443_v8, %v6903_v0 }
 0x28a   : > { %v5444_v56 = vpop.f32.mrb[6].mxu1  ;;  %v6928_v60 = vadd.f32 %v6903_v0, %v1896_v57 }
 0x28b   : > { %v1899_v59 = vpop.f32.mrb[7].mxu1  ;;  %v6931_v49 = vadd.f32 %v5444_v56, %v6903_v0  ;;  %v5156_v26 = vmul.f32 -1.442695, %v6925_v37 }
 0x28c   : > { %v5750_v31 = vpop.eup %5749  ;;  %v6937_v28 = vadd.f32 %v6903_v0, %v1899_v59  ;;  %v5154_v18 = vmul.f32 -1.442695, %v6928_v60 }
 0x28d   : > { %v5752_v39 = vpop.eup %5751  ;;  %v2201_v42 = vmul.f32 %v5750_v31, %v1889_v9  ;;  %v5157_v3 = vmul.f32 -1.442695, %v6931_v49  ;;  %5757 = vpow2.f32 %v5156_v26 }
 0x28e   : > { %v5754_v45 = vpop.eup %5753  ;;  %v2199_v7 = vmul.f32 %v5752_v39, %v1881_v63  ;;  %v5155_v54 = vmul.f32 -1.442695, %v6937_v28  ;;  %5759 = vpow2.f32 %v5154_v18 }
 0x28f   : > { %v5756_v14 = vpop.eup %5755  ;;  %2334 = vst.msk [vmem:[#allocation2 + $0x31] sm:$0xff] %vm2231_vm5, %v2201_v42  ;;  %v2202_v41 = vmul.f32 %v5754_v45, %v1892_v44  ;;  %5761 = vpow2.f32 %v5157_v3  ;;  %v6962_v44 = vrot.slane %v2365_v2, %v2601_v29 }
 0x290   : > { %2332 = vst.msk [vmem:[#allocation2 + $0x11] sm:$0xff] %vm2231_vm5, %v2199_v7  ;;  %v2200_v13 = vmul.f32 %v5756_v14, %v1884_v1  ;;  %5763 = vpow2.f32 %v5155_v54  ;;  %v6966_v1 = vrot.slane %v2366_v40, %v6912_v25 }
 0x291   : > { %2335 = vst.msk [vmem:[#allocation2 + $0x41] sm:$0xff] %vm2231_vm5, %v2202_v41  ;;  %8567 = vst [vmem:[#allocation5_spill] sm:$0xff] %v6962_v44 }
 0x292   : > { %2333 = vst.msk [vmem:[#allocation2 + $0x21] sm:$0xff] %vm2231_vm5, %v2200_v13 }
 0x296   : > { %v2370_v52 = vld [vmem:[#allocation2 + $0x30] sm:$0xff] }
 0x297   : > { %v2368_v58 = vld [vmem:[#allocation2 + $0x10] sm:$0xff]  ;;  %v6977_v21 = vmul.f32 %v6920_v32, %v2370_v52  ;;  %v2705_v27 = vmul.f32 %v6953_v38, %v2370_v52  ;;  %v5758_v57 = vpop.eup %5757  ;;  %v3005_v6 = vmul.f32 %v6966_v1, %v2370_v52 }
 0x298   : > { %v2468_v62 = vld [vmem:[#allocation2 + $0x11] sm:$0xff]  ;;  %v2404_v9 = vmul.f32 %v6920_v32, %v2368_v58  ;;  %v2703_v11 = vmul.f32 %v6953_v38, %v2368_v58  ;;  %v5760_v39 = vpop.eup %5759 }
 0x299   : > { %v2504_v48 = vmul.f32 %v6922_v50, %v2468_v62  ;;  %v2568_v63 = vld [vmem:[#allocation2 + $0x12] sm:$0xff]  ;;  %v2803_v12 = vmul.f32 %v6958_v36, %v2468_v62  ;;  %v2369_v55 = vld [vmem:[#allocation2 + $0x20] sm:$0xff]  ;;  %v5762_v7 = vpop.eup %5761  ;;  %v2109_v62 = vadd.f32 1.0, %v5758_v57 }
 0x29a   : > { %v2470_v5 = vld [vmem:[#allocation2 + $0x31] sm:$0xff]  ;;  %v2604_v17 = vmul.f32 %v6934_v53, %v2568_v63  ;;  %v2735_v51 = vadd.f32 %v2703_v11, %v2635_v61  ;;  %v2469_v47 = vld [vmem:[#allocation2 + $0x21] sm:$0xff]  ;;  %v2903_v31 = vmul.f32 %v6962_v44, %v2568_v63  ;;  %v2405_v10 = vmul.f32 %v6920_v32, %v2369_v55  ;;  %v5764_v26 = vpop.eup %5763 }
 0x29b   : > { %v2536_v16 = vadd.f32 %v2504_v48, %v2404_v9  ;;  %v6970_v19 = vld [vmem:[#allocation2 + $0x32] sm:$0xff]  ;;  %v6980_v22 = vmul.f32 %v6922_v50, %v2470_v5  ;;  %v2569_v8 = vld [vmem:[#allocation2 + $0x22] sm:$0xff]  ;;  %v2805_v56 = vmul.f32 %v6958_v36, %v2470_v5  ;;  %v2505_v45 = vmul.f32 %v6922_v50, %v2469_v47 }
 0x29c   : > { %v2835_v59 = vadd.f32 %v2803_v12, %v2735_v51  ;;  %v2905_v42 = vmul.f32 %v6962_v44, %v6970_v19  ;;  %v3105_v14 = vmul.f32 %v6968_v35, %v2470_v5  ;;  %v2605_v43 = vmul.f32 %v6934_v53, %v2569_v8  ;;  %v2371_v12 = vld [vmem:[#allocation2 + $0x40] sm:$0xff] }
 0x29d   : > { %v2636_v29 = vadd.f32 %v2604_v17, %v2536_v16  ;;  %v2704_v30 = vmul.f32 %v6953_v38, %v2369_v55  ;;  %v2537_v34 = vadd.f32 %v2505_v45, %v2405_v10  ;;  %v2804_v18 = vmul.f32 %v6958_v36, %v2469_v47  ;;  %v2475_v10 = vld [vmem:[#allocation2 + $0xa1] sm:$0xff] }
 0x29e   : > { %v2935_v41 = vadd.f32 %v2903_v31, %v2835_v59  ;;  %v2904_v3 = vmul.f32 %v6962_v44, %v2569_v8  ;;  %v3004_v2 = vmul.f32 %v6966_v1, %v2369_v55  ;;  %v3104_v46 = vmul.f32 %v6968_v35, %v2469_v47  ;;  %v7010_v47 = vld [vmem:[%s8522_s9 + $0x2] ss:$0 sm:$0xff] }
 0x29f   : > { %v2736_v20 = vadd.f32 %v2704_v30, %v2636_v29  ;;  %v3204_v58 = vmul.f32 %v6972_v4, %v2569_v8  ;;  %v2637_v61 = vadd.f32 %v2605_v43, %v2537_v34  ;;  %v2107_v48 = vadd.f32 1.0, %v5760_v39  ;;  %v2471_v31 = vld [vmem:[#allocation2 + $0x41] sm:$0xff] }
 0x2a0   : > { %v5447_v13 = vpop.f32.mrb[8].mxu1  ;;  %v3036_v9 = vadd.f32 %v3004_v2, %v2935_v41  ;;  %v2110_v63 = vadd.f32 1.0, %v5762_v7  ;;  %5765 = vrcp.f32 %v2109_v62  ;;  %v2108_v11 = vadd.f32 1.0, %v5764_v26 }
 0x2a1   : > { %v1912_v54 = vpop.f32.mrb[9].mxu1  ;;  %v2836_v5 = vadd.f32 %v2804_v18, %v2736_v20  ;;  %v7002_v15 = vadd.f32 %v5447_v13, %v6903_v0  ;;  %v2737_v16 = vadd.f32 %v2705_v27, %v2637_v61  ;;  %5767 = vrcp.f32 %v2107_v48 }
 0x2a2   : > { %v5448_v40 = vpop.f32.mrb[10].mxu1  ;;  %v3136_v17 = vadd.f32 %v3104_v46, %v3036_v9  ;;  %v7005_v51 = vadd.f32 %v6903_v0, %v1912_v54  ;;  %5769 = vrcp.f32 %v2110_v63  ;;  %v3006_v41 = vmul.f32 %v6966_v1, %v2371_v12 }
 0x2a3   : > { %v1915_v52 = vpop.f32.mrb[11].mxu1  ;;  %v2936_v55 = vadd.f32 %v2904_v3, %v2836_v5  ;;  %v5160_v8 = vmul.f32 -1.442695, %v7002_v15  ;;  %v7014_v57 = vadd.f32 %v5448_v40, %v6903_v0  ;;  %v2837_v29 = vadd.f32 %v2805_v56, %v2737_v16  ;;  %v2575_v40 = vld [vmem:[#allocation2 + $0xa2] sm:$0xff] }
 0x2a4   : > { %v3236_v27 = vadd.f32 %v3204_v58, %v3136_v17  ;;  %5771 = vrcp.f32 %v2108_v11  ;;  %v5158_v59 = vmul.f32 -1.442695, %v7005_v51  ;;  %v7019_v7 = vadd.f32 %v6903_v0, %v1915_v52 }
 0x2a5   : > { %v3037_v39 = vadd.f32 %v3005_v6, %v2936_v55  ;;  %5773 = vpow2.f32 %v5160_v8  ;;  %v5161_v45 = vmul.f32 -1.442695, %v7014_v57  ;;  %v2937_v43 = vadd.f32 %v2905_v42, %v2837_v29  ;;  %v7027_v6 = vld [vmem:[#allocation2 + $0x42] sm:$0xff] }
 0x2a6   : > { %v3273_v30 = vadd.f32 %v7010_v47, %v3236_v27  ;;  %5775 = vpow2.f32 %v5158_v59  ;;  %v2538_v56 = vadd.f32 %v6980_v22, %v6977_v21  ;;  %v3205_v13 = vmul.f32 %v6972_v4, %v6970_v19  ;;  %v2975_v59 = vld [vmem:[#allocation2 + $0x90] sm:$0xff] }
 0x2a7   : > { %v3137_v26 = vadd.f32 %v3105_v14, %v3037_v39  ;;  %5777 = vpow2.f32 %v5161_v45  ;;  %v3106_v34 = vmul.f32 %v6968_v35, %v2471_v31  ;;  %v3038_v18 = vadd.f32 %v3006_v41, %v2937_v43  ;;  %v2983_v43 = vld [vmem:[#allocation2 + $0x130] sm:$0xff] }
 0x2a8   : > { %v7030_v3 = vpack.c.bf16 %v3273_v30, %v3273_v30  ;;  %v2511_v42 = vmul.f32 %v6922_v50, %v2475_v10  ;;  %v2606_v2 = vmul.f32 %v6934_v53, %v6970_v19  ;;  %v5159_v21 = vmul.f32 -1.442695, %v7019_v7  ;;  %v3083_v30 = vld [vmem:[#allocation2 + $0x131] sm:$0xff] }
 0x2a9   : > { %v3237_v54 = vadd.f32 %v3205_v13, %v3137_v26  ;;  %v3206_v22 = vmul.f32 %v6972_v4, %v7027_v6  ;;  %v3138_v20 = vadd.f32 %v3106_v34, %v3038_v18  ;;  %v2706_v52 = vmul.f32 %v6953_v38, %v2371_v12  ;;  %v2383_v18 = vld [vmem:[#allocation2 + $0x140] sm:$0xff] }
 0x2aa   : > { %v5183_v14 = vmul.bf16 3216621497, %v7030_v3  ;;  %v5766_v46 = vpop.eup %5765  ;;  %v2638_v58 = vadd.f32 %v2606_v2, %v2538_v56  ;;  %v2543_v19 = vadd.f32 %v2511_v42, %v6984_v23  ;;  %v2407_v17 = vmul.f32 %v6920_v32, %v2371_v12  ;;  %v3175_v56 = vld [vmem:[#allocation2 + $0x92] sm:$0xff]  ;;  %v2483_v42 = vld [vmem:[#allocation2 + $0x141] sm:$0xff] }
 0x2ab   : > { %v3274_v62 = vadd.f32 %v7010_v47, %v3237_v54  ;;  %v5768_v61 = vpop.eup %5767  ;;  %v3238_v9 = vadd.f32 %v3206_v22, %v3138_v20  ;;  %v2205_v48 = vmul.f32 %v5766_v46, %v6925_v37  ;;  %v2507_v55 = vmul.f32 %v6922_v50, %v2471_v31  ;;  %v2583_v46 = vld [vmem:[#allocation2 + $0x142] sm:$0xff] }
 0x2ac   : > { %5779 = vpow.bf16 %v5183_v14  ;;  %v5770_v63 = vpop.eup %5769  ;;  %v2203_v11 = vmul.f32 %v5768_v61, %v6928_v60  ;;  %v2611_v37 = vmul.f32 %v6934_v53, %v2575_v40  ;;  %v2738_v29 = vadd.f32 %v2706_v52, %v2638_v58  ;;  %v3075_v60 = vld [vmem:[#allocation2 + $0x91] sm:$0xff] }
 0x2ad   : > { %v7043_v5 = vpack.c.bf16 %v3274_v62, %v3274_v62  ;;  %5781 = vpow2.f32 %v5159_v21  ;;  %2338 = vst.msk [vmem:[#allocation2 + $0x71] sm:$0xff] %vm2231_vm5, %v2205_v48  ;;  %v2206_v8 = vmul.f32 %v5770_v63, %v6931_v49  ;;  %v3275_v12 = vadd.f32 %v7010_v47, %v3238_v9 }
 0x2ae   : > { %v5772_v16 = vpop.eup %5771  ;;  %2336 = vst.msk [vmem:[#allocation2 + $0x51] sm:$0xff] %vm2231_vm5, %v2203_v11  ;;  %v2806_v49 = vmul.f32 %v6958_v36, %v2471_v31  ;;  %v2539_v13 = vadd.f32 %v2507_v55, %v2407_v17  ;;  %v7059_v26 = vmul.f32 %v6966_v1, %v2975_v59  ;;  %v7064_v54 = vadd.f32 %v2611_v37, %v2543_v19 }
 0x2af   : > { %v5774_v23 = vpop.eup %5773  ;;  %v5184_v27 = vmul.bf16 3216621497, %v7043_v5  ;;  %v2204_v39 = vmul.f32 %v5772_v16, %v6937_v28  ;;  %2339 = vst.msk [vmem:[#allocation2 + $0x81] sm:$0xff] %vm2231_vm5, %v2206_v8  ;;  %v7062_v28 = vmul.f32 %v6968_v35, %v3075_v60  ;;  %v7066_v21 = vpack.c.bf16 %v3275_v12, %v3275_v12  ;;  %v3183_v8 = vld [vmem:[#allocation2 + $0x132] sm:$0xff] }
 0x2b0   : > { %v5776_v10 = vpop.eup %5775  ;;  %v2113_v41 = vadd.f32 1.0, %v5774_v23  ;;  %v2838_v2 = vadd.f32 %v2806_v49, %v2738_v29  ;;  %v2607_v22 = vmul.f32 %v6934_v53, %v7027_v6  ;;  %v7071_v20 = vmul.f32 %v6966_v1, %v2983_v43 }
 0x2b1   : > { %v5778_v45 = vpop.eup %5777  ;;  %5783 = vpow.bf16 %v5184_v27  ;;  %2337 = vst.msk [vmem:[#allocation2 + $0x61] sm:$0xff] %vm2231_vm5, %v2204_v39  ;;  %v2111_v34 = vadd.f32 1.0, %v5776_v10  ;;  %8568 = vst [vmem:[#allocation6_spill] sm:$0xff] %v7066_v21  ;;  %v7074_v14 = vmul.f32 %v6968_v35, %v3083_v30  ;;  %v7077_v58 = vmul.f32 %v6972_v4, %v3175_v56 }
 0x2b2   : > { %v2114_v31 = vadd.f32 1.0, %v5778_v45  ;;  %8569 = vst [vmem:[#allocation7_spill] sm:$0xff] %v7071_v20  ;;  %v2906_v62 = vmul.f32 %v6962_v44, %v7027_v6  ;;  %5785 = vrcp.f32 %v2113_v41  ;;  %v2419_v19 = vmul.f32 %v6920_v32, %v2383_v18 }
 0x2b3   : > { %8570 = vst [vmem:[#allocation8_spill] sm:$0xff] %v7074_v14  ;;  %8571 = vst [vmem:[#allocation9_spill] sm:$0xff] %v7077_v58  ;;  %v2519_v63 = vmul.f32 %v6922_v50, %v2483_v42  ;;  %v2639_v52 = vadd.f32 %v2607_v22, %v2539_v13  ;;  %5787 = vrcp.f32 %v2111_v34  ;;  %v7100_v59 = vmul.f32 %v6934_v53, %v2583_v46 }
 0x2b4   : > { %v7081_v40 = vld [vmem:[#allocation2 + $0x70] sm:$0xff]  ;;  %v2938_v29 = vadd.f32 %v2906_v62, %v2838_v2  ;;  %5789 = vrcp.f32 %v2114_v31  ;;  %v5185_v60 = vmul.bf16 3216621497, %v7066_v21  ;;  %v7115_v34 = vmul.f32 %v6972_v4, %v3183_v8 }
 0x2b5   : > { %v7083_v61 = vld [vmem:[#allocation2 + $0x71] sm:$0xff]  ;;  %v2410_v11 = vmul.f32 %v6920_v32, %v7081_v40  ;;  %v7112_v13 = vadd.f32 %v2519_v63, %v2419_v19 }
 0x2b6   : > { %v7085_v9 = vld [vmem:[#allocation2 + $0x72] sm:$0xff]  ;;  %v2510_v6 = vmul.f32 %v6922_v50, %v7083_v61  ;;  %v7110_v56 = vld [vmem:[#allocation2 + $0x80] sm:$0xff]  ;;  %8572 = vst [vmem:[#allocation10_spill] sm:$0xff] %v7115_v34 }
 0x2b7   : > { %v2372_v16 = vld [vmem:[#allocation2 + $0x50] sm:$0xff]  ;;  %v5780_v37 = vpop.eup %5779  ;;  %v2610_v10 = vmul.f32 %v6934_v53, %v7085_v9  ;;  %v2710_v63 = vmul.f32 %v6953_v38, %v7110_v56 }
 0x2b8   : > { %v7087_v48 = vpop.f32.mrb[12].mxu1  ;;  %v2472_v17 = vld [vmem:[#allocation2 + $0x51] sm:$0xff]  ;;  %v5782_v23 = vpop.eup %5781  ;;  %v3465_v39 = vadd.bf16 1065369472, %v5780_v37  ;;  %v2542_v12 = vadd.f32 %v2510_v6, %v2410_v11  ;;  %v2408_v45 = vmul.f32 %v6920_v32, %v2372_v16  ;;  %v2707_v30 = vmul.f32 %v6953_v38, %v2372_v16  ;;  %v2373_v8 = vld [vmem:[#allocation2 + $0x60] sm:$0xff] }
 0x2b9   : > { %v7095_v55 = vpop.f32.mrb[13].mxu1  ;;  %v2508_v41 = vmul.f32 %v6922_v50, %v2472_v17  ;;  %v2572_v43 = vld [vmem:[#allocation2 + $0x52] sm:$0xff]  ;;  %v3007_v42 = vmul.f32 %v6966_v1, %v2372_v16  ;;  %v7118_v2 = vadd.f32 1.0, %v5782_v23  ;;  %v2807_v46 = vmul.f32 %v6958_v36, %v2472_v17  ;;  %v2473_v37 = vld [vmem:[#allocation2 + $0x61] sm:$0xff] }
 0x2ba   : > { %v7097_v27 = vpop.f32.mrb[14].mxu1  ;;  %5791 = vrcp.bf16 %v3465_v39  ;;  %v2642_v18 = vadd.f32 %v2610_v10, %v2542_v12  ;;  %v2739_v22 = vadd.f32 %v2707_v30, %v2639_v52  ;;  %v2608_v11 = vmul.f32 %v6934_v53, %v2572_v43  ;;  %v7128_v12 = vld [vmem:[#allocation2 + $0x81] sm:$0xff] }
 0x2bb   : > { %v7106_v49 = vpop.f32.mrb[15].mxu1  ;;  %v2540_v31 = vadd.f32 %v2508_v41, %v2408_v45  ;;  %5793 = vpow.bf16 %v5185_v60  ;;  %v3039_v6 = vadd.f32 %v3007_v42, %v2938_v29  ;;  %v3107_v19 = vmul.f32 %v6968_v35, %v2472_v17  ;;  %v7131_v17 = vld [vmem:[#allocation2 + $0x82] sm:$0xff] }
 0x2bc   : > { %v5784_v62 = vpop.eup %5783  ;;  %v2709_v16 = vmul.f32 %v6953_v38, %v7081_v40  ;;  %v2839_v23 = vadd.f32 %v2807_v46, %v2739_v22  ;;  %v2907_v52 = vmul.f32 %v6962_v44, %v2572_v43  ;;  %v3207_v29 = vmul.f32 %v6972_v4, %v2572_v43  ;;  %v2573_v41 = vld [vmem:[#allocation2 + $0x62] sm:$0xff] }
 0x2bd   : > { %v3466_v39 = vadd.bf16 1065369472, %v5784_v62  ;;  %v2640_v60 = vadd.f32 %v2608_v11, %v2540_v31  ;;  %v3139_v10 = vadd.f32 %v3107_v19, %v3039_v6  ;;  %v2742_v45 = vadd.f32 %v2710_v63, %v2642_v18  ;;  %v5786_v30 = vpop.eup %5785 }
 0x2be   : > { %v2809_v42 = vmul.f32 %v6958_v36, %v7083_v61  ;;  %v2939_v62 = vadd.f32 %v2907_v52, %v2839_v23  ;;  %v2409_v33 = vmul.f32 %v6920_v32, %v2373_v8  ;;  %v2509_v22 = vmul.f32 %v6922_v50, %v2473_v37  ;;  %v5788_v46 = vpop.eup %5787 }
 0x2bf   : > { %5795 = vrcp.bf16 %v3466_v39  ;;  %v3239_v25 = vadd.f32 %v3207_v29, %v3139_v10  ;;  %v2810_v31 = vmul.f32 %v6958_v36, %v7128_v12  ;;  %v2708_v43 = vmul.f32 %v6953_v38, %v2373_v8  ;;  %v5790_v18 = vpop.eup %5789 }
 0x2c0   : > { %v2910_v11 = vmul.f32 %v6962_v44, %v7131_v17  ;;  %v2541_v6 = vadd.f32 %v2509_v22, %v2409_v33  ;;  %v2609_v19 = vmul.f32 %v6934_v53, %v2573_v41  ;;  %v3008_v63 = vmul.f32 %v6966_v1, %v2373_v8 }
 0x2c1   : > { %v3276_v23 = vadd.f32 %v7010_v47, %v3239_v25  ;;  %v2842_v52 = vadd.f32 %v2810_v31, %v2742_v45  ;;  %v2740_v24 = vadd.f32 %v2708_v43, %v2640_v60  ;;  %v2808_v39 = vmul.f32 %v6958_v36, %v2473_v37 }
 0x2c2   : > { %v2641_v10 = vadd.f32 %v2609_v19, %v2541_v6  ;;  %v3040_v29 = vadd.f32 %v3008_v63, %v2939_v62  ;;  %v3108_v21 = vmul.f32 %v6968_v35, %v2473_v37  ;;  %v2209_v34 = vmul.f32 %v5786_v30, %v7002_v15 }
 0x2c3   : > { %v7148_v14 = vpack.c.bf16 %v3276_v23, %v3276_v23  ;;  %v2840_v20 = vadd.f32 %v2808_v39, %v2740_v24  ;;  %v2908_v33 = vmul.f32 %v6962_v44, %v2573_v41  ;;  %v2207_v22 = vmul.f32 %v5788_v46, %v7005_v51 }
 0x2c4   : > { %v2741_v58 = vadd.f32 %v2709_v16, %v2641_v10  ;;  %v3140_v25 = vadd.f32 %v3108_v21, %v3040_v29  ;;  %v3208_v60 = vmul.f32 %v6972_v4, %v2573_v41  ;;  %2342 = vst.msk [vmem:[#allocation2 + $0xd1] sm:$0xff] %vm2231_vm5, %v2209_v34  ;;  %v2210_v45 = vmul.f32 %v5790_v18, %v7014_v57 }
 0x2c5   : > { %v5792_v8 = vpop.eup %5791  ;;  %v3009_v15 = vmul.f32 %v6966_v1, %v7081_v40  ;;  %v5186_v24 = vmul.bf16 3216621497, %v7148_v14  ;;  %v2942_v37 = vadd.f32 %v2910_v11, %v2842_v52  ;;  %v2940_v30 = vadd.f32 %v2908_v33, %v2840_v20  ;;  %2340 = vst.msk [vmem:[#allocation2 + $0xb1] sm:$0xff] %vm2231_vm5, %v2207_v22  ;;  %v2991_v22 = vld [vmem:[#allocation2 + $0x1d0] sm:$0xff] }
 0x2c6   : > { %v7155_v62 = vpop.eup %5793  ;;  %v3498_v51 = vmul.bf16 1065369472, %v5792_v8  ;;  %v3240_v16 = vadd.f32 %v3208_v60, %v3140_v25  ;;  %2343 = vst.msk [vmem:[#allocation2 + $0xe1] sm:$0xff] %vm2231_vm5, %v2210_v45  ;;  %v7164_v21 = vadd.f32 %v7087_v48, %v6903_v0  ;;  %v7168_v57 = vadd.f32 %v6903_v0, %v7095_v55 }
 0x2c7   : > { %v2841_v34 = vadd.f32 %v2809_v42, %v2741_v58  ;;  %v3041_v40 = vadd.f32 %v3009_v15, %v2940_v30  ;;  %5797 = vrcp.f32 %v7118_v2  ;;  %v7173_v20 = vadd.f32 %v7100_v59, %v7112_v13 }
 0x2c8   : > { %5799 = vpow.bf16 %v5186_v24  ;;  %v3277_v41 = vadd.f32 %v7010_v47, %v3240_v16  ;;  %v5164_v46 = vmul.f32 -1.442695, %v7164_v21  ;;  %v5162_v48 = vmul.f32 -1.442695, %v7168_v57 }
 0x2c9   : > { %8573 = vst [vmem:[#allocation11_spill] sm:$0xff] %v7173_v20  ;;  %v2909_v31 = vmul.f32 %v6962_v44, %v7085_v9  ;;  %v3109_v58 = vmul.f32 %v6968_v35, %v7083_v61  ;;  %v3209_v55 = vmul.f32 %v6972_v4, %v7085_v9  ;;  %v3043_v2 = vadd.f32 %v7059_v26, %v2942_v37 }
 0x2ca   : > { %v5796_v59 = vpop.eup %5795  ;;  %v7186_v13 = vmul.bf16 %v3498_v51, %v7030_v3  ;;  %v7188_v42 = vpack.c.bf16 %v3277_v41, %v3277_v41  ;;  %5801 = vpow2.f32 %v5164_v46  ;;  %v7192_v43 = vadd.f32 %v7097_v27, %v6903_v0 }
 0x2cb   : > { %v2941_v18 = vadd.f32 %v2909_v31, %v2841_v34  ;;  %v3141_v11 = vadd.f32 %v3109_v58, %v3041_v40  ;;  %v2378_v6 = vld [vmem:[#allocation2 + $0xd0] sm:$0xff]  ;;  %5803 = vpow2.f32 %v5162_v48  ;;  %v7196_v9 = vadd.f32 %v6903_v0, %v7106_v49 }
 0x2cc   : > { %8574 = vst [vmem:[#allocation12_spill] sm:$0xff] %v7186_v13  ;;  %v2478_v61 = vld [vmem:[#allocation2 + $0xd1] sm:$0xff]  ;;  %v3010_v3 = vmul.f32 %v6966_v1, %v7110_v56  ;;  %v5187_v26 = vmul.bf16 3216621497, %v7188_v42  ;;  %v2414_v19 = vmul.f32 %v6920_v32, %v2378_v6  ;;  %v3500_v52 = vmul.bf16 1065369472, %v5796_v59 }
 0x2cd   : > { %v2514_v63 = vmul.f32 %v6922_v50, %v2478_v61  ;;  %v2578_v27 = vld [vmem:[#allocation2 + $0xd2] sm:$0xff]  ;;  %v7205_v39 = vmul.f32 %v6968_v35, %v7128_v12  ;;  %v7208_v10 = vadd.f32 %v7062_v28, %v3043_v2  ;;  %v7212_v49 = vmul.f32 %v6972_v4, %v7131_v17  ;;  %v2379_v34 = vld [vmem:[#allocation2 + $0xe0] sm:$0xff] }
 0x2ce   : > { %v2376_v56 = vld [vmem:[#allocation2 + $0xb0] sm:$0xff]  ;;  %5805 = vpow.bf16 %v5187_v26  ;;  %v5165_v60 = vmul.f32 -1.442695, %v7192_v43  ;;  %v7216_v12 = vadd.f32 %v3010_v3, %v2941_v18  ;;  %v7218_v15 = vadd.f32 %v3209_v55, %v3141_v11  ;;  %v2479_v55 = vld [vmem:[#allocation2 + $0xe1] sm:$0xff] }
 0x2cf   : > { %v2476_v29 = vld [vmem:[#allocation2 + $0xb1] sm:$0xff]  ;;  %v2546_v25 = vadd.f32 %v2514_v63, %v2414_v19  ;;  %v2614_v28 = vmul.f32 %v6934_v53, %v2578_v27  ;;  %v5163_v17 = vmul.f32 -1.442695, %v7196_v9  ;;  %v2412_v37 = vmul.f32 %v6920_v32, %v2376_v56  ;;  %v2579_v11 = vld [vmem:[#allocation2 + $0xe2] sm:$0xff] }
 0x2d0   : > { %v5455_v23 = vpop.f32.mrb[16].mxu1  ;;  %v2512_v30 = vmul.f32 %v6922_v50, %v2476_v29  ;;  %v2576_v51 = vld [vmem:[#allocation2 + $0xb2] sm:$0xff]  ;;  %v2711_v16 = vmul.f32 %v6953_v38, %v2376_v56  ;;  %v7226_v40 = vmul.f32 %v6966_v1, %v2991_v22  ;;  %v7229_v46 = vmul.bf16 %v3500_v52, %v7043_v5 }
 0x2d1   : > { %v1944_v33 = vpop.f32.mrb[17].mxu1  ;;  %v5798_v41 = vpop.eup %5797  ;;  %v2646_v48 = vadd.f32 %v2614_v28, %v2546_v25  ;;  %v7232_v31 = vmul.f32 %v6953_v38, %v2378_v6  ;;  %v7235_v58 = vmul.f32 %v6958_v36, %v2478_v61  ;;  %v7238_v2 = vmul.f32 %v6962_v44, %v2578_v27 }
 0x2d2   : > { %v5456_v45 = vpop.f32.mrb[18].mxu1  ;;  %8575 = vst [vmem:[#allocation13_spill] sm:$0xff] %v7226_v40  ;;  %8576 = vst [vmem:[#allocation14_spill] sm:$0xff] %v7229_v46  ;;  %v7241_v59 = vmul.f32 %v6966_v1, %v2378_v6  ;;  %v7244_v18 = vmul.f32 %v6968_v35, %v2478_v61  ;;  %v7247_v5 = vmul.f32 %v6972_v4, %v2578_v27  ;;  %5807 = vpow2.f32 %v5165_v60 }
 0x2d3   : > { %v1947_v24 = vpop.f32.mrb[19].mxu1  ;;  %v5800_v3 = vpop.eup %5799  ;;  %v2612_v26 = vmul.f32 %v6934_v53, %v2576_v51  ;;  %v2811_v19 = vmul.f32 %v6958_v36, %v2476_v29  ;;  %v2911_v63 = vmul.f32 %v6962_v44, %v2576_v51  ;;  %v2714_v52 = vmul.f32 %v6953_v38, %v2379_v34 }
 0x2d4   : > { %v5802_v56 = vpop.eup %5801  ;;  %v2544_v22 = vadd.f32 %v2512_v30, %v2412_v37  ;;  %v2743_v6 = vadd.f32 %v2711_v16, %v7064_v54  ;;  %v2415_v61 = vmul.f32 %v6920_v32, %v2379_v34  ;;  %v2515_v25 = vmul.f32 %v6922_v50, %v2479_v55 }
 0x2d5   : > { %v5804_v27 = vpop.eup %5803  ;;  %v2615_v28 = vmul.f32 %v6934_v53, %v2579_v11  ;;  %v2746_v8 = vadd.f32 %v2714_v52, %v2646_v48  ;;  %v2208_v13 = vmul.f32 %v5798_v41, %v7019_v7  ;;  %v2117_v40 = vadd.f32 1.0, %v5802_v56 }
 0x2d6   : > { %v3468_v29 = vadd.bf16 1065369472, %v5800_v3  ;;  %v2814_v51 = vmul.f32 %v6958_v36, %v2479_v55  ;;  %v2115_v20 = vadd.f32 1.0, %v5804_v27  ;;  %v7261_v54 = vadd.f32 %v5455_v23, %v6903_v0  ;;  %v2391_v23 = vld [vmem:[#allocation2 + $0x1e0] sm:$0xff] }
 0x2d7   : > { %2341 = vst.msk [vmem:[#allocation2 + $0xc1] sm:$0xff] %vm2231_vm5, %v2208_v13  ;;  %5809 = vrcp.f32 %v2117_v40  ;;  %v7264_v37 = vadd.f32 %v6903_v0, %v1944_v33  ;;  %v7267_v30 = vadd.f32 %v5456_v45, %v6903_v0  ;;  %v2843_v16 = vadd.f32 %v2811_v19, %v2743_v6  ;;  %v2491_v40 = vld [vmem:[#allocation2 + $0x1e1] sm:$0xff] }
 0x2d8   : > { %v2547_v7 = vadd.f32 %v2515_v25, %v2415_v61  ;;  %v2914_v41 = vmul.f32 %v6962_v44, %v2579_v11  ;;  %5811 = vrcp.f32 %v2115_v20  ;;  %v2846_v3 = vadd.f32 %v2814_v51, %v2746_v8  ;;  %v2591_v8 = vld [vmem:[#allocation2 + $0x1e2] sm:$0xff] }
 0x2d9   : > { %v5806_v48 = vpop.eup %5805  ;;  %5813 = vpow2.f32 %v5163_v17  ;;  %v5168_v13 = vmul.f32 -1.442695, %v7261_v54  ;;  %v5166_v60 = vmul.f32 -1.442695, %v7264_v37  ;;  %v5169_v52 = vmul.f32 -1.442695, %v7267_v30 }
 0x2da   : > { %5815 = vrcp.bf16 %v3468_v29  ;;  %v3469_v33 = vadd.bf16 1065369472, %v5806_v48  ;;  %v7274_v45 = vadd.f32 %v6903_v0, %v1947_v24  ;;  %v2644_v19 = vadd.f32 %v2612_v26, %v2544_v22  ;;  %v3091_v17 = vld [vmem:[#allocation2 + $0x1d1] sm:$0xff] }
 0x2db   : > { %v7277_v56 = vmul.f32 %v6966_v1, %v2379_v34  ;;  %v7280_v20 = vmul.f32 %v6968_v35, %v2479_v55  ;;  %5817 = vpow2.f32 %v5168_v13  ;;  %v7283_v6 = vmul.f32 %v6972_v4, %v2579_v11  ;;  %v3191_v34 = vld [vmem:[#allocation2 + $0x1d2] sm:$0xff] }
 0x2dc   : > { %8577 = vst [vmem:[#allocation15_spill] sm:$0xff] %v7274_v45  ;;  %5819 = vrcp.bf16 %v3469_v33  ;;  %v2427_v61 = vmul.f32 %v6920_v32, %v2391_v23  ;;  %v2527_v25 = vmul.f32 %v6922_v50, %v2491_v40  ;;  %v2943_v24 = vadd.f32 %v2911_v63, %v2843_v16  ;;  %v8580_v23 = vld [vmem:[#allocation9_spill] sm:$0xff] }
 0x2dd   : > { %v7287_v27 = vadd.f32 %v2615_v28, %v2547_v7  ;;  %v7289_v26 = vadd.f32 %v2914_v41, %v2846_v3  ;;  %5821 = vpow2.f32 %v5166_v60  ;;  %v5167_v51 = vmul.f32 -1.442695, %v7274_v45  ;;  %v5808_v41 = vpop.eup %5807 }
 0x2de   : > { %v2377_v55 = vld [vmem:[#allocation2 + $0xc0] sm:$0xff]  ;;  %5823 = vpow2.f32 %v5169_v52  ;;  %v7293_v11 = vmul.f32 %v6934_v53, %v2591_v8  ;;  %v7296_v48 = vmul.f32 %v6968_v35, %v3091_v17  ;;  %v3142_v7 = vadd.f32 %v7205_v39, %v7216_v12 }
 0x2df   : > { %v2477_v22 = vld [vmem:[#allocation2 + $0xc1] sm:$0xff]  ;;  %v2413_v63 = vmul.f32 %v6920_v32, %v2377_v55  ;;  %v2712_v16 = vmul.f32 %v6953_v38, %v2377_v55  ;;  %v3012_v3 = vmul.f32 %v6966_v1, %v2377_v55  ;;  %v7304_v13 = vadd.f32 %v2527_v25, %v2427_v61 }
 0x2e0   : > { %v2577_v29 = vld [vmem:[#allocation2 + $0xc2] sm:$0xff]  ;;  %8578 = vst [vmem:[#allocation16_spill] sm:$0xff] %v7296_v48  ;;  %v2513_v28 = vmul.f32 %v6922_v50, %v2477_v22  ;;  %v7307_v60 = vmul.f32 %v6972_v4, %v3191_v34  ;;  %v3243_v40 = vadd.f32 %v8580_v23, %v7208_v10  ;;  %v2812_v48 = vmul.f32 %v6958_v36, %v2477_v22 }
 0x2e1   : > { %v5810_v33 = vpop.eup %5809  ;;  %v2613_v8 = vmul.f32 %v6934_v53, %v2577_v29  ;;  %v2744_v17 = vadd.f32 %v2712_v16, %v2644_v19  ;;  %v3044_v39 = vadd.f32 %v3012_v3, %v2943_v24  ;;  %v3112_v12 = vmul.f32 %v6968_v35, %v2477_v22 }
 0x2e2   : > { %8579 = vst [vmem:[#allocation17_spill] sm:$0xff] %v7307_v60  ;;  %v2545_v52 = vadd.f32 %v2513_v28, %v2413_v63  ;;  %v5812_v45 = vpop.eup %5811  ;;  %v2213_v61 = vmul.f32 %v5810_v33, %v7164_v21  ;;  %v2118_v25 = vadd.f32 1.0, %v5808_v41  ;;  %v2912_v46 = vmul.f32 %v6962_v44, %v2577_v29 }
 0x2e3   : > { %v5814_v55 = vpop.eup %5813  ;;  %v2844_v60 = vadd.f32 %v2812_v48, %v2744_v17  ;;  %v2211_v10 = vmul.f32 %v5812_v45, %v7168_v57  ;;  %v3144_v63 = vadd.f32 %v3112_v12, %v3044_v39  ;;  %v3212_v28 = vmul.f32 %v6972_v4, %v2577_v29 }
 0x2e4   : > { %v2645_v34 = vadd.f32 %v2613_v8, %v2545_v52  ;;  %2346 = vst.msk [vmem:[#allocation2 + $0x111] sm:$0xff] %vm2231_vm5, %v2213_v61  ;;  %v2116_v19 = vadd.f32 1.0, %v5814_v55  ;;  %v3278_v24 = vadd.f32 %v7010_v47, %v7218_v15  ;;  %5825 = vrcp.f32 %v2118_v25 }
 0x2e5   : > { %v5816_v22 = vpop.eup %5815  ;;  %v2944_v3 = vadd.f32 %v2912_v46, %v2844_v60  ;;  %2344 = vst.msk [vmem:[#allocation2 + $0xf1] sm:$0xff] %vm2231_vm5, %v2211_v10  ;;  %v3244_v29 = vadd.f32 %v3212_v28, %v3144_v63  ;;  %v3242_v33 = vadd.f32 %v7212_v49, %v3142_v7  ;;  %v3280_v12 = vadd.f32 %v7010_v47, %v3243_v40 }
 0x2e6   : > { %v5818_v21 = vpop.eup %5817  ;;  %v2745_v41 = vadd.f32 %v7232_v31, %v2645_v34  ;;  %5827 = vrcp.f32 %v2116_v19  ;;  %v7356_v28 = vadd.f32 %v7293_v11, %v7304_v13 }
 0x2e7   : > { %v2121_v48 = vadd.f32 1.0, %v5818_v21  ;;  %v5820_v52 = vpop.eup %5819  ;;  %v3045_v31 = vadd.f32 %v7241_v59, %v2944_v3  ;;  %5829 = vpow2.f32 %v5167_v51  ;;  %v3281_v17 = vadd.f32 %v7010_v47, %v3244_v29  ;;  %v7341_v51 = vld [vmem:[%s8522_s9 + $0x1] ss:$0 sm:$0xff] }
 0x2e8   : > { %v5459_v16 = vpop.f32.mrb[20].mxu1  ;;  %v5822_v15 = vpop.eup %5821  ;;  %v2845_v8 = vadd.f32 %v7235_v58, %v2745_v41  ;;  %v3504_v58 = vmul.bf16 1065369472, %v5816_v22  ;;  %v3506_v55 = vmul.bf16 1065369472, %v5820_v52  ;;  %8581 = vst [vmem:[#allocation9_spill] sm:$0xff] %v7356_v28  ;;  %v7363_v41 = vpack.c.bf16 %v3278_v24, %v3278_v24 }
 0x2e9   : > { %v7324_v57 = vadd.f32 %v5459_v16, %v6903_v0  ;;  %v1960_v45 = vpop.f32.mrb[21].mxu1  ;;  %v5824_v0 = vpop.eup %5823  ;;  %5831 = vrcp.f32 %v2121_v48  ;;  %v2119_v39 = vadd.f32 1.0, %v5822_v15  ;;  %v3145_v7 = vadd.f32 %v7244_v18, %v3045_v31 }
 0x2ea   : > { %v5460_v23 = vpop.f32.mrb[22].mxu1  ;;  %v2945_v49 = vadd.f32 %v7238_v2, %v2845_v8  ;;  %v2122_v61 = vadd.f32 1.0, %v5824_v0  ;;  %v7336_v59 = vpack.c.bf16 %v3281_v17, %v3281_v17  ;;  %v7344_v25 = vadd.f32 %v7341_v51, %v1960_v45  ;;  %8582 = vst [vmem:[#allocation18_spill] sm:$0xff] %v7363_v41 }
 0x2eb   : > { %v5172_v46 = vmul.f32 -1.442695, %v7324_v57  ;;  %v7330_v60 = vpop.f32.mrb[23].mxu1  ;;  %v3245_v40 = vadd.f32 %v7247_v5, %v3145_v7  ;;  %v2382_v2 = vld [vmem:[#allocation2 + $0x110] sm:$0xff]  ;;  %v7350_v18 = vadd.f32 %v7341_v51, %v5460_v23  ;;  %v7369_v11 = vadd.f32 %v7010_v47, %v3242_v33 }
 0x2ec   : > { %v7347_v34 = vld [vmem:[#allocation2 + $0x111] sm:$0xff]  ;;  %v3046_v10 = vadd.f32 %v7277_v56, %v2945_v49  ;;  %v5191_v63 = vmul.bf16 3216621497, %v7336_v59  ;;  %v2418_v5 = vmul.f32 %v6920_v32, %v2382_v2  ;;  %v7366_v56 = vmul.bf16 %v3504_v58, %v7148_v14 }
 0x2ed   : > { %5833 = vpow2.f32 %v5172_v46  ;;  %v3282_v16 = vadd.f32 %v7010_v47, %v3245_v40  ;;  %v2518_v22 = vmul.f32 %v6922_v50, %v7347_v34  ;;  %v2582_v21 = vld [vmem:[#allocation2 + $0x112] sm:$0xff]  ;;  %v7371_v13 = vpack.c.bf16 %v3280_v12, %v3280_v12 }
 0x2ee   : > { %5835 = vrcp.f32 %v2119_v39  ;;  %8583 = vst [vmem:[#allocation19_spill] sm:$0xff] %v7366_v56  ;;  %v2380_v3 = vld [vmem:[#allocation2 + $0xf0] sm:$0xff]  ;;  %v5826_v45 = vpop.eup %5825  ;;  %v7374_v29 = vmul.bf16 %v3506_v55, %v7188_v42  ;;  %v5170_v24 = vmul.f32 -1.442695, %v7344_v25  ;;  %v5173_v52 = vmul.f32 -1.442695, %v7350_v18 }
 0x2ef   : > { %5837 = vrcp.f32 %v2122_v61  ;;  %8584 = vst [vmem:[#allocation20_spill] sm:$0xff] %v7371_v13  ;;  %v7376_v48 = vpack.c.bf16 %v3282_v16, %v3282_v16  ;;  %v2480_v23 = vld [vmem:[#allocation2 + $0xf1] sm:$0xff]  ;;  %v3146_v15 = vadd.f32 %v7280_v20, %v3046_v10  ;;  %v2618_v8 = vmul.f32 %v6934_v53, %v2582_v21 }
 0x2f0   : > { %5839 = vpow.bf16 %v5191_v63  ;;  %8585 = vst [vmem:[#allocation21_spill] sm:$0xff] %v7374_v29  ;;  %v5828_v14 = vpop.eup %5827  ;;  %v7383_v33 = vmul.f32 %v6953_v38, %v2382_v2  ;;  %v7387_v31 = vmul.f32 %v6958_v36, %v7347_v34  ;;  %v2550_v0 = vadd.f32 %v2518_v22, %v2418_v5  ;;  %v2580_v61 = vld [vmem:[#allocation2 + $0xf2] sm:$0xff] }
 0x2f1   : > { %v5830_v42 = vpop.eup %5829  ;;  %v5192_v46 = vmul.bf16 3216621497, %v7376_v48  ;;  %v7391_v17 = vmul.f32 %v6962_v44, %v2582_v21  ;;  %v2715_v39 = vmul.f32 %v6953_v38, %v2380_v3  ;;  %v7395_v20 = vmul.f32 %v6966_v1, %v2382_v2 }
 0x2f2   : > { %v2416_v49 = vmul.f32 %v6920_v32, %v2380_v3  ;;  %v2516_v7 = vmul.f32 %v6922_v50, %v2480_v23  ;;  %v3015_v58 = vmul.f32 %v6966_v1, %v2380_v3  ;;  %v2214_v10 = vmul.f32 %v5826_v45, %v7192_v43 }
 0x2f3   : > { %v5832_v12 = vpop.eup %5831  ;;  %5841 = vpow.bf16 %v5192_v46  ;;  %v2747_v40 = vadd.f32 %v2715_v39, %v7287_v27  ;;  %v2212_v63 = vmul.f32 %v5828_v14, %v7196_v9  ;;  %v3115_v2 = vmul.f32 %v6968_v35, %v2480_v23 }
 0x2f4   : > { %v3047_v5 = vadd.f32 %v3015_v58, %v7289_v26  ;;  %v2217_v22 = vmul.f32 %v5832_v12, %v7261_v54  ;;  %v2120_v19 = vadd.f32 1.0, %v5830_v42  ;;  %v2815_v28 = vmul.f32 %v6958_v36, %v2480_v23  ;;  %2347 = vst.msk [vmem:[#allocation2 + $0x121] sm:$0xff] %vm2231_vm5, %v2214_v10 }
 0x2f5   : > { %v3215_v3 = vmul.f32 %v6972_v4, %v2580_v61  ;;  %2345 = vst.msk [vmem:[#allocation2 + $0x101] sm:$0xff] %vm2231_vm5, %v2212_v63  ;;  %5843 = vpow2.f32 %v5170_v24  ;;  %v7415_v54 = vadd.f32 %v7341_v51, %v7330_v60  ;;  %v3246_v45 = vadd.f32 %v7283_v6, %v3146_v15  ;;  %v3099_v24 = vld [vmem:[#allocation2 + $0x271] sm:$0xff] }
 0x2f6   : > { %v3147_v27 = vadd.f32 %v3115_v2, %v3047_v5  ;;  %2350 = vst.msk [vmem:[#allocation2 + $0x171] sm:$0xff] %vm2231_vm5, %v2217_v22  ;;  %v2548_v23 = vadd.f32 %v2516_v7, %v2416_v49  ;;  %v2847_v14 = vadd.f32 %v2815_v28, %v2747_v40  ;;  %5845 = vrcp.f32 %v2120_v19  ;;  %v2999_v19 = vld [vmem:[#allocation2 + $0x270] sm:$0xff] }
 0x2f7   : > { %v5834_v55 = vpop.eup %5833  ;;  %v7424_v42 = vmul.f32 %v6972_v4, %v2582_v21  ;;  %v2915_v6 = vmul.f32 %v6962_v44, %v2580_v61  ;;  %v5171_v28 = vmul.f32 -1.442695, %v7415_v54  ;;  %v5663_v21 = vld [vmem:[%s8517_s4] sm:$0xff]   ;;  %v5188_v46 = vmul.bf16 3216621497, %v7363_v41 }
 0x2f8   : > { %v5836_v16 = vpop.eup %5835  ;;  %v2125_v9 = vadd.f32 1.0, %v5834_v55  ;;  %v2650_v39 = vadd.f32 %v2618_v8, %v2550_v0  ;;  %v8586_v7 = vmov 0.0   ;;  %5470 = vmatpush3.bf16.msra.mxu1 %v5663_v21  ;;  %v5664_v0 = vld [vmem:[%s8517_s4 + $0x8] sm:$0xff]   ;;  %v7455_v40 = vpack.c.bf16 %v7369_v11, %v7369_v11 }
 0x2f9   : > { %v5838_v29 = vpop.eup %5837  ;;  %v2215_v43 = vmul.f32 %v5836_v16, %v7264_v37  ;;  %v7421_v37 = vmul.f32 %v6968_v35, %v7347_v34  ;;  %v2947_v49 = vadd.f32 %v2915_v6, %v2847_v14  ;;  %5477 = vmatprep.mubr.msk.bf16.mxu1 %vm6084_vm8, %v8586_v7  ;;  %5483 = vmatprep.mubr.msk.bf16.mxu0 %vm6084_vm8, %v8586_v7 }
 0x2fa   : > { %v2218_v26 = vmul.f32 %v5838_v29, %v7267_v30  ;;  %v3247_v30 = vadd.f32 %v3215_v3, %v3147_v27  ;;  %5847 = vrcp.f32 %v2125_v9  ;;  %v2616_v29 = vmul.f32 %v6934_v53, %v2580_v61  ;;  %8588 = vst [vmem:[#allocation22_spill] sm:$0xff] %v7455_v40  ;;  %5471 = vmatprep.subr.bf16.mxu1 %v8586_v7 }
 0x2fb   : > { %2348 = vst.msk [vmem:[#allocation2 + $0x151] sm:$0xff] %vm2231_vm5, %v2215_v43  ;;  %v5840_v60 = vpop.eup %5839  ;;  %5849 = vpow2.f32 %v5173_v52  ;;  %v8587_v52 = vadd.bf16 1065369472, %v7155_v62  ;;  %v7443_v58 = vld [vmem:[#allocation2 + $0x120] sm:$0xff]  ;;  %v3283_v62 = vadd.f32 %v7010_v47, %v3246_v45  ;;  %v7462_v2 = vmul.f32 %v6966_v1, %v2999_v19 }
 0x2fc   : > { %2351 = vst.msk [vmem:[#allocation2 + $0x181] sm:$0xff] %vm2231_vm5, %v2218_v26  ;;  %v3473_v15 = vadd.bf16 1065369472, %v5840_v60  ;;  %v3284_v34 = vadd.f32 %v7010_v47, %v3247_v30  ;;  %v2648_v12 = vadd.f32 %v2616_v29, %v2548_v23  ;;  %v7445_v55 = vld [vmem:[#allocation2 + $0x121] sm:$0xff]  ;;  %v2718_v10 = vmul.f32 %v6953_v38, %v7443_v58  ;;  %5472 = vmatpush3.bf16.msra.mxu1 %v5664_v0 }
 0x2fd   : > { %5851 = vrcp.bf16 %v8587_v52  ;;  %v2381_v63 = vld [vmem:[#allocation2 + $0x100] sm:$0xff]  ;;  %8589 = vst [vmem:[#allocation23_spill] sm:$0xff] %v7462_v2  ;;  %v7466_v22 = vmul.f32 %v6968_v35, %v3099_v24  ;;  %v2818_v23 = vmul.f32 %v6958_v36, %v7445_v55  ;;  %v7484_v19 = vpack.c.bf16 %v3283_v62, %v3283_v62  ;;  %5473 = vmatprep.subr.bf16.mxu1 %v8586_v7 }
 0x2fe   : > { %5853 = vrcp.bf16 %v3473_v15  ;;  %v7441_v61 = vpack.c.bf16 %v3284_v34, %v3284_v34  ;;  %v2481_v16 = vld [vmem:[#allocation2 + $0x101] sm:$0xff]  ;;  %v5842_v47 = vpop.eup %5841  ;;  %v2417_v3 = vmul.f32 %v6920_v32, %v2381_v63  ;;  %v2750_v45 = vadd.f32 %v2718_v10, %v2650_v39 }
 0x2ff   : > { %5855 = vpow2.f32 %v5171_v28  ;;  %8590 = vst [vmem:[#allocation24_spill] sm:$0xff] %v7466_v22  ;;  %v2581_v43 = vld [vmem:[#allocation2 + $0x102] sm:$0xff]  ;;  %v3474_v26 = vadd.bf16 1065369472, %v5842_v47  ;;  %v2517_v30 = vmul.f32 %v6922_v50, %v2481_v16  ;;  %v7478_v29 = vpop.eup %5843  ;;  %v2716_v6 = vmul.f32 %v6953_v38, %v2381_v63  ;;  %v5665_v28 = vld [vmem:[%s8517_s4 + $0x10] sm:$0xff]  }
 0x300   : > { %v7447_v8 = vpop.f32.mrb[24].mxu1  ;;  %v5194_v11 = vmul.bf16 3216621497, %v7441_v61  ;;  %5857 = vpow.bf16 %v5188_v46  ;;  %v2882_v14 = vld [vmem:[#allocation2 + $0x122] sm:$0xff]  ;;  %v7487_v15 = vpop.eup %5845  ;;  %v2850_v34 = vadd.f32 %v2818_v23, %v2750_v45  ;;  %v2617_v46 = vmul.f32 %v6934_v53, %v2581_v43  ;;  %v2386_v47 = vld [vmem:[#allocation2 + $0x170] sm:$0xff]  ;;  %5474 = vmatpush3.bf16.msra.mxu1 %v5665_v28 }
 0x301   : > { %v7459_v5 = vpop.f32.mrb[25].mxu1  ;;  %v2549_v21 = vadd.f32 %v2517_v30, %v2417_v3  ;;  %v3016_v39 = vmul.f32 %v6966_v1, %v2381_v63  ;;  %v2918_v0 = vmul.f32 %v6962_v44, %v2882_v14  ;;  %v2748_v10 = vadd.f32 %v2716_v6, %v2648_v12  ;;  %v3199_v30 = vld [vmem:[#allocation2 + $0x272] sm:$0xff]  ;;  %5475 = vmatprep.subr.bf16.mxu1 %v8586_v7 }
 0x302   : > { %v7470_v9 = vpop.f32.mrb[26].mxu1  ;;  %5859 = vpow.bf16 %v5194_v11  ;;  %v2816_v62 = vmul.f32 %v6958_v36, %v2481_v16  ;;  %v2486_v11 = vld [vmem:[#allocation2 + $0x171] sm:$0xff]  ;;  %v3116_v23 = vmul.f32 %v6968_v35, %v2481_v16  ;;  %v3216_v2 = vmul.f32 %v6972_v4, %v2581_v43 }
 0x303   : > { %v7476_v60 = vpop.f32.mrb[27].mxu1  ;;  %5861 = vrcp.bf16 %v3474_v26  ;;  %v2649_v45 = vadd.f32 %v2617_v46, %v2549_v21  ;;  %v3048_v3 = vadd.f32 %v3016_v39, %v2947_v49  ;;  %v2950_v41 = vadd.f32 %v2918_v0, %v2850_v34  ;;  %v5666_v12 = vld [vmem:[%s8517_s4 + $0x18] sm:$0xff]   ;;  %v2384_v46 = vld [vmem:[#allocation2 + $0x150] sm:$0xff]  ;;  %v2387_v13 = vld [vmem:[#allocation2 + $0x180] sm:$0xff] }
 0x304   : > { %v7492_v52 = vpop.eup %5847  ;;  %v2848_v22 = vadd.f32 %v2816_v62, %v2748_v10  ;;  %v2916_v26 = vmul.f32 %v6962_v44, %v2581_v43  ;;  %v2422_v49 = vmul.f32 %v6920_v32, %v2386_v47  ;;  %v2522_v16 = vmul.f32 %v6922_v50, %v2486_v11  ;;  %v2586_v39 = vld [vmem:[#allocation2 + $0x172] sm:$0xff]  ;;  %5476 = vmatpush3.bf16.msra.mxu1 %v5666_v12 }
 0x305   : > { %v7496_v27 = vpop.eup %5849  ;;  %v2749_v6 = vadd.f32 %v7383_v33, %v2649_v45  ;;  %v3148_v21 = vadd.f32 %v3116_v23, %v3048_v3  ;;  %v3018_v43 = vmul.f32 %v6966_v1, %v7443_v58  ;;  %v2484_v0 = vld [vmem:[#allocation2 + $0x151] sm:$0xff]  ;;  %v7514_v10 = vmul.f32 %v6972_v4, %v3199_v30 }
 0x306   : > { %v2948_v28 = vadd.f32 %v2916_v26, %v2848_v22  ;;  %v7519_v3 = vmul.f32 %v6968_v35, %v7445_v55  ;;  %v7522_v23 = vmul.f32 %v6972_v4, %v2882_v14  ;;  %v8594_v26 = vld [vmem:[#allocation7_spill] sm:$0xff]  ;;  %v2554_v56 = vadd.f32 %v2522_v16, %v2422_v49 }
 0x307   : > { %8593 = vst [vmem:[#allocation26_spill] sm:$0xff] %v7514_v10  ;;  %v2849_v24 = vadd.f32 %v7387_v31, %v2749_v6  ;;  %v3248_v58 = vadd.f32 %v3216_v2, %v3148_v21  ;;  %v3051_v7 = vadd.f32 %v8594_v26, %v2950_v41  ;;  %v2420_v10 = vmul.f32 %v6920_v32, %v2384_v46  ;;  %v7533_v55 = vld [vmem:[%s8522_s9 + $0x2] ss:$0 sm:$0xff] }
 0x308   : > { %v7509_v34 = vpop.eup %5851  ;;  %v3049_v30 = vadd.f32 %v7395_v20, %v2948_v28  ;;  %v2622_v31 = vmul.f32 %v6934_v53, %v2586_v39  ;;  %v2520_v2 = vmul.f32 %v6922_v50, %v2484_v0  ;;  %v7540_v20 = vmul.f32 %v6953_v38, %v2386_v47 }
 0x309   : > { %8592 = vst [vmem:[#allocation25_spill] sm:$0xff] %v7509_v34  ;;  %v5854_v62 = vpop.eup %5853  ;;  %v3285_v14 = vadd.f32 %v7533_v55, %v3248_v58  ;;  %v2949_v41 = vadd.f32 %v7391_v17, %v2849_v24  ;;  %v7543_v12 = vmul.f32 %v6958_v36, %v2486_v11  ;;  %v2719_v6 = vmul.f32 %v6953_v38, %v2384_v46  ;;  %v2584_v17 = vld [vmem:[#allocation2 + $0x152] sm:$0xff]  ;;  %v8597_v24 = vld [vmem:[#allocation8_spill] sm:$0xff] }
 0x30a   : > { %v5856_v45 = vpop.eup %5855  ;;  %v3514_v22 = vmul.bf16 1065369472, %v5854_v62  ;;  %v3149_v49 = vadd.f32 %v7421_v37, %v3049_v30  ;;  %v7553_v62 = vmul.f32 %v6962_v44, %v2586_v39  ;;  %v7556_v58 = vadd.f32 %v8597_v24, %v3051_v7  ;;  %v2487_v24 = vld [vmem:[#allocation2 + $0x181] sm:$0xff] }
 0x30b   : > { %v7528_v33 = vpop.eup %5857  ;;  %v7550_v16 = vpack.c.bf16 %v3285_v14, %v3285_v14  ;;  %v7559_v26 = vmul.f32 %v6966_v1, %v2386_v47  ;;  %v7562_v46 = vmul.f32 %v6968_v35, %v2486_v11  ;;  %v2552_v63 = vadd.f32 %v2520_v2, %v2420_v10  ;;  %v8598_v14 = vld [vmem:[#allocation11_spill] sm:$0xff] }
 0x30c   : > { %8595 = vst [vmem:[#allocation7_spill] sm:$0xff] %v7528_v33  ;;  %v7547_v28 = vmul.bf16 %v3514_v22, %v7336_v59  ;;  %v2654_v30 = vadd.f32 %v2622_v31, %v2554_v56  ;;  %v2751_v34 = vadd.f32 %v2719_v6, %v8598_v14  ;;  %v3050_v40 = vadd.f32 %v3018_v43, %v2949_v41 }
 0x30d   : > { %v5860_v21 = vpop.eup %5859  ;;  %v5195_v37 = vmul.bf16 3216621497, %v7550_v16  ;;  %v7567_v33 = vmul.f32 %v6972_v4, %v2586_v39  ;;  %v2620_v7 = vmul.f32 %v6934_v53, %v2584_v17  ;;  %v2819_v47 = vmul.f32 %v6958_v36, %v2484_v0  ;;  %v2587_v39 = vld [vmem:[#allocation2 + $0x182] sm:$0xff] }
 0x30e   : > { %8596 = vst [vmem:[#allocation27_spill] sm:$0xff] %v7547_v28  ;;  %v5862_v59 = vpop.eup %5861  ;;  %v3476_v22 = vadd.bf16 1065369472, %v5860_v21  ;;  %v7573_v10 = vadd.f32 %v7424_v42, %v3149_v49  ;;  %v2919_v56 = vmul.f32 %v6962_v44, %v2584_v17  ;;  %v2423_v43 = vmul.f32 %v6920_v32, %v2387_v13  ;;  %v8599_v21 = vld [vmem:[#allocation15_spill] sm:$0xff] }
 0x30f   : > { %5863 = vpow.bf16 %v5195_v37  ;;  %v3516_v31 = vmul.bf16 1065369472, %v5862_v59  ;;  %v7576_v2 = vadd.f32 %v2620_v7, %v2552_v63  ;;  %v2722_v41 = vmul.f32 %v6953_v38, %v2387_v13 }
 0x310   : > { %5865 = vrcp.bf16 %v3476_v22  ;;  %v2851_v6 = vadd.f32 %v2819_v47, %v2751_v34  ;;  %v2523_v0 = vmul.f32 %v6922_v50, %v2487_v24  ;;  %v2216_v14 = vmul.f32 %v7487_v15, %v8599_v21 }
 0x311   : > { %v2754_v42 = vadd.f32 %v2722_v41, %v2654_v30  ;;  %v2221_v49 = vmul.f32 %v7492_v52, %v7324_v57  ;;  %v2123_v17 = vadd.f32 1.0, %v7478_v29  ;;  %v2126_v63 = vadd.f32 1.0, %v7496_v27 }
 0x312   : > { %v2623_v59 = vmul.f32 %v6934_v53, %v2587_v39  ;;  %2349 = vst.msk [vmem:[#allocation2 + $0x161] sm:$0xff] %vm2231_vm5, %v2216_v14  ;;  %v2124_v37 = vadd.f32 1.0, %v5856_v45  ;;  %v7591_v34 = vadd.f32 %v7341_v51, %v7447_v8  ;;  %v7595_v15 = vadd.f32 %v7341_v51, %v7459_v5 }
 0x313   : > { %v2822_v22 = vmul.f32 %v6958_v36, %v2487_v24  ;;  %2354 = vst.msk [vmem:[#allocation2 + $0x1b1] sm:$0xff] %vm2231_vm5, %v2221_v49  ;;  %5867 = vrcp.f32 %v2123_v17  ;;  %v7601_v57 = vadd.f32 %v7341_v51, %v7470_v9  ;;  %v7605_v27 = vadd.f32 %v7341_v51, %v7476_v60 }
 0x314   : > { %v2555_v8 = vadd.f32 %v2523_v0, %v2423_v43  ;;  %5869 = vrcp.f32 %v2126_v63  ;;  %v5176_v52 = vmul.f32 -1.442695, %v7591_v34  ;;  %v5174_v5 = vmul.f32 -1.442695, %v7595_v15 }
 0x315   : > { %v2854_v30 = vadd.f32 %v2822_v22, %v2754_v42  ;;  %5871 = vrcp.f32 %v2124_v37  ;;  %v5177_v7 = vmul.f32 -1.442695, %v7601_v57  ;;  %v3150_v9 = vadd.f32 %v7519_v3, %v3050_v40 }
 0x316   : > { %v7612_v41 = vmul.bf16 %v3516_v31, %v7376_v48  ;;  %v2951_v60 = vadd.f32 %v2919_v56, %v2851_v6  ;;  %5873 = vpow2.f32 %v5176_v52  ;;  %v5175_v43 = vmul.f32 -1.442695, %v7605_v27 }
 0x317   : > { %v2922_v21 = vmul.f32 %v6962_v44, %v2587_v39  ;;  %v7617_v14 = vmul.f32 %v6966_v1, %v2387_v13  ;;  %5875 = vpow2.f32 %v5174_v5  ;;  %v7622_v49 = vadd.f32 %v2623_v59, %v2555_v8  ;;  %v8604_v5 = vld [vmem:[#allocation10_spill] sm:$0xff] }
 0x318   : > { %v5467_v29 = vpop.f32.mrb[28].mxu1  ;;  %8600 = vst [vmem:[#allocation8_spill] sm:$0xff] %v7612_v41  ;;  %v7625_v40 = vmul.f32 %v6968_v35, %v2487_v24  ;;  %v7628_v48 = vmul.f32 %v6972_v4, %v2587_v39  ;;  %5877 = vpow2.f32 %v5177_v7  ;;  %v3250_v59 = vadd.f32 %v7522_v23, %v3150_v9 }
 0x319   : > { %v1992_v45 = vpop.f32.mrb[29].mxu1  ;;  %v7620_v42 = vadd.f32 %v7341_v51, %v5467_v29  ;;  %v7630_v56 = vadd.f32 %v2922_v21, %v2854_v30  ;;  %v2385_v31 = vld [vmem:[#allocation2 + $0x160] sm:$0xff]  ;;  %5879 = vpow2.f32 %v5175_v43 }
 0x31a   : > { %v5468_v47 = vpop.f32.mrb[30].mxu1  ;;  %v5864_v3 = vpop.eup %5863  ;;  %v2485_v6 = vld [vmem:[#allocation2 + $0x161] sm:$0xff]  ;;  %v7633_v17 = vadd.f32 %v7341_v51, %v1992_v45  ;;  %v2421_v37 = vmul.f32 %v6920_v32, %v2385_v31  ;;  %v2720_v29 = vmul.f32 %v6953_v38, %v2385_v31  ;;  %v3251_v45 = vadd.f32 %v8604_v5, %v7556_v58 }
 0x31b   : > { %v1995_v0 = vpop.f32.mrb[31].mxu1  ;;  %8601 = vst [vmem:[#allocation11_spill] sm:$0xff] %v7620_v42  ;;  %v2585_v13 = vld [vmem:[#allocation2 + $0x162] sm:$0xff]  ;;  %v7636_v63 = vadd.f32 %v7341_v51, %v5468_v47  ;;  %v3477_v24 = vadd.bf16 1065369472, %v5864_v3  ;;  %v2521_v39 = vmul.f32 %v6922_v50, %v2485_v6  ;;  %v5866_v22 = vpop.eup %5865  ;;  %v3020_v7 = vmul.f32 %v6966_v1, %v2385_v31 }
 0x31c   : > { %8602 = vst [vmem:[#allocation15_spill] sm:$0xff] %v7633_v17  ;;  %v5180_v8 = vmul.f32 -1.442695, %v7620_v42  ;;  %v7644_v52 = vadd.f32 %v7341_v51, %v1995_v0  ;;  %v2621_v23 = vmul.f32 %v6934_v53, %v2585_v13  ;;  %v2752_v9 = vadd.f32 %v2720_v29, %v7576_v2 }
 0x31d   : > { %8603 = vst [vmem:[#allocation28_spill] sm:$0xff] %v7636_v63  ;;  %5881 = vrcp.bf16 %v3477_v24  ;;  %v2553_v30 = vadd.f32 %v2521_v39, %v2421_v37  ;;  %v5868_v47 = vpop.eup %5867  ;;  %v2820_v43 = vmul.f32 %v6958_v36, %v2485_v6  ;;  %v7653_v21 = vmul.f32 -1.442695, %v7633_v17  ;;  %v2390_v37 = vld [vmem:[#allocation2 + $0x1b0] sm:$0xff] }
 0x31e   : > { %v7656_v51 = vmul.f32 -1.442695, %v7636_v63  ;;  %v5870_v0 = vpop.eup %5869  ;;  %v3052_v58 = vadd.f32 %v3020_v7, %v2951_v60  ;;  %v3120_v24 = vmul.f32 %v6968_v35, %v2485_v6  ;;  %v2490_v39 = vld [vmem:[#allocation2 + $0x1b1] sm:$0xff]  ;;  %v3286_v31 = vadd.f32 %v7533_v55, %v7573_v10 }
 0x31f   : > { %v2653_v3 = vadd.f32 %v2621_v23, %v2553_v30  ;;  %v5872_v5 = vpop.eup %5871  ;;  %v3520_v2 = vmul.bf16 1065369472, %v5866_v22  ;;  %v2852_v29 = vadd.f32 %v2820_v43, %v2752_v9  ;;  %v2920_v11 = vmul.f32 %v6962_v44, %v2585_v13  ;;  %v2590_v30 = vld [vmem:[#allocation2 + $0x1b2] sm:$0xff] }
 0x320   : > { %v3287_v28 = vadd.f32 %v7533_v55, %v3250_v59  ;;  %v5874_v41 = vpop.eup %5873  ;;  %v3152_v17 = vadd.f32 %v3120_v24, %v3052_v58  ;;  %v3220_v60 = vmul.f32 %v6972_v4, %v2585_v13  ;;  %v7666_v6 = vadd.f32 %v7533_v55, %v3251_v45 }
 0x321   : > { %v2753_v63 = vadd.f32 %v7540_v20, %v2653_v3  ;;  %v5876_v23 = vpop.eup %5875  ;;  %v2952_v7 = vadd.f32 %v2920_v11, %v2852_v29  ;;  %v2426_v10 = vmul.f32 %v6920_v32, %v2390_v37  ;;  %v2526_v22 = vmul.f32 %v6922_v50, %v2490_v39 }
 0x322   : > { %v2219_v9 = vmul.f32 %v5868_v47, %v7344_v25  ;;  %v5878_v43 = vpop.eup %5877  ;;  %v3252_v42 = vadd.f32 %v3220_v60, %v3152_v17  ;;  %v2222_v20 = vmul.f32 %v5870_v0, %v7350_v18  ;;  %v2220_v13 = vmul.f32 %v5872_v5, %v7415_v54 }
 0x323   : > { %v2853_v59 = vadd.f32 %v7543_v12, %v2753_v63  ;;  %v7675_v3 = vmul.bf16 %v3520_v2, %v7441_v61  ;;  %v3053_v45 = vadd.f32 %v7559_v26, %v2952_v7  ;;  %v2626_v11 = vmul.f32 %v6934_v53, %v2590_v30  ;;  %v5880_v24 = vpop.eup %5879 }
 0x324   : > { %2352 = vst.msk [vmem:[#allocation2 + $0x191] sm:$0xff] %vm2231_vm5, %v2219_v9  ;;  %v2129_v58 = vadd.f32 1.0, %v5874_v41  ;;  %v3289_v12 = vadd.f32 %v7533_v55, %v3252_v42  ;;  %v7683_v17 = vmul.f32 %v6953_v38, %v2390_v37  ;;  %2355 = vst.msk [vmem:[#allocation2 + $0x1c1] sm:$0xff] %vm2231_vm5, %v2222_v20  ;;  %v2127_v18 = vadd.f32 1.0, %v5876_v23 }
 0x325   : > { %8605 = vst [vmem:[#allocation10_spill] sm:$0xff] %v7675_v3  ;;  %v2953_v25 = vadd.f32 %v7553_v62, %v2853_v59  ;;  %2353 = vst.msk [vmem:[#allocation2 + $0x1a1] sm:$0xff] %vm2231_vm5, %v2220_v13  ;;  %v3153_v54 = vadd.f32 %v7562_v46, %v3053_v45  ;;  %v2558_v61 = vadd.f32 %v2526_v22, %v2426_v10  ;;  %v2130_v41 = vadd.f32 1.0, %v5878_v43 }
 0x326   : > { %v7689_v26 = vmul.f32 %v6958_v36, %v2490_v39  ;;  %v7692_v62 = vpack.c.bf16 %v3289_v12, %v3289_v12  ;;  %v7695_v42 = vmul.f32 %v6962_v44, %v2590_v30  ;;  %5883 = vpow2.f32 %v5180_v8 }
 0x327   : > { %v3054_v63 = vadd.f32 %v7617_v14, %v2953_v25  ;;  %v3253_v0 = vadd.f32 %v7567_v33, %v3153_v54  ;;  %v7701_v5 = vmul.f32 %v6966_v1, %v2390_v37  ;;  %5885 = vrcp.f32 %v2129_v58 }
 0x328   : > { %8606 = vst [vmem:[#allocation29_spill] sm:$0xff] %v7692_v62  ;;  %v7697_v47 = vpop.eup %5881  ;;  %v2128_v46 = vadd.f32 1.0, %v5880_v24  ;;  %v5199_v29 = vmul.bf16 3216621497, %v7692_v62  ;;  %v7706_v14 = vmul.f32 %v6968_v35, %v2490_v39  ;;  %5887 = vrcp.f32 %v2127_v18  ;;  %v8608_v62 = vld [vmem:[#allocation13_spill] sm:$0xff] }
 0x329   : > { %v3154_v2 = vadd.f32 %v7625_v40, %v3054_v63  ;;  %v3290_v60 = vadd.f32 %v7533_v55, %v3253_v0  ;;  %v2658_v8 = vadd.f32 %v2626_v11, %v2558_v61  ;;  %v7710_v23 = vmul.f32 %v6972_v4, %v2590_v30 }
 0x32a   : > { %5889 = vrcp.f32 %v2130_v41  ;;  %v7713_v40 = vpack.c.bf16 %v3286_v31, %v3286_v31  ;;  %v7715_v22 = vpack.c.bf16 %v3287_v28, %v3287_v28 }
 0x32b   : > { %5891 = vpow.bf16 %v5199_v29  ;;  %v2388_v37 = vld [vmem:[#allocation2 + $0x190] sm:$0xff]  ;;  %v7717_v39 = vpack.c.bf16 %v3290_v60, %v3290_v60  ;;  %v7721_v59 = vld [vmem:[#allocation2 + $0x1c0] sm:$0xff]  ;;  %v7729_v28 = vadd.f32 %v7628_v48, %v3154_v2 }
 0x32c   : > { %v2488_v7 = vld [vmem:[#allocation2 + $0x191] sm:$0xff]  ;;  %v2424_v9 = vmul.f32 %v6920_v32, %v2388_v37  ;;  %5893 = vrcp.f32 %v2128_v46  ;;  %v2723_v30 = vmul.f32 %v6953_v38, %v2388_v37  ;;  %v3023_v20 = vmul.f32 %v6966_v1, %v2388_v37  ;;  %v7725_v13 = vld [vmem:[#allocation2 + $0x1c1] sm:$0xff] }
 0x32d   : > { %v2588_v10 = vld [vmem:[#allocation2 + $0x192] sm:$0xff]  ;;  %8607 = vst [vmem:[#allocation30_spill] sm:$0xff] %v7717_v39  ;;  %v2524_v43 = vmul.f32 %v6922_v50, %v2488_v7  ;;  %5895 = vpow2.f32 %v7653_v21  ;;  %v5200_v31 = vmul.bf16 3216621497, %v7717_v39  ;;  %v2823_v58 = vmul.f32 %v6958_v36, %v2488_v7  ;;  %v7734_v24 = vld [vmem:[#allocation2 + $0x1c2] sm:$0xff] }
 0x32e   : > { %v2624_v11 = vmul.f32 %v6934_v53, %v2588_v10  ;;  %v2755_v25 = vadd.f32 %v2723_v30, %v7622_v49  ;;  %v3055_v12 = vadd.f32 %v3023_v20, %v7630_v56  ;;  %v3123_v18 = vmul.f32 %v6968_v35, %v2488_v7  ;;  %v2389_v48 = vld [vmem:[#allocation2 + $0x1a0] sm:$0xff] }
 0x32f   : > { %v2556_v45 = vadd.f32 %v2524_v43, %v2424_v9  ;;  %v2726_v21 = vmul.f32 %v6953_v38, %v7721_v59  ;;  %v2489_v54 = vld [vmem:[#allocation2 + $0x1a1] sm:$0xff]  ;;  %5897 = vpow.bf16 %v5200_v31  ;;  %v2923_v41 = vmul.f32 %v6962_v44, %v2588_v10 }
 0x330   : > { %v2589_v61 = vld [vmem:[#allocation2 + $0x1a2] sm:$0xff]  ;;  %v3223_v63 = vmul.f32 %v6972_v4, %v2588_v10  ;;  %v2826_v0 = vmul.f32 %v6958_v36, %v7725_v13  ;;  %v5884_v46 = vpop.eup %5883  ;;  %v2855_v2 = vadd.f32 %v2823_v58, %v2755_v25  ;;  %v3155_v56 = vadd.f32 %v3123_v18, %v3055_v12 }
 0x331   : > { %v2656_v49 = vadd.f32 %v2624_v11, %v2556_v45  ;;  %v2758_v29 = vadd.f32 %v2726_v21, %v2658_v8  ;;  %v5886_v60 = vpop.eup %5885  ;;  %v2926_v37 = vmul.f32 %v6962_v44, %v7734_v24  ;;  %v2425_v7 = vmul.f32 %v6920_v32, %v2389_v48 }
 0x332   : > { %v2525_v9 = vmul.f32 %v6922_v50, %v2489_v54  ;;  %v2625_v43 = vmul.f32 %v6934_v53, %v2589_v61  ;;  %v5888_v30 = vpop.eup %5887  ;;  %v2955_v10 = vadd.f32 %v2923_v41, %v2855_v2  ;;  %v3255_v20 = vadd.f32 %v3223_v63, %v3155_v56 }
 0x333   : > { %v2858_v31 = vadd.f32 %v2826_v0, %v2758_v29  ;;  %v2724_v33 = vmul.f32 %v6953_v38, %v2389_v48  ;;  %v2824_v8 = vmul.f32 %v6958_v36, %v2489_v54  ;;  %v2924_v58 = vmul.f32 %v6962_v44, %v2589_v61 }
 0x334   : > { %v5890_v45 = vpop.eup %5889  ;;  %v2557_v11 = vadd.f32 %v2525_v9, %v2425_v7  ;;  %v3024_v25 = vmul.f32 %v6966_v1, %v2389_v48  ;;  %v3292_v12 = vadd.f32 %v7533_v55, %v3255_v20  ;;  %v3124_v39 = vmul.f32 %v6968_v35, %v2489_v54 }
 0x335   : > { %v2958_v18 = vadd.f32 %v2926_v37, %v2858_v31  ;;  %v2756_v21 = vadd.f32 %v2724_v33, %v2656_v49  ;;  %v3224_v2 = vmul.f32 %v6972_v4, %v2589_v61  ;;  %v2225_v56 = vmul.f32 %v5886_v60, %v7591_v34 }
 0x336   : > { %v5892_v3 = vpop.eup %5891  ;;  %v2657_v63 = vadd.f32 %v2625_v43, %v2557_v11  ;;  %v3056_v0 = vadd.f32 %v3024_v25, %v2955_v10  ;;  %v7758_v9 = vpack.c.bf16 %v3292_v12, %v3292_v12  ;;  %v2223_v54 = vmul.f32 %v5888_v30, %v7595_v15 }
 0x337   : > { %v5894_v41 = vpop.eup %5893  ;;  %v3481_v7 = vadd.bf16 1065369472, %v5892_v3  ;;  %v3059_v48 = vadd.f32 %v8608_v62, %v2958_v18  ;;  %v2856_v44 = vadd.f32 %v2824_v8, %v2756_v21  ;;  %2358 = vst.msk [vmem:[#allocation2 + $0x211] sm:$0xff] %vm2231_vm5, %v2225_v56  ;;  %v2226_v49 = vmul.f32 %v5890_v45, %v7601_v57  ;;  %v8614_v8 = vld [vmem:[#allocation17_spill] sm:$0xff] }
 0x338   : > { %v5896_v29 = vpop.eup %5895  ;;  %v2757_v37 = vadd.f32 %v7683_v17, %v2657_v63  ;;  %v3156_v33 = vadd.f32 %v3124_v39, %v3056_v0  ;;  %v5202_v61 = vmul.bf16 3216621497, %v7758_v9  ;;  %v2224_v3 = vmul.f32 %v5894_v41, %v7605_v27  ;;  %2356 = vst.msk [vmem:[#allocation2 + $0x1f1] sm:$0xff] %vm2231_vm5, %v2223_v54 }
 0x339   : > { %5899 = vrcp.bf16 %v3481_v7  ;;  %v2956_v34 = vadd.f32 %v2924_v58, %v2856_v44  ;;  %2359 = vst.msk [vmem:[#allocation2 + $0x221] sm:$0xff] %vm2231_vm5, %v2226_v49  ;;  %v2133_v17 = vadd.f32 1.0, %v5884_v46  ;;  %v7772_v62 = vpack.c.bf16 %v7666_v6, %v7666_v6  ;;  %v8610_v44 = vld [vmem:[#allocation16_spill] sm:$0xff] }
 0x33a   : > { %v2857_v60 = vadd.f32 %v7689_v26, %v2757_v37  ;;  %v3256_v43 = vadd.f32 %v3224_v2, %v3156_v33  ;;  %v7774_v15 = vpop.eup %5897  ;;  %5901 = vpow.bf16 %v5202_v61  ;;  %2357 = vst.msk [vmem:[#allocation2 + $0x201] sm:$0xff] %vm2231_vm5, %v2224_v3  ;;  %v3159_v27 = vadd.f32 %v8610_v44, %v3059_v48 }
 0x33b   : > { %8609 = vst [vmem:[#allocation13_spill] sm:$0xff] %v7774_v15  ;;  %v3057_v57 = vadd.f32 %v7701_v5, %v2956_v34  ;;  %v3291_v26 = vadd.f32 %v7533_v55, %v7729_v28  ;;  %v2131_v30 = vadd.f32 1.0, %v5896_v29  ;;  %v5179_v46 = vmul.f32 -1.442695, %v7644_v52  ;;  %v8622_v15 = vld [vmem:[#allocation15_spill] sm:$0xff] }
 0x33c   : > { %v3293_v39 = vadd.f32 %v7533_v55, %v3256_v43  ;;  %v8611_v10 = vmul.bf16 1065369472, %v7697_v47  ;;  %v2957_v5 = vadd.f32 %v7695_v42, %v2857_v60  ;;  %v3259_v58 = vadd.f32 %v8614_v8, %v3159_v27 }
 0x33d   : > { %v3157_v28 = vadd.f32 %v7706_v14, %v3057_v57  ;;  %v3026_v12 = vmul.f32 %v6966_v1, %v7721_v59  ;;  %5903 = vrcp.f32 %v2133_v17  ;;  %v7803_v18 = vpack.c.bf16 %v3291_v26, %v3291_v26  ;;  %v8617_v57 = vld [vmem:[#allocation5_spill] sm:$0xff] }
 0x33e   : > { %v7787_v20 = vmul.bf16 %v8611_v10, %v7550_v16  ;;  %v7793_v11 = vpack.c.bf16 %v3293_v39, %v3293_v39  ;;  %v7801_v16 = vmul.f32 %v6968_v35, %v7725_v13  ;;  %v2394_v42 = vld [vmem:[#allocation2 + $0x210] sm:$0xff]  ;;  %5905 = vrcp.f32 %v2131_v30 }
 0x33f   : > { %v2494_v47 = vld [vmem:[#allocation2 + $0x211] sm:$0xff]  ;;  %8615 = vst [vmem:[#allocation17_spill] sm:$0xff] %v7803_v18  ;;  %v2430_v21 = vmul.f32 %v6920_v32, %v2394_v42  ;;  %v7810_v63 = vmul.f32 %v6972_v4, %v7734_v24  ;;  %5907 = vpow2.f32 %v7656_v51  ;;  %v7813_v2 = vadd.f32 %v3026_v12, %v2957_v5 }
 0x340   : > { %8612 = vst [vmem:[#allocation16_spill] sm:$0xff] %v7787_v20  ;;  %8613 = vst [vmem:[#allocation31_spill] sm:$0xff] %v7793_v11  ;;  %v2530_v41 = vmul.f32 %v6922_v50, %v2494_v47  ;;  %v2594_v59 = vld [vmem:[#allocation2 + $0x212] sm:$0xff]  ;;  %v5203_v7 = vmul.bf16 3216621497, %v7793_v11  ;;  %5909 = vpow2.f32 %v5179_v46  ;;  %v7818_v48 = vadd.f32 %v7710_v23, %v3157_v28  ;;  %v7826_v49 = vld [vmem:[#allocation2 + $0x220] sm:$0xff] }
 0x341   : > { %v2392_v0 = vld [vmem:[#allocation2 + $0x1f0] sm:$0xff]  ;;  %v7821_v37 = vadd.f32 %v7533_v55, %v3259_v58  ;;  %v2630_v60 = vmul.f32 %v6934_v53, %v2594_v59  ;;  %v2729_v23 = vmul.f32 %v6953_v38, %v2394_v42  ;;  %v7832_v43 = vmul.f32 %v6958_v36, %v2494_v47  ;;  %v7834_v17 = vld [vmem:[#allocation2 + $0x221] sm:$0xff] }
 0x342   : > { %v2492_v13 = vld [vmem:[#allocation2 + $0x1f1] sm:$0xff]  ;;  %v2428_v24 = vmul.f32 %v6920_v32, %v2392_v0  ;;  %v2727_v51 = vmul.f32 %v6953_v38, %v2392_v0  ;;  %v2562_v3 = vadd.f32 %v2530_v41, %v2430_v21  ;;  %v7837_v44 = vmul.f32 %v8617_v57, %v2594_v59  ;;  %v2595_v8 = vld [vmem:[#allocation2 + $0x222] sm:$0xff] }
 0x343   : > { %v2528_v33 = vmul.f32 %v6922_v50, %v2492_v13  ;;  %v2592_v54 = vld [vmem:[#allocation2 + $0x1f2] sm:$0xff]  ;;  %v2827_v30 = vmul.f32 %v6958_v36, %v2492_v13  ;;  %5911 = vpow.bf16 %v5203_v7  ;;  %v7842_v10 = vmul.f32 %v6966_v1, %v2394_v42  ;;  %v2393_v0 = vld [vmem:[#allocation2 + $0x200] sm:$0xff] }
 0x344   : > { %v5900_v34 = vpop.eup %5899  ;;  %v8618_v26 = vld [vmem:[#allocation9_spill] sm:$0xff]  ;;  %v2628_v5 = vmul.f32 %v6934_v53, %v2592_v54  ;;  %v2431_v28 = vmul.f32 %v6920_v32, %v7826_v49  ;;  %v2531_v41 = vmul.f32 %v6922_v50, %v7834_v17  ;;  %v2662_v13 = vadd.f32 %v2630_v60, %v2562_v3  ;;  %v8621_v11 = vld [vmem:[#allocation11_spill] sm:$0xff] }
 0x345   : > { %v2560_v27 = vadd.f32 %v2528_v33, %v2428_v24  ;;  %v2759_v39 = vadd.f32 %v2727_v51, %v8618_v26  ;;  %v5902_v46 = vpop.eup %5901  ;;  %v3530_v58 = vmul.bf16 1065369472, %v5900_v34  ;;  %v2493_v24 = vld [vmem:[#allocation2 + $0x201] sm:$0xff]  ;;  %v3129_v7 = vmul.f32 %v6968_v35, %v2494_v47 }
 0x346   : > { %v3484_v12 = vadd.bf16 1065369472, %v5902_v46  ;;  %v7851_v42 = vmul.f32 %v6972_v4, %v2594_v59  ;;  %v2927_v33 = vmul.f32 %v8617_v57, %v2592_v54  ;;  %v2631_v34 = vmul.f32 %v6934_v53, %v2595_v8  ;;  %v8619_v54 = vld [vmem:[#allocation29_spill] sm:$0xff] }
 0x347   : > { %v2859_v21 = vadd.f32 %v2827_v30, %v2759_v39  ;;  %v5904_v51 = vpop.eup %5903  ;;  %v2660_v26 = vadd.f32 %v2628_v5, %v2560_v27  ;;  %v2730_v39 = vmul.f32 %v6953_v38, %v7826_v49  ;;  %v2593_v30 = vld [vmem:[#allocation2 + $0x202] sm:$0xff]  ;;  %v2830_v3 = vmul.f32 %v6958_v36, %v7834_v17 }
 0x348   : > { %5913 = vrcp.bf16 %v3484_v12  ;;  %v5906_v46 = vpop.eup %5905  ;;  %v2429_v47 = vmul.f32 %v6920_v32, %v2393_v0  ;;  %v2529_v59 = vmul.f32 %v6922_v50, %v2493_v24  ;;  %v7862_v29 = vmul.bf16 %v3530_v58, %v8619_v54 }
 0x349   : > { %v2959_v14 = vadd.f32 %v2927_v33, %v2859_v21  ;;  %v5908_v60 = vpop.eup %5907  ;;  %v2563_v27 = vadd.f32 %v2531_v41, %v2431_v28  ;;  %v2930_v5 = vmul.f32 %v8617_v57, %v2595_v8  ;;  %v2728_v12 = vmul.f32 %v6953_v38, %v2393_v0 }
 0x34a   : > { %8620 = vst [vmem:[#allocation5_spill] sm:$0xff] %v7862_v29  ;;  %v5910_v61 = vpop.eup %5909  ;;  %v2762_v25 = vadd.f32 %v2730_v39, %v2662_v13  ;;  %v2561_v45 = vadd.f32 %v2529_v59, %v2429_v47  ;;  %v2629_v21 = vmul.f32 %v6934_v53, %v2593_v30  ;;  %v3028_v33 = vmul.f32 %v6966_v1, %v2393_v0 }
 0x34b   : > { %v2760_v31 = vadd.f32 %v2728_v12, %v2660_v26  ;;  %v2828_v6 = vmul.f32 %v6958_v36, %v2493_v24  ;;  %v2229_v20 = vmul.f32 %v5904_v51, %v8621_v11  ;;  %v2227_v58 = vmul.f32 %v5906_v46, %v8622_v15 }
 0x34c   : > { %v2661_v54 = vadd.f32 %v2629_v21, %v2561_v45  ;;  %v3060_v28 = vadd.f32 %v3028_v33, %v2959_v14  ;;  %v3128_v41 = vmul.f32 %v6968_v35, %v2493_v24  ;;  %v2134_v56 = vadd.f32 1.0, %v5908_v60  ;;  %v8628_v60 = vld [vmem:[#allocation25_spill] sm:$0xff] }
 0x34d   : > { %v2860_v18 = vadd.f32 %v2828_v6, %v2760_v31  ;;  %v2928_v13 = vmul.f32 %v8617_v57, %v2593_v30  ;;  %2362 = vst.msk [vmem:[#allocation2 + $0x251] sm:$0xff] %vm2231_vm5, %v2229_v20  ;;  %2360 = vst.msk [vmem:[#allocation2 + $0x231] sm:$0xff] %vm2231_vm5, %v2227_v58  ;;  %v2132_v0 = vadd.f32 1.0, %v5910_v61  ;;  %v3158_v26 = vadd.f32 %v7801_v16, %v7813_v2 }
 0x34e   : > { %v2761_v39 = vadd.f32 %v2729_v23, %v2661_v54  ;;  %v3160_v11 = vadd.f32 %v3128_v41, %v3060_v28  ;;  %v3228_v15 = vmul.f32 %v6972_v4, %v2593_v30  ;;  %5915 = vrcp.f32 %v2134_v56  ;;  %v7878_v45 = vpop.eup %5911 }
 0x34f   : > { %v3030_v6 = vmul.f32 %v6966_v1, %v7826_v49  ;;  %v2960_v31 = vadd.f32 %v2928_v13, %v2860_v18  ;;  %5917 = vrcp.f32 %v2132_v0  ;;  %v3294_v20 = vadd.f32 %v7533_v55, %v7818_v48 }
 0x350   : > { %v3130_v14 = vmul.f32 %v6968_v35, %v7834_v17  ;;  %v2861_v16 = vadd.f32 %v7832_v43, %v2761_v39  ;;  %v3260_v2 = vadd.f32 %v3228_v15, %v3160_v11  ;;  %v3258_v61 = vadd.f32 %v7810_v63, %v3158_v26 }
 0x351   : > { %v2663_v23 = vadd.f32 %v2631_v34, %v2563_v27  ;;  %v3230_v24 = vmul.f32 %v6972_v4, %v2595_v8  ;;  %v3061_v49 = vadd.f32 %v7842_v10, %v2960_v31  ;;  %v2862_v51 = vadd.f32 %v2830_v3, %v2762_v25  ;;  %v8624_v34 = vld [vmem:[#allocation22_spill] sm:$0xff]  ;;  %v8626_v3 = vld [vmem:[#allocation20_spill] sm:$0xff] }
 0x352   : > { %v2961_v30 = vadd.f32 %v7837_v44, %v2861_v16  ;;  %v3297_v48 = vadd.f32 %v7533_v55, %v3260_v2  ;;  %v7895_v17 = vpack.c.bf16 %v7821_v37, %v7821_v37  ;;  %v7898_v46 = vpack.c.bf16 %v3294_v20, %v3294_v20  ;;  %v8632_v31 = vld [vmem:[#allocation6_spill] sm:$0xff] }
 0x353   : > { %v5914_v18 = vpop.eup %5913  ;;  %v3161_v63 = vadd.f32 %v3129_v7, %v3061_v49  ;;  %v8625_v47 = vmul.bf16 3216621497, %v8624_v34  ;;  %v3295_v44 = vadd.f32 %v7533_v55, %v3258_v61  ;;  %v8627_v59 = vmul.bf16 3216621497, %v8626_v3 }
 0x354   : > { %8623 = vst [vmem:[#allocation9_spill] sm:$0xff] %v7895_v17  ;;  %v7902_v8 = vpack.c.bf16 %v3297_v48, %v3297_v48  ;;  %v2398_v10 = vld [vmem:[#allocation2 + $0x250] sm:$0xff]  ;;  %v3502_v37 = vmul.bf16 1065369472, %v8628_v60  ;;  %v3536_v27 = vmul.bf16 1065369472, %v5914_v18  ;;  %v3062_v12 = vadd.f32 %v3030_v6, %v2961_v30 }
 0x355   : > { %5919 = vpow.bf16 %v8625_v47  ;;  %v2498_v25 = vld [vmem:[#allocation2 + $0x251] sm:$0xff]  ;;  %v3261_v7 = vadd.f32 %v7851_v42, %v3161_v63  ;;  %v8629_v21 = vmul.bf16 3216621497, %v7484_v19  ;;  %v2962_v33 = vadd.f32 %v2930_v5, %v2862_v51 }
 0x356   : > { %5921 = vpow.bf16 %v8627_v59  ;;  %v5207_v58 = vmul.bf16 3216621497, %v7902_v8  ;;  %v2598_v54 = vld [vmem:[#allocation2 + $0x252] sm:$0xff]  ;;  %v8630_v28 = vmul.bf16 3216621497, %v7713_v40  ;;  %v2434_v0 = vmul.f32 %v6920_v32, %v2398_v10 }
 0x357   : > { %5923 = vpow.bf16 %v8629_v21  ;;  %v5206_v41 = vmul.bf16 3216621497, %v7895_v17  ;;  %v3298_v13 = vadd.f32 %v7533_v55, %v3261_v7  ;;  %v2534_v26 = vmul.f32 %v6922_v50, %v2498_v25  ;;  %v2396_v39 = vld [vmem:[#allocation2 + $0x230] sm:$0xff] }
 0x358   : > { %5925 = vpow.bf16 %v8630_v28  ;;  %v2496_v42 = vld [vmem:[#allocation2 + $0x231] sm:$0xff]  ;;  %v8631_v11 = vmul.bf16 3216621497, %v7715_v22  ;;  %v5916_v5 = vpop.eup %5915  ;;  %v7920_v15 = vpack.c.bf16 %v3295_v44, %v3295_v44  ;;  %v5204_v6 = vmul.bf16 3216621497, %v7898_v46 }
 0x359   : > { %v7924_v20 = vmul.bf16 %v3502_v37, %v8632_v31  ;;  %v5918_v16 = vpop.eup %5917  ;;  %v7927_v2 = vmul.bf16 %v3536_v27, %v7758_v9  ;;  %v3162_v61 = vadd.f32 %v3130_v14, %v3062_v12  ;;  %v7929_v49 = vpack.c.bf16 %v3298_v13, %v3298_v13  ;;  %v2596_v60 = vld [vmem:[#allocation2 + $0x232] sm:$0xff]  ;;  %v8633_v27 = vld [vmem:[#allocation28_spill] sm:$0xff] }
 0x35a   : > { %5927 = vpow.bf16 %v8631_v11  ;;  %v2634_v18 = vmul.f32 %v6934_v53, %v2598_v54  ;;  %v7933_v51 = vmul.f32 %v6953_v38, %v2398_v10  ;;  %v2432_v30 = vmul.f32 %v6920_v32, %v2396_v39 }
 0x35b   : > { %5929 = vpow.bf16 %v5207_v58  ;;  %v2532_v48 = vmul.f32 %v6922_v50, %v2496_v42  ;;  %v2731_v63 = vmul.f32 %v6953_v38, %v2396_v39  ;;  %v5208_v47 = vmul.bf16 3216621497, %v7929_v49 }
 0x35c   : > { %v2566_v44 = vadd.f32 %v2534_v26, %v2434_v0  ;;  %v7940_v9 = vmul.f32 %v6958_v36, %v2498_v25  ;;  %v3031_v14 = vmul.f32 %v6966_v1, %v2396_v39  ;;  %v7944_v59 = vmul.f32 %v8617_v57, %v2598_v54 }
 0x35d   : > { %v2763_v37 = vadd.f32 %v2731_v63, %v2663_v23  ;;  %v2230_v12 = vmul.f32 %v5916_v5, %v8633_v27  ;;  %v2228_v7 = vmul.f32 %v5918_v16, %v7644_v52  ;;  %v7949_v21 = vmul.f32 %v6966_v1, %v2398_v10  ;;  %v8636_v63 = vld [vmem:[#allocation17_spill] sm:$0xff] }
 0x35e   : > { %v3063_v58 = vadd.f32 %v3031_v14, %v2962_v33  ;;  %v3131_v28 = vmul.f32 %v6968_v35, %v2496_v42  ;;  %v3262_v13 = vadd.f32 %v3230_v24, %v3162_v61  ;;  %v7953_v26 = vmul.f32 %v6968_v35, %v2498_v25 }
 0x35f   : > { %v7956_v39 = vmul.f32 %v6972_v4, %v2598_v54  ;;  %v2564_v11 = vadd.f32 %v2532_v48, %v2432_v30  ;;  %v2831_v23 = vmul.f32 %v6958_v36, %v2496_v42  ;;  %2363 = vst.msk [vmem:[#allocation2 + $0x261] sm:$0xff] %vm2231_vm5, %v2230_v12  ;;  %2361 = vst.msk [vmem:[#allocation2 + $0x241] sm:$0xff] %vm2231_vm5, %v2228_v7  ;;  %5931 = vpow.bf16 %v5208_v47 }
 0x360   : > { %v5920_v0 = vpop.eup %5919  ;;  %v3163_v10 = vadd.f32 %v3131_v28, %v3063_v58  ;;  %v3231_v24 = vmul.f32 %v6972_v4, %v2596_v60  ;;  %v3299_v33 = vadd.f32 %v7533_v55, %v3262_v13  ;;  %v2632_v54 = vmul.f32 %v6934_v53, %v2596_v60 }
 0x361   : > { %v7961_v52 = vpop.eup %5921  ;;  %v2863_v5 = vadd.f32 %v2831_v23, %v2763_v37  ;;  %v8634_v31 = vmul.bf16 3216621497, %v7772_v62  ;;  %v5205_v42 = vmul.bf16 3216621497, %v7920_v15  ;;  %v2666_v61 = vadd.f32 %v2634_v18, %v2566_v44  ;;  %v8638_v44 = vld [vmem:[#allocation7_spill] sm:$0xff] }
 0x362   : > { %v7965_v25 = vpop.eup %5923  ;;  %v3263_v30 = vadd.f32 %v3231_v24, %v3163_v10  ;;  %v7973_v48 = vpack.c.bf16 %v3299_v33, %v3299_v33  ;;  %v8637_v47 = vmul.bf16 3216621497, %v8636_v63  ;;  %v2664_v27 = vadd.f32 %v2632_v54, %v2564_v11 }
 0x363   : > { %5933 = vpow.bf16 %v8634_v31  ;;  %v7971_v16 = vpop.eup %5925  ;;  %v2931_v12 = vmul.f32 %v8617_v57, %v2596_v60  ;;  %v3471_v37 = vadd.bf16 1065369472, %v5920_v0  ;;  %v3472_v18 = vadd.bf16 1065369472, %v7961_v52  ;;  %v8641_v31 = vld [vmem:[#allocation21_spill] sm:$0xff] }
 0x364   : > { %8635 = vst [vmem:[#allocation29_spill] sm:$0xff] %v7973_v48  ;;  %5935 = vpow.bf16 %v8637_v47  ;;  %v3300_v58 = vadd.f32 %v7533_v55, %v3263_v30  ;;  %v5209_v28 = vmul.bf16 3216621497, %v7973_v48  ;;  %v8639_v13 = vadd.bf16 1065369472, %v8638_v44 }
 0x365   : > { %v7977_v14 = vpop.eup %5927  ;;  %5937 = vpow.bf16 %v5204_v6  ;;  %v2963_v23 = vadd.f32 %v2931_v12, %v2863_v5  ;;  %v3475_v10 = vadd.bf16 1065369472, %v7965_v25  ;;  %v8642_v12 = vld [vmem:[#allocation8_spill] sm:$0xff] }
 0x366   : > { %v5930_v7 = vpop.eup %5929  ;;  %5939 = vrcp.bf16 %v8639_v13  ;;  %v7987_v60 = vpack.c.bf16 %v3300_v58, %v3300_v58  ;;  %v2698_v6 = vld [vmem:[#allocation2 + $0x260] sm:$0xff]  ;;  %v8643_v58 = vld [vmem:[#allocation12_spill] sm:$0xff] }
 0x367   : > { %5941 = vpow.bf16 %v5205_v42  ;;  %v3489_v24 = vadd.bf16 1065369472, %v5930_v7  ;;  %v2798_v0 = vld [vmem:[#allocation2 + $0x261] sm:$0xff]  ;;  %v2734_v52 = vmul.f32 %v6953_v38, %v2698_v6 }
 0x368   : > { %8640 = vst [vmem:[#allocation11_spill] sm:$0xff] %v7987_v60  ;;  %5943 = vpow.bf16 %v5206_v41  ;;  %v2898_v33 = vld [vmem:[#allocation2 + $0x262] sm:$0xff]  ;;  %v5210_v30 = vmul.bf16 3216621497, %v7987_v60  ;;  %v8644_v41 = vunpack.c.l.bf16 %v8643_v58  ;;  %v2834_v56 = vmul.f32 %v6958_v36, %v2798_v0 }
 0x369   : > { %v2397_v54 = vld [vmem:[#allocation2 + $0x240] sm:$0xff]  ;;  %5945 = vrcp.bf16 %v3471_v37  ;;  %v2766_v13 = vadd.f32 %v2734_v52, %v2666_v61  ;;  %v2934_v42 = vmul.f32 %v8617_v57, %v2898_v33 }
 0x36a   : > { %v2497_v5 = vld [vmem:[#allocation2 + $0x241] sm:$0xff]  ;;  %5947 = vpow.bf16 %v5209_v28  ;;  %v8000_v44 = vsel %vm2231_vm5, %v8644_v41, 0.0  ;;  %v2433_v37 = vmul.f32 %v6920_v32, %v2397_v54  ;;  %v2732_v25 = vmul.f32 %v6953_v38, %v2397_v54  ;;  %v8645_v28 = vld [vmem:[#allocation14_spill] sm:$0xff]  ;;  %v8010_v11 = vpop.eup %5931 }
 0x36b   : > { %v2597_v47 = vld [vmem:[#allocation2 + $0x242] sm:$0xff]  ;;  %v2533_v43 = vmul.f32 %v6922_v50, %v2497_v5  ;;  %5949 = vrcp.bf16 %v3489_v24  ;;  %v8646_v55 = vunpack.c.l.bf16 %v8645_v28  ;;  %v2866_v41 = vadd.f32 %v2834_v56, %v2766_v13 }
 0x36c   : > { %v2633_v61 = vmul.f32 %v6934_v53, %v2597_v47  ;;  %v3032_v52 = vmul.f32 %v6966_v1, %v2397_v54  ;;  %5951 = vpow.bf16 %v5210_v30  ;;  %v3034_v50 = vmul.f32 %v6966_v1, %v2698_v6  ;;  %v8647_v30 = vld [vmem:[#allocation23_spill] sm:$0xff] }
 0x36d   : > { %v3626_v7 = vsel %vm2231_vm5, %v8646_v55, 0.0  ;;  %v2565_v58 = vadd.f32 %v2533_v43, %v2433_v37  ;;  %v2764_v24 = vadd.f32 %v2732_v25, %v2664_v27  ;;  %v2832_v17 = vmul.f32 %v6958_v36, %v2497_v5  ;;  %v8650_v37 = vld [vmem:[#allocation26_spill] sm:$0xff] }
 0x36e   : > { %v5934_v32 = vpop.eup %5933  ;;  %v2966_v29 = vadd.f32 %v2934_v42, %v2866_v41  ;;  %v3064_v60 = vadd.f32 %v3032_v52, %v2963_v23  ;;  %v3132_v55 = vmul.f32 %v6968_v35, %v2497_v5  ;;  %v3134_v56 = vmul.f32 %v6968_v35, %v2798_v0 }
 0x36f   : > { %v5936_v38 = vpop.eup %5935  ;;  %v2665_v28 = vadd.f32 %v2633_v61, %v2565_v58  ;;  %v2864_v53 = vadd.f32 %v2832_v17, %v2764_v24  ;;  %v2932_v43 = vmul.f32 %v8617_v57, %v2597_v47  ;;  %5953 = vrcp.bf16 %v3472_v18  ;;  %v8648_v18 = vld [vmem:[#allocation24_spill] sm:$0xff] }
 0x370   : > { %v8017_v48 = vpop.eup %5937  ;;  %v3067_v1 = vadd.f32 %v8647_v30, %v2966_v29  ;;  %v3164_v36 = vadd.f32 %v3132_v55, %v3064_v60  ;;  %v3232_v6 = vmul.f32 %v6972_v4, %v2597_v47  ;;  %v3234_v23 = vmul.f32 %v6972_v4, %v2898_v33 }
 0x371   : > { %v5940_v54 = vpop.eup %5939  ;;  %v2765_v27 = vadd.f32 %v7933_v51, %v2665_v28  ;;  %v2964_v5 = vadd.f32 %v2932_v43, %v2864_v53  ;;  %v3480_v42 = vadd.bf16 1065369472, %v5934_v32  ;;  %5955 = vrcp.bf16 %v3475_v10  ;;  %v8652_v53 = vld [vmem:[#allocation18_spill] sm:$0xff] }
 0x372   : > { %v8024_v25 = vpop.eup %5941  ;;  %v3264_v17 = vadd.f32 %v3232_v6, %v3164_v36  ;;  %v3167_v0 = vadd.f32 %v8648_v18, %v3067_v1  ;;  %v3483_v29 = vadd.bf16 1065369472, %v5936_v38  ;;  %v3486_v60 = vadd.bf16 1065369472, %v8017_v48  ;;  %v8653_v1 = vld [vmem:[#allocation13_spill] sm:$0xff] }
 0x373   : > { %v8027_v35 = vpop.eup %5943  ;;  %v2865_v57 = vadd.f32 %v7940_v9, %v2765_v27  ;;  %v3065_v51 = vadd.f32 %v7949_v21, %v2964_v5  ;;  %v3508_v47 = vmul.bf16 1065369472, %v5940_v54  ;;  %v8649_v13 = vadd.bf16 1065369472, %v7971_v16  ;;  %v6071_v9 = vld [vmem:[%s8522_s9 + $0x2] ss:$0 sm:$0xff] }
 0x374   : > { %v5946_v58 = vpop.eup %5945  ;;  %v3301_v33 = vadd.f32 %v6071_v9, %v3264_v17  ;;  %v3267_v28 = vadd.f32 %v8650_v37, %v3167_v0  ;;  %v3487_v41 = vadd.bf16 1065369472, %v8024_v25  ;;  %v3488_v48 = vadd.bf16 1065369472, %v8027_v35 }
 0x375   : > { %5957 = vrcp.bf16 %v8649_v13  ;;  %v8035_v4 = vpop.eup %5947  ;;  %v2965_v10 = vadd.f32 %v7944_v59, %v2865_v57  ;;  %v3165_v21 = vadd.f32 %v7953_v26, %v3065_v51  ;;  %v3490_v16 = vadd.bf16 1065369472, %v8010_v11  ;;  %v8657_v57 = vld [vmem:[#allocation19_spill] sm:$0xff] }
 0x376   : > { %v8651_v61 = vadd.bf16 1065369472, %v7977_v14  ;;  %v5950_v52 = vpop.eup %5949  ;;  %v8048_v59 = vpack.c.bf16 %v3301_v33, %v3301_v33  ;;  %v3304_v24 = vadd.f32 %v6071_v9, %v3267_v28  ;;  %v3510_v38 = vmul.bf16 1065369472, %v5946_v58 }
 0x377   : > { %v3066_v32 = vadd.f32 %v3034_v50, %v2965_v10  ;;  %v3265_v55 = vadd.f32 %v7956_v39, %v3165_v21  ;;  %v8052_v43 = vmul.bf16 %v3508_v47, %v8652_v53  ;;  %v3627_v26 = vadd.f32 %v3626_v7, %v8000_v44  ;;  %v5952_v54 = vpop.eup %5951 }
 0x378   : > { %5959 = vrcp.bf16 %v8651_v61  ;;  %v5211_v11 = vmul.bf16 3216621497, %v8048_v59  ;;  %v8056_v14 = vpack.c.bf16 %v3304_v24, %v3304_v24  ;;  %v8654_v27 = vadd.bf16 1065369472, %v8653_v1 }
 0x379   : > { %5961 = vrcp.bf16 %v3480_v42  ;;  %v3166_v30 = vadd.f32 %v3134_v56, %v3066_v32  ;;  %v3302_v50 = vadd.f32 %v6071_v9, %v3265_v55  ;;  %v3491_v36 = vadd.bf16 1065369472, %v8035_v4 }
 0x37a   : > { %5963 = vrcp.bf16 %v8654_v27  ;;  %v8655_v39 = vunpack.c.l.bf16 %v7924_v20  ;;  %v5954_v25 = vpop.eup %5953  ;;  %v5214_v44 = vmul.bf16 3216621497, %v8056_v14  ;;  %v8066_v56 = vmul.bf16 %v3510_v38, %v8624_v34 }
 0x37b   : > { %5965 = vrcp.bf16 %v3483_v29  ;;  %v3266_v7 = vadd.f32 %v3234_v23, %v3166_v30  ;;  %v8068_v5 = vpack.c.bf16 %v3302_v50, %v3302_v50  ;;  %v8656_v42 = vadd.bf16 1065369472, %v7878_v45  ;;  %v8661_v30 = vld [vmem:[#allocation27_spill] sm:$0xff] }
 0x37c   : > { %v3628_v6 = vsel %vm2231_vm5, %v8655_v39, 0.0  ;;  %5967 = vpow.bf16 %v5211_v11  ;;  %v3598_v35 = vunpack.c.l.bf16 %v8052_v43  ;;  %v8658_v17 = vunpack.c.l.bf16 %v8657_v57  ;;  %v5956_v0 = vpop.eup %5955 }
 0x37d   : > { %5969 = vrcp.bf16 %v8656_v42  ;;  %v3303_v29 = vadd.f32 %v6071_v9, %v3266_v7  ;;  %v3512_v23 = vmul.bf16 1065369472, %v5954_v25  ;;  %v3629_v58 = vadd.f32 %v3628_v6, %v3627_v26  ;;  %v8664_v7 = vld [vmem:[#allocation16_spill] sm:$0xff] }
 0x37e   : > { %v3630_v18 = vsel %vm2231_vm5, %v8658_v17, 0.0  ;;  %5971 = vpow.bf16 %v5214_v44  ;;  %v5212_v51 = vmul.bf16 3216621497, %v8068_v5  ;;  %v3518_v34 = vmul.bf16 1065369472, %v5956_v0 }
 0x37f   : > { %5973 = vrcp.bf16 %v3486_v60  ;;  %v8659_v47 = vunpack.c.l.bf16 %v8641_v31  ;;  %v3546_v4 = vmul.bf16 1065369472, %v5950_v52  ;;  %v8080_v10 = vpack.c.bf16 %v3303_v29, %v3303_v29 }
 0x380   : > { %v5958_v13 = vpop.eup %5957  ;;  %5975 = vrcp.bf16 %v3487_v41  ;;  %v3631_v33 = vadd.f32 %v3630_v18, %v3629_v58  ;;  %v8083_v9 = vmul.bf16 %v3518_v34, %v7484_v19  ;;  %v3599_v37 = vunpack.c.l.bf16 %v8066_v56  ;;  %v8660_v41 = vld [vmem:[#allocation10_spill] sm:$0xff] }
 0x381   : > { %v3632_v45 = vsel %vm2231_vm5, %v8659_v47, 0.0  ;;  %5977 = vpow.bf16 %v5212_v51  ;;  %v3634_v28 = vsel %vm2231_vm5, %v3598_v35, 0.0  ;;  %v3492_v60 = vadd.bf16 1065369472, %v5952_v54 }
 0x382   : > { %v5213_v61 = vmul.bf16 3216621497, %v8080_v10  ;;  %5979 = vrcp.bf16 %v3488_v48  ;;  %v3633_v32 = vadd.f32 %v3632_v45, %v3631_v33  ;;  %v3524_v24 = vmul.bf16 1065369472, %v5958_v13 }
 0x383   : > { %v5960_v21 = vpop.eup %5959  ;;  %5981 = vrcp.bf16 %v3490_v16  ;;  %v8089_v52 = vmul.bf16 %v3512_v23, %v8626_v3  ;;  %v3604_v38 = vunpack.c.l.bf16 %v8660_v41  ;;  %v8093_v19 = vmul.bf16 %v3546_v4, %v7902_v8  ;;  %v8665_v4 = vld [vmem:[#allocation30_spill] sm:$0xff] }
 0x384   : > { %v5962_v55 = vpop.eup %5961  ;;  %5983 = vpow.bf16 %v5213_v61  ;;  %v3603_v53 = vunpack.c.l.bf16 %v8083_v9  ;;  %v3635_v26 = vadd.f32 %v3634_v28, %v3633_v32  ;;  %v3526_v11 = vmul.bf16 1065369472, %v5960_v21 }
 0x385   : > { %v5964_v54 = vpop.eup %5963  ;;  %5985 = vrcp.bf16 %v3491_v36  ;;  %v3636_v48 = vsel %vm2231_vm5, %v3599_v37, 0.0  ;;  %v8662_v16 = vunpack.c.l.bf16 %v8661_v30  ;;  %v3528_v27 = vmul.bf16 1065369472, %v5962_v55  ;;  %v8666_v55 = vld [vmem:[#allocation31_spill] sm:$0xff] }
 0x386   : > { %v5966_v1 = vpop.eup %5965  ;;  %v3532_v50 = vmul.bf16 1065369472, %v5964_v54  ;;  %5987 = vrcp.bf16 %v3492_v60  ;;  %v8663_v8 = vunpack.c.l.bf16 %v8642_v12  ;;  %v8104_v25 = vmul.bf16 %v3524_v24, %v7713_v40 }
 0x387   : > { %v3646_v3 = vsel %vm2231_vm5, %v8662_v16, 0.0  ;;  %v5968_v6 = vpop.eup %5967  ;;  %v3600_v36 = vunpack.c.l.bf16 %v8089_v52  ;;  %v3605_v44 = vunpack.c.l.bf16 %v8664_v7  ;;  %v3534_v18 = vmul.bf16 1065369472, %v5966_v1 }
 0x388   : > { %v3647_v39 = vsel %vm2231_vm5, %v8663_v8, 0.0  ;;  %v5970_v35 = vpop.eup %5969  ;;  %v3493_v17 = vadd.bf16 1065369472, %v5968_v6  ;;  %v3612_v0 = vunpack.c.l.bf16 %v7927_v2  ;;  %v3649_v29 = vsel %vm2231_vm5, %v3603_v53, 0.0 }
 0x389   : > { %v3648_v42 = vadd.f32 %v3647_v39, %v3646_v3  ;;  %v5972_v23 = vpop.eup %5971  ;;  %v3538_v58 = vmul.bf16 1065369472, %v5970_v35  ;;  %v8111_v51 = vmul.bf16 %v3526_v11, %v7715_v22  ;;  %v3617_v40 = vunpack.c.l.bf16 %v8093_v19 }
 0x38a   : > { %v3637_v34 = vadd.f32 %v3636_v48, %v3635_v26  ;;  %v5974_v47 = vpop.eup %5973  ;;  %v3496_v45 = vadd.bf16 1065369472, %v5972_v23  ;;  %5989 = vrcp.bf16 %v3493_v17  ;;  %v8115_v13 = vmul.bf16 %v3528_v27, %v7772_v62 }
 0x38b   : > { %v8118_v33 = vmul.bf16 %v3532_v50, %v8665_v4  ;;  %v5976_v37 = vpop.eup %5975  ;;  %v3606_v28 = vunpack.c.l.bf16 %v8104_v25  ;;  %v3638_v21 = vsel %vm2231_vm5, %v3600_v36, 0.0  ;;  %v3650_v60 = vadd.f32 %v3649_v29, %v3648_v42 }
 0x38c   : > { %v3651_v22 = vsel %vm2231_vm5, %v3604_v38, 0.0  ;;  %v5978_v61 = vpop.eup %5977  ;;  %v3540_v32 = vmul.bf16 1065369472, %v5974_v47  ;;  %5991 = vrcp.bf16 %v3496_v45  ;;  %v8124_v24 = vmul.bf16 %v3534_v18, %v8636_v63 }
 0x38d   : > { %v8127_v62 = vmul.bf16 %v3538_v58, %v8666_v55  ;;  %v5980_v53 = vpop.eup %5979  ;;  %v3494_v26 = vadd.bf16 1065369472, %v5978_v61  ;;  %v3607_v54 = vunpack.c.l.bf16 %v8111_v51  ;;  %v3652_v11 = vadd.f32 %v3651_v22, %v3650_v60  ;;  %v8668_v60 = vld [vmem:[#allocation11_spill] sm:$0xff]  ;;  %v8669_v22 = vld [vmem:[#allocation5_spill] sm:$0xff] }
 0x38e   : > { %v3653_v48 = vsel %vm2231_vm5, %v3605_v44, 0.0  ;;  %v5982_v16 = vpop.eup %5981  ;;  %v3542_v3 = vmul.bf16 1065369472, %v5976_v37  ;;  %v3608_v38 = vunpack.c.l.bf16 %v8115_v13  ;;  %v3610_v1 = vunpack.c.l.bf16 %v8118_v33 }
 0x38f   : > { %v3639_v27 = vadd.f32 %v3638_v21, %v3637_v34  ;;  %v5984_v50 = vpop.eup %5983  ;;  %v3548_v63 = vmul.bf16 1065369472, %v5982_v16  ;;  %5993 = vrcp.bf16 %v3494_v26  ;;  %v3654_v8 = vadd.f32 %v3653_v48, %v3652_v11 }
 0x390   : > { %v3655_v39 = vsel %vm2231_vm5, %v3606_v28, 0.0  ;;  %v5986_v6 = vpop.eup %5985  ;;  %v3495_v36 = vadd.bf16 1065369472, %v5984_v50  ;;  %v8135_v42 = vmul.bf16 %v3540_v32, %v7898_v46  ;;  %v3611_v44 = vunpack.c.l.bf16 %v8124_v24  ;;  %v8667_v46 = vld [vmem:[#allocation29_spill] sm:$0xff] }
 0x391   : > { %v3613_v35 = vunpack.c.l.bf16 %v8127_v62  ;;  %v5988_v17 = vpop.eup %5987  ;;  %v3550_v18 = vmul.bf16 1065369472, %v5986_v6  ;;  %v8140_v29 = vmul.bf16 %v3548_v63, %v7929_v49  ;;  %v3656_v23 = vadd.f32 %v3655_v39, %v3654_v8 }
 0x392   : > { %v3657_v58 = vsel %vm2231_vm5, %v3607_v54, 0.0  ;;  %v3544_v34 = vmul.bf16 1065369472, %v5980_v53  ;;  %v3552_v47 = vmul.bf16 1065369472, %v5988_v17  ;;  %5995 = vrcp.bf16 %v3495_v36 }
 0x393   : > { %v8144_v45 = vmul.bf16 %v3542_v3, %v7920_v15  ;;  %v8147_v4 = vmul.bf16 %v3550_v18, %v8667_v46  ;;  %v3618_v37 = vunpack.c.l.bf16 %v8140_v29  ;;  %v3658_v28 = vadd.f32 %v3657_v58, %v3656_v23  ;;  %v8671_v3 = vld [vmem:[#allocation9_spill] sm:$0xff] }
 0x394   : > { %v3659_v21 = vsel %vm2231_vm5, %v3608_v38, 0.0  ;;  %v8152_v49 = vmul.bf16 %v3552_v47, %v8668_v60  ;;  %v8670_v61 = vunpack.c.l.bf16 %v8669_v22  ;;  %v3668_v55 = vsel %vm2231_vm5, %v3610_v1, 0.0 }
 0x395   : > { %v3670_v15 = vsel %vm2231_vm5, %v3611_v44, 0.0  ;;  %v5990_v53 = vpop.eup %5989  ;;  %v3619_v26 = vunpack.c.l.bf16 %v8147_v4  ;;  %v3640_v54 = vrot.slane %v3639_v27, 4  ;;  %v3660_v11 = vadd.f32 %v3659_v21, %v3658_v28 }
 0x396   : > { %v3667_v32 = vsel %vm2231_vm5, %v8670_v61, 0.0  ;;  %v3554_v16 = vmul.bf16 1065369472, %v5990_v53  ;;  %v8161_v38 = vmul.bf16 %v3544_v34, %v8671_v3  ;;  %v3614_v50 = vunpack.c.l.bf16 %v8135_v42 }
 0x397   : > { %v3669_v48 = vadd.f32 %v3668_v55, %v3667_v32  ;;  %v3672_v63 = vsel %vm2231_vm5, %v3612_v0, 0.0  ;;  %v5992_v8 = vpop.eup %5991  ;;  %v3615_v1 = vunpack.c.l.bf16 %v8144_v45  ;;  %v3620_v39 = vunpack.c.l.bf16 %v8152_v49 }
 0x398   : > { %v3661_v6 = vrot.slane %v3660_v11, 4  ;;  %v8170_v44 = vmul.bf16 %v3554_v16, %v8048_v59  ;;  %v3674_v17 = vsel %vm2231_vm5, %v3613_v35, 0.0  ;;  %v3688_v18 = vsel %vm2231_vm5, %v3617_v40, 0.0 }
 0x399   : > { %v3671_v36 = vadd.f32 %v3670_v15, %v3669_v48  ;;  %v3689_v23 = vsel %vm2231_vm5, %v3618_v37, 0.0  ;;  %v3691_v47 = vsel %vm2231_vm5, %v3619_v26, 0.0  ;;  %v3560_v28 = vmul.bf16 1065369472, %v5992_v8 }
 0x39a   : > { %v3662_v58 = vadd.f32 %v3661_v6, %v3660_v11  ;;  %v3690_v34 = vadd.f32 %v3689_v23, %v3688_v18  ;;  %v5994_v46 = vpop.eup %5993  ;;  %v3621_v21 = vunpack.c.l.bf16 %v8170_v44  ;;  %v3676_v59 = vsel %vm2231_vm5, %v3614_v50, 0.0 }
 0x39b   : > { %v3673_v0 = vadd.f32 %v3672_v63, %v3671_v36  ;;  %v3556_v60 = vmul.bf16 1065369472, %v5994_v46  ;;  %v3641_v61 = vadd.f32 %v3640_v54, %v3639_v27  ;;  %v3693_v32 = vsel %vm2231_vm5, %v3620_v39, 0.0  ;;  %v3821_v54 = vld [vmem:[%s8518_s5] sm:$0xf] }
 0x39c   : > { %v3616_v40 = vunpack.c.l.bf16 %v8161_v38  ;;  %v3678_v37 = vsel %vm2231_vm5, %v3615_v1, 0.0  ;;  %v3692_v55 = vadd.f32 %v3691_v47, %v3690_v34  ;;  %v3663_v26 = vrot.slane %v3662_v58, 2 }
 0x39d   : > { %v3675_v35 = vadd.f32 %v3674_v17, %v3673_v0  ;;  %v5996_v15 = vpop.eup %5995  ;;  %v8184_v53 = vmul.bf16 %v3556_v60, %v8068_v5  ;;  %v3695_v48 = vsel %vm2231_vm5, %v3621_v21, 0.0  ;;  %v8188_v3 = vmul.bf16 %v3560_v28, %v8056_v14 }
 0x39e   : > { %v3558_v16 = vmul.bf16 1065369472, %v5996_v15  ;;  %v3694_v27 = vadd.f32 %v3693_v32, %v3692_v55  ;;  %v3642_v63 = vrot.slane %v3641_v61, 2  ;;  %v3680_v1 = vsel %vm2231_vm5, %v3616_v40, 0.0 }
 0x39f   : > { %v3677_v11 = vadd.f32 %v3676_v59, %v3675_v35  ;;  %v3622_v50 = vunpack.c.l.bf16 %v8184_v53  ;;  %v3664_v6 = vadd.f32 %v3663_v26, %v3662_v58  ;;  %v3833_v17 = vsel %vm3831_vm9, %v3821_v54, 0 }
 0x3a0   : > { %v8195_v5 = vmul.bf16 %v3558_v16, %v8080_v10  ;;  %v3696_v39 = vadd.f32 %v3695_v48, %v3694_v27  ;;  %v3624_v23 = vunpack.c.l.bf16 %v8188_v3  ;;  %5482 = vmatpush3.bf16.msra.mxu0 %v3833_v17  ;;  %v3643_v34 = vadd.f32 %v3642_v63, %v3641_v61 }
 0x3a1   : > { %v3679_v8 = vadd.f32 %v3678_v37, %v3677_v11  ;;  %v3697_v14 = vsel %vm2231_vm5, %v3622_v50, 0.0  ;;  %v3665_v46 = vrot.slane %v3664_v6, 1 }
 0x3a2   : > { %v3623_v18 = vunpack.c.l.bf16 %v8195_v5  ;;  %v3698_v0 = vadd.f32 %v3697_v14, %v3696_v39  ;;  %v3701_v58 = vsel %vm2231_vm5, %v3624_v23, 0.0  ;;  %v3644_v59 = vrot.slane %v3643_v34, 1 }
 0x3a3   : > { %v3681_v36 = vadd.f32 %v3680_v1, %v3679_v8  ;;  %v3666_v32 = vadd.f32 %v3665_v46, %v3664_v6  ;;  %v5215_v46 = vld [vmem:[%s8522_s9 + $0x3] ss:$0 sm:$0xff] }
 0x3a4   : > { %v3699_v10 = vsel %vm2231_vm5, %v3623_v18, 0.0  ;;  %v3645_v55 = vadd.f32 %v3644_v59, %v3643_v34 }
 0x3a5   : > { %v3682_v47 = vrot.slane %v3681_v36, 4  ;;  %v3700_v21 = vadd.f32 %v3699_v10, %v3698_v0  ;;  %v3711_v61 = vmul.f32 0.015625, %v3666_v32 }
 0x3a6   : > { %v3710_v27 = vmul.f32 0.015625, %v3645_v55 }
 0x3a7   : > { %v3683_v28 = vadd.f32 %v3682_v47, %v3681_v36  ;;  %v3702_v35 = vadd.f32 %v3701_v58, %v3700_v21  ;;  %v3715_v63 = vpack.c.bf16 %v3711_v61, %v3711_v61  ;;  %v5670_v61 = vld [vmem:[%s8519_s6 + $0x18] sm:$0xff]  }
 0x3a8   : > { %v3714_v39 = vpack.c.bf16 %v3710_v27, %v3710_v27 }
 0x3a9   : > { %v3684_v60 = vrot.slane %v3683_v28, 2  ;;  %v3703_v37 = vrot.slane %v3702_v35, 4  ;;  %v3736_v14 = vunpack.c.l.b16 %v3715_v63 }
 0x3aa   : > { %v3735_v18 = vunpack.c.l.b16 %v3714_v39 }
 0x3ab   : > { %v3685_v40 = vadd.f32 %v3684_v60, %v3683_v28  ;;  %v3704_v26 = vadd.f32 %v3703_v37, %v3702_v35 }
 0x3ac   : > { %v3740_v0 = vsel %vm3739_vm10, %v3736_v14, %v3735_v18  ;;  %v6085_v14 = vmov 1966171168   ;;  %v8672_v18 = vld [vmem:[#allocation3_spill] sm:$0xff] }
 0x3ad   : > { %v3686_v15 = vrot.slane %v3685_v40, 1  ;;  %v3705_v48 = vrot.slane %v3704_v26, 2 }
 0x3af   : > { %v3687_v11 = vadd.f32 %v3686_v15, %v3685_v40  ;;  %v3706_v16 = vadd.f32 %v3705_v48, %v3704_v26  ;;  %v5667_v26 = vld [vmem:[%s8519_s6] sm:$0xff]   ;;  %v5669_v48 = vld [vmem:[%s8519_s6 + $0x10] sm:$0xff]  }
 0x3b0   : > { %5487 = vmatprep.subr.bf16.mxu1 %v5667_v26 }
 0x3b1   : > { %v3712_v54 = vmul.f32 0.015625, %v3687_v11  ;;  %v3707_v50 = vrot.slane %v3706_v16, 1  ;;  %v5668_v11 = vld [vmem:[%s8519_s6 + $0x8] sm:$0xff]  }
 0x3b3   : > { %v3716_v8 = vpack.c.bf16 %v3712_v54, %v3712_v54  ;;  %v3708_v1 = vadd.f32 %v3707_v50, %v3706_v16  ;;  %v5222_v16 = vld [vmem:[%s8522_s9 + $0x4] ss:$0 sm:$0xff] }
 0x3b5   : > { %v3713_v36 = vmul.f32 0.015625, %v3708_v1  ;;  %v3737_v17 = vunpack.c.l.b16 %v3716_v8 }
 0x3b7   : > { %v3717_v6 = vpack.c.bf16 %v3713_v36, %v3713_v36  ;;  %v3742_v34 = vsel %vm3741_vm11, %v3737_v17, %v3740_v0  ;;  %v3883_v17 = vunpack.c.l.s4 %v6085_v14 }
 0x3b9   : > { %v3738_v23 = vunpack.c.l.b16 %v3717_v6  ;;  %v3884_v6 = vunpack.c.0.s8 %v3883_v17 }
 0x3bb   : > { %v3744_v47 = vsel %vm3743_vm12, %v3738_v23, %v3742_v34  ;;  %v8227_v23 = vsub.s32 %v3884_v6, %v8672_v18 }
 0x3bc   : > { %v3745_v10 = vpack.c.b16 %v3744_v47, %v3744_v47 }
 0x3be   : > { %5478 = vmatmul.mubr.msk.bf16.vlgmr.msra.gmra.mrb[32].mxu1 %vm2231_vm5, %v3745_v10 }
 0x3bf   : > { %5488 = vmatpush3.bf16.msra.mxu1 %v5667_v26 }
 0x3c0   : > { %5489 = vmatprep.subr.bf16.mxu1 %v5668_v11 }
 0x3c3   : > { %5490 = vmatpush3.bf16.msra.mxu1 %v5668_v11 }
 0x3c4   : > { %5491 = vmatprep.subr.bf16.mxu1 %v5669_v48 }
 0x3c7   : > { %5492 = vmatpush3.bf16.msra.mxu1 %v5669_v48 }
 0x3c8   : > { %5493 = vmatprep.subr.bf16.mxu1 %v5670_v61 }
 0x3cb   : > { %5494 = vmatpush3.bf16.msra.mxu1 %v5670_v61 }
 0x491   : > { %v3807_v28 = vpop.f32.mrb[32].mxu1 }
 0x492   : > { %v3808_v21 = vadd.f32 %v5215_v46, %v3807_v28  ;;  %v5479_v58 = vpop.f32.mrb[33].mxu1 }
 0x493   : > { %v3810_v59 = vpop.f32.mrb[34].mxu1 }
 0x494   : > { %v5221_v60 = vmul.f32 -1.442695, %v3808_v21  ;;  %v5480_v35 = vpop.f32.mrb[35].mxu1  ;;  %v8673_v59 = vld [vmem:[#allocation4_spill] sm:$0xff] }
 0x496   : > { %5997 = vpow2.f32 %v5221_v60 }
 0x4a0   : > { %v5998_v32 = vpop.eup %5997 }
 0x4a1   : > { %v3816_v40 = vadd.f32 1.0, %v5998_v32 }
 0x4a3   : > { %5999 = vrcp.f32 %v3816_v40 }
 0x4ad   : > { %v6000_v37 = vpop.eup %5999 }
 0x4ae   : > { %v3819_v55 = vmul.f32 %v6000_v37, %v3808_v21  ;;  %v8674_v37 = vld [vmem:[#allocation12_spill] sm:$0xff] }
 0x4b0   : > { %v3820_v15 = vpack.c.bf16 %v3819_v55, %v3819_v55 }
 0x4b2   : > { %5484 = vmatmul.mubr.msk.bf16.vlgmr.msra.gmra.mrb[32].mxu0 %vm3827_vm13, %v3820_v15  ;;  %v8675_v15 = vld [vmem:[#allocation14_spill] sm:$0xff] }
 0x585   : > { %v3869_v27 = vpop.f32.mrb[32].mxu0 }
 0x586   : > { %v3870_v54 = vadd.f32 %v5222_v16, %v3869_v27  ;;  %v5485_v50 = vpop.f32.mrb[33].mxu0 }
 0x587   : > { %v3872_v63 = vpop.f32.mrb[34].mxu0 }
 0x588   : > { %v5224_v8 = vmul.f32 -1.442695, %v3870_v54  ;;  %v5486_v1 = vpop.f32.mrb[35].mxu0 }
 0x58a   : > { %6001 = vpow2.f32 %v5224_v8 }
 0x594   : > { %v6002_v39 = vpop.eup %6001 }
 0x595   : > { %v3878_v36 = vadd.f32 1.0, %v6002_v39 }
 0x597   : > { %6003 = vrcp.f32 %v3878_v36 }
 0x5a1   : > { %v6004_v0 = vpop.eup %6003 }
 0x5a2   : > { %v3888_v34 = vrot.slane %v6004_v0, %v8227_v23 }
 0x5a4   : > { %v3889_v47 = vcombine.high %v3888_v34, %v3888_v34  ;;  %v3896_v10 = vrot.slane %v3888_v34, %v8227_v23 }
 0x5a6   : > { %v3903_v46 = vrot.slane %v3889_v47, %v8227_v23  ;;  %v3910_v28 = vpack.c.bf16 %v3896_v10, %v3896_v10  ;;  %v3904_v50 = vcombine.high %v3896_v10, %v3896_v10 }
 0x5a8   : > { %v3911_v21 = vpack.c.bf16 %v3903_v46, %v3903_v46  ;;  %v3915_v58 = vpack.i.b16 %v3910_v28, %v3910_v28  ;;  %v3905_v0 = vcombine.high %v3903_v46, %v3903_v46 }
 0x5aa   : > { %v3920_v60 = vrot.slane %v3915_v58, %v8673_v59  ;;  %v3922_v35 = vpack.i.b16 %v3911_v21, %v3911_v21  ;;  %v3913_v10 = vpack.c.bf16 %v3905_v0, %v3905_v0 }
 0x5ac   : > { %v5225_v32 = vcombine.low %v3920_v60, %v3920_v60  ;;  %v3927_v40 = vrot.slane %v3922_v35, %v8673_v59  ;;  %v3936_v21 = vpack.i.b16 %v3913_v10, %v3913_v10 }
 0x5ae   : > { %v3958_v55 = vmul.bf16 %v5225_v32, %v8674_v37  ;;  %v3959_v26 = vmul.bf16 %v5225_v32, %v8675_v15  ;;  %v3960_v11 = vmul.bf16 %v5225_v32, %v7924_v20  ;;  %v3961_v48 = vmul.bf16 %v5225_v32, %v8657_v57 }
 0x5af   : > { %v3962_v61 = vmul.bf16 %v5225_v32, %v8641_v31  ;;  %v3963_v16 = vmul.bf16 %v5225_v32, %v8052_v43  ;;  %v5226_v63 = vcombine.low %v3927_v40, %v3927_v40  ;;  %v3964_v1 = vmul.bf16 %v5225_v32, %v8066_v56 }
 0x5b0   : > { %v5230_v27 = vcombine.low %v3958_v55, %v3959_v26  ;;  %v5231_v54 = vcombine.low %v3960_v11, %v3961_v48  ;;  %v3965_v20 = vmul.bf16 %v5225_v32, %v8089_v52  ;;  %v3912_v57 = vpack.c.bf16 %v3904_v50, %v3904_v50 }
 0x5b1   : > { %v5232_v8 = vcombine.low %v3962_v61, %v3963_v16  ;;  %v3966_v31 = vmul.bf16 %v5226_v63, %v8661_v30  ;;  %v3967_v43 = vmul.bf16 %v5226_v63, %v8642_v12  ;;  %v3968_v17 = vmul.bf16 %v5226_v63, %v8083_v9 }
 0x5b2   : > { %5495 = vmatprep.mubr.msk.bf16.mxu1 %vm2231_vm5, %v5230_v27  ;;  %v5233_v39 = vcombine.low %v3964_v1, %v3965_v20  ;;  %v3929_v36 = vpack.i.b16 %v3912_v57, %v3912_v57  ;;  %v3969_v6 = vmul.bf16 %v5226_v63, %v8660_v41  ;;  %v3970_v52 = vmul.bf16 %v5226_v63, %v8664_v7 }
 0x5b3   : > { %5496 = vmatmul.mubr.msk.bf16.vlgmr.msra.gmra.mrb[36].mxu1 %vm2231_vm5, %v5231_v54  ;;  %v5234_v14 = vcombine.low %v3966_v31, %v3967_v43  ;;  %v3971_v18 = vmul.bf16 %v5226_v63, %v8104_v25  ;;  %v3972_v47 = vmul.bf16 %v5226_v63, %v8111_v51  ;;  %v3973_v9 = vmul.bf16 %v5226_v63, %v8115_v13 }
 0x5b4   : > { %5499 = vmatprep.mubr.msk.bf16.mxu1 %vm2231_vm5, %v5232_v8  ;;  %v3934_v56 = vrot.slane %v3929_v36, %v8673_v59  ;;  %v5235_v30 = vcombine.low %v3968_v17, %v3969_v6  ;;  %v3941_v51 = vrot.slane %v3936_v21, %v8673_v59 }
 0x5b5   : > { %v5236_v34 = vcombine.low %v3970_v52, %v3971_v18  ;;  %v5237_v7 = vcombine.low %v3972_v47, %v3973_v9 }
 0x5b6   : > { %v5227_v12 = vcombine.low %v3934_v56, %v3934_v56  ;;  %v5228_v35 = vcombine.low %v3941_v51, %v3941_v51 }
 0x5b8   : > { %v3974_v41 = vmul.bf16 %v5227_v12, %v8669_v22  ;;  %v3975_v28 = vmul.bf16 %v5227_v12, %v8118_v33  ;;  %v3976_v46 = vmul.bf16 %v5227_v12, %v8124_v24  ;;  %v3977_v58 = vmul.bf16 %v5227_v12, %v7927_v2 }
 0x5b9   : > { %v3978_v13 = vmul.bf16 %v5227_v12, %v8127_v62  ;;  %v3979_v60 = vmul.bf16 %v5227_v12, %v8135_v42  ;;  %v3980_v32 = vmul.bf16 %v5227_v12, %v8144_v45  ;;  %v3981_v40 = vmul.bf16 %v5227_v12, %v8161_v38 }
 0x5ba   : > { %v5238_v25 = vcombine.low %v3974_v41, %v3975_v28  ;;  %v5239_v22 = vcombine.low %v3976_v46, %v3977_v58  ;;  %v3982_v24 = vmul.bf16 %v5228_v35, %v8093_v19  ;;  %v3983_v2 = vmul.bf16 %v5228_v35, %v8140_v29 }
 0x5bb   : > { %5500 = vmatmul.mubr.msk.bf16.gmra.mrb[40].mxu1 %vm2231_vm5, %v5233_v39  ;;  %v5240_v33 = vcombine.low %v3978_v13, %v3979_v60  ;;  %v5241_v59 = vcombine.low %v3980_v32, %v3981_v40  ;;  %v3984_v62 = vmul.bf16 %v5228_v35, %v8147_v4  ;;  %v3985_v42 = vmul.bf16 %v5228_v35, %v8152_v49  ;;  %v5671_v4 = vld [vmem:[%s8520_s7] sm:$0xff]   ;;  %v5672_v49 = vld [vmem:[%s8520_s7 + $0x8] ss:$0 sps:$4 sm:$0xff]  }
 0x5bc   : > { %5503 = vmatprep.mubr.msk.bf16.mxu1 %vm2231_vm5, %v5234_v14  ;;  %v5242_v37 = vcombine.low %v3982_v24, %v3983_v2  ;;  %v3986_v55 = vmul.bf16 %v5228_v35, %v8170_v44  ;;  %v3987_v45 = vmul.bf16 %v5228_v35, %v8184_v53  ;;  %v3988_v19 = vmul.bf16 %v5228_v35, %v8195_v5  ;;  %v8296_v5 = vld [vmem:[%s8522_s9 + $0x5] ss:$0 sm:$0xff] }
 0x5bd   : > { %v5243_v15 = vcombine.low %v3984_v62, %v3985_v42  ;;  %v3989_v29 = vmul.bf16 %v5228_v35, %v8188_v3  ;;  %5527 = vmatprep.subr.bf16.mxu0 %v5671_v4  ;;  %v4398_v44 = vsel %vm3831_vm9, %v5672_v49, 0  ;;  %v8676_v53 = vmov 0.0  }
 0x5be   : > { %v5244_v38 = vcombine.low %v3986_v55, %v3987_v45  ;;  %5528 = vmatpush3.bf16.msra.mxu0 %v5671_v4 }
 0x5bf   : > { %v5245_v26 = vcombine.low %v3988_v19, %v3989_v29  ;;  %5575 = vmatprep.subr.msk.bf16.mxu0 %vm3831_vm9, %v5672_v49 }
 0x5c2   : > { %5530 = vmatpush3.bf16.msra.mxu0 %v4398_v44 }
 0x5c3   : > { %5504 = vmatmul.mubr.msk.bf16.gmra.mrb[44].mxu1 %vm2231_vm5, %v5235_v30  ;;  %5563 = vmatprep.subr.bf16.mxu0 %v8676_v53 }
 0x5c4   : > { %5507 = vmatprep.mubr.msk.bf16.mxu1 %vm2231_vm5, %v5236_v34 }
 0x5cb   : > { %5508 = vmatmul.mubr.msk.bf16.gmra.mrb[48].mxu1 %vm2231_vm5, %v5237_v7 }
 0x5cc   : > { %5511 = vmatprep.mubr.msk.bf16.mxu1 %vm2231_vm5, %v5238_v25 }
 0x5d3   : > { %5512 = vmatmul.mubr.msk.bf16.gmra.mrb[52].mxu1 %vm2231_vm5, %v5239_v22 }
 0x5d4   : > { %5515 = vmatprep.mubr.msk.bf16.mxu1 %vm2231_vm5, %v5240_v33 }
 0x5db   : > { %5516 = vmatmul.mubr.msk.bf16.gmra.mrb[56].mxu1 %vm2231_vm5, %v5241_v59 }
 0x5dc   : > { %5519 = vmatprep.mubr.msk.bf16.mxu1 %vm2231_vm5, %v5242_v37 }
 0x5e3   : > { %5520 = vmatmul.mubr.msk.bf16.gmra.mrb[60].mxu1 %vm2231_vm5, %v5243_v15 }
 0x5e4   : > { %5523 = vmatprep.mubr.msk.bf16.mxu1 %vm2231_vm5, %v5244_v38 }
 0x5eb   : > { %5524 = vmatmul.mubr.msk.bf16.gmra.mrb[64].mxu1 %vm2231_vm5, %v5245_v26 }
 0x686   : > { %v5497_v3 = vpop.f32.mrb[36].mxu1 }
 0x687   : > { %v4189_v11 = vpop.f32.mrb[37].mxu1  ;;  %v4198_v61 = vadd.f32 %v5497_v3, %v8296_v5 }
 0x688   : > { %v5498_v48 = vpop.f32.mrb[38].mxu1  ;;  %v4190_v54 = vadd.f32 %v8296_v5, %v4189_v11 }
 0x689   : > { %v4201_v16 = vadd.f32 %v5498_v48, %v8296_v5  ;;  %v4192_v27 = vpop.f32.mrb[39].mxu1 }
 0x68a   : > { %v4193_v50 = vadd.f32 %v8296_v5, %v4192_v27 }
 0x68b   : > { %v4317_v63 = vpack.c.bf16 %v4201_v16, %v4198_v61 }
 0x68c   : > { %v4316_v8 = vpack.c.bf16 %v4193_v50, %v4190_v54 }
 0x68e   : > { %v5501_v1 = vpop.f32.mrb[40].mxu1  ;;  %5531 = vmatprep.mubr.msk.bf16.mxu0 %vm1191_vm1, %v4316_v8 }
 0x68f   : > { %v4205_v20 = vpop.f32.mrb[41].mxu1  ;;  %5532 = vmatmul.mubr.msk.bf16.vlgmr.msra.gmra.mrb[36].mxu0 %vm1191_vm1, %v4317_v63  ;;  %v4214_v31 = vadd.f32 %v5501_v1, %v8296_v5 }
 0x690   : > { %v5502_v57 = vpop.f32.mrb[42].mxu1  ;;  %v4206_v36 = vadd.f32 %v8296_v5, %v4205_v20 }
 0x691   : > { %v4217_v43 = vadd.f32 %v5502_v57, %v8296_v5  ;;  %v4208_v39 = vpop.f32.mrb[43].mxu1 }
 0x692   : > { %v4209_v14 = vadd.f32 %v8296_v5, %v4208_v39 }
 0x693   : > { %v4319_v17 = vpack.c.bf16 %v4217_v43, %v4214_v31 }
 0x694   : > { %v4318_v6 = vpack.c.bf16 %v4209_v14, %v4206_v36 }
 0x696   : > { %v5505_v56 = vpop.f32.mrb[44].mxu1  ;;  %5535 = vmatprep.mubr.msk.bf16.mxu0 %vm1191_vm1, %v4318_v6  ;;  %v5673_v6 = vld [vmem:[%s8521_s8] sm:$0xff]  }
 0x697   : > { %v4221_v52 = vpop.f32.mrb[45].mxu1  ;;  %5536 = vmatmul.mubr.msk.bf16.gmra.mrb[40].mxu0 %vm1191_vm1, %v4319_v17  ;;  %v4230_v30 = vadd.f32 %v5505_v56, %v8296_v5 }
 0x698   : > { %v5506_v18 = vpop.f32.mrb[46].mxu1  ;;  %v4222_v34 = vadd.f32 %v8296_v5, %v4221_v52  ;;  %v8354_v52 = vld [vmem:[%s8522_s9 + $0x6] ss:$0 sm:$0xff]  ;;  %5564 = vmatpush3.bf16.msra.mxu0 %v5673_v6 }
 0x699   : > { %v4233_v0 = vadd.f32 %v5506_v18, %v8296_v5  ;;  %v4224_v12 = vpop.f32.mrb[47].mxu1  ;;  %5565 = vmatprep.subr.bf16.mxu0 %v8676_v53 }
 0x69a   : > { %v4225_v47 = vadd.f32 %v8296_v5, %v4224_v12 }
 0x69b   : > { %v4321_v9 = vpack.c.bf16 %v4233_v0, %v4230_v30 }
 0x69c   : > { %v4320_v10 = vpack.c.bf16 %v4225_v47, %v4222_v34 }
 0x69e   : > { %v5509_v41 = vpop.f32.mrb[48].mxu1  ;;  %5539 = vmatprep.mubr.msk.bf16.mxu0 %vm1191_vm1, %v4320_v10  ;;  %v5675_v10 = vld [vmem:[%s8521_s8 + $0x10] sm:$0xff]  }
 0x69f   : > { %v4237_v28 = vpop.f32.mrb[49].mxu1  ;;  %5540 = vmatmul.mubr.msk.bf16.gmra.mrb[44].mxu0 %vm1191_vm1, %v4321_v9  ;;  %v4246_v21 = vadd.f32 %v5509_v41, %v8296_v5 }
 0x6a0   : > { %v5510_v7 = vpop.f32.mrb[50].mxu1  ;;  %v4238_v58 = vadd.f32 %v8296_v5, %v4237_v28 }
 0x6a1   : > { %v4249_v25 = vadd.f32 %v5510_v7, %v8296_v5  ;;  %v4240_v46 = vpop.f32.mrb[51].mxu1 }
 0x6a2   : > { %v4241_v51 = vadd.f32 %v8296_v5, %v4240_v46  ;;  %v5676_v46 = vld [vmem:[%s8521_s8 + $0x18] sm:$0xff]  }
 0x6a3   : > { %v4323_v13 = vpack.c.bf16 %v4249_v25, %v4246_v21 }
 0x6a4   : > { %v4322_v60 = vpack.c.bf16 %v4241_v51, %v4238_v58 }
 0x6a6   : > { %v5513_v22 = vpop.f32.mrb[52].mxu1  ;;  %5543 = vmatprep.mubr.msk.bf16.mxu0 %vm1191_vm1, %v4322_v60 }
 0x6a7   : > { %v4253_v35 = vpop.f32.mrb[53].mxu1  ;;  %5544 = vmatmul.mubr.msk.bf16.gmra.mrb[48].mxu0 %vm1191_vm1, %v4323_v13  ;;  %v4262_v32 = vadd.f32 %v5513_v22, %v8296_v5 }
 0x6a8   : > { %v5514_v33 = vpop.f32.mrb[54].mxu1  ;;  %v4254_v2 = vadd.f32 %v8296_v5, %v4253_v35 }
 0x6a9   : > { %v4265_v40 = vadd.f32 %v5514_v33, %v8296_v5  ;;  %v4256_v24 = vpop.f32.mrb[55].mxu1 }
 0x6aa   : > { %v4257_v59 = vadd.f32 %v8296_v5, %v4256_v24 }
 0x6ab   : > { %v4325_v37 = vpack.c.bf16 %v4265_v40, %v4262_v32 }
 0x6ac   : > { %v4324_v62 = vpack.c.bf16 %v4257_v59, %v4254_v2 }
 0x6ae   : > { %v5517_v42 = vpop.f32.mrb[56].mxu1  ;;  %5547 = vmatprep.mubr.msk.bf16.mxu0 %vm1191_vm1, %v4324_v62 }
 0x6af   : > { %v4269_v55 = vpop.f32.mrb[57].mxu1  ;;  %5548 = vmatmul.mubr.msk.bf16.gmra.mrb[52].mxu0 %vm1191_vm1, %v4325_v37  ;;  %v4278_v15 = vadd.f32 %v5517_v42, %v8296_v5 }
 0x6b0   : > { %v5518_v45 = vpop.f32.mrb[58].mxu1  ;;  %v4270_v29 = vadd.f32 %v8296_v5, %v4269_v55 }
 0x6b1   : > { %v4281_v38 = vadd.f32 %v5518_v45, %v8296_v5  ;;  %v4272_v19 = vpop.f32.mrb[59].mxu1 }
 0x6b2   : > { %v4273_v26 = vadd.f32 %v8296_v5, %v4272_v19 }
 0x6b3   : > { %v4327_v4 = vpack.c.bf16 %v4281_v38, %v4278_v15 }
 0x6b4   : > { %v4326_v49 = vpack.c.bf16 %v4273_v26, %v4270_v29 }
 0x6b6   : > { %v5521_v44 = vpop.f32.mrb[60].mxu1  ;;  %5551 = vmatprep.mubr.msk.bf16.mxu0 %vm1191_vm1, %v4326_v49 }
 0x6b7   : > { %v4285_v3 = vpop.f32.mrb[61].mxu1  ;;  %5552 = vmatmul.mubr.msk.bf16.gmra.mrb[56].mxu0 %vm1191_vm1, %v4327_v4  ;;  %v4294_v48 = vadd.f32 %v5521_v44, %v8296_v5 }
 0x6b8   : > { %v5522_v11 = vpop.f32.mrb[62].mxu1  ;;  %v4286_v27 = vadd.f32 %v8296_v5, %v4285_v3 }
 0x6b9   : > { %v4297_v61 = vadd.f32 %v5522_v11, %v8296_v5  ;;  %v4288_v16 = vpop.f32.mrb[63].mxu1 }
 0x6ba   : > { %v4289_v54 = vadd.f32 %v8296_v5, %v4288_v16 }
 0x6bb   : > { %v4329_v50 = vpack.c.bf16 %v4297_v61, %v4294_v48 }
 0x6bc   : > { %v4328_v63 = vpack.c.bf16 %v4289_v54, %v4286_v27 }
 0x6be   : > { %v5525_v8 = vpop.f32.mrb[64].mxu1  ;;  %5555 = vmatprep.mubr.msk.bf16.mxu0 %vm1191_vm1, %v4328_v63 }
 0x6bf   : > { %v4301_v1 = vpop.f32.mrb[65].mxu1  ;;  %5556 = vmatmul.mubr.msk.bf16.gmra.mrb[60].mxu0 %vm1191_vm1, %v4329_v50  ;;  %v4310_v57 = vadd.f32 %v5525_v8, %v8296_v5 }
 0x6c0   : > { %v5526_v20 = vpop.f32.mrb[66].mxu1  ;;  %v4302_v39 = vadd.f32 %v8296_v5, %v4301_v1 }
 0x6c1   : > { %v4313_v31 = vadd.f32 %v5526_v20, %v8296_v5  ;;  %v4304_v43 = vpop.f32.mrb[67].mxu1 }
 0x6c2   : > { %v4305_v36 = vadd.f32 %v8296_v5, %v4304_v43  ;;  %v5674_v5 = vld [vmem:[%s8521_s8 + $0x8] sm:$0xff]  }
 0x6c3   : > { %v4331_v14 = vpack.c.bf16 %v4313_v31, %v4310_v57  ;;  %5566 = vmatpush3.bf16.msra.mxu0 %v5674_v5 }
 0x6c4   : > { %v4330_v17 = vpack.c.bf16 %v4305_v36, %v4302_v39  ;;  %5567 = vmatprep.subr.bf16.mxu0 %v8676_v53 }
 0x6c6   : > { %5559 = vmatprep.mubr.msk.bf16.mxu0 %vm1191_vm1, %v4330_v17 }
 0x6c7   : > { %5560 = vmatmul.mubr.msk.bf16.gmra.mrb[64].mxu0 %vm1191_vm1, %v4331_v14 }
 0x6c8   : > { %5571 = vmatprep.mubr.msk.bf16.mxu0 %vm6084_vm8, %v8676_v53  ;;  %5568 = vmatpush3.bf16.msra.mxu0 %v5675_v10 }
 0x6c9   : > { %5569 = vmatprep.subr.bf16.mxu0 %v8676_v53 }
 0x6cc   : > { %5570 = vmatpush3.bf16.msra.mxu0 %v5676_v46 }
 0x762   : > { %v5533_v56 = vpop.f32.mrb[36].mxu0 }
 0x763   : > { %v4434_v18 = vpop.f32.mrb[37].mxu0  ;;  %v4443_v0 = vadd.f32 %v5533_v56, %v8354_v52 }
 0x764   : > { %v5534_v30 = vpop.f32.mrb[38].mxu0  ;;  %v4435_v47 = vadd.f32 %v8354_v52, %v4434_v18 }
 0x765   : > { %v4446_v12 = vadd.f32 %v5534_v30, %v8354_v52  ;;  %v4437_v34 = vpop.f32.mrb[39].mxu0 }
 0x766   : > { %v4438_v9 = vadd.f32 %v8354_v52, %v4437_v34 }
 0x767   : > { %v8367_v41 = vpack.c.bf16 %v4446_v12, %v4443_v0 }
 0x768   : > { %v8370_v28 = vpack.c.bf16 %v4438_v9, %v4435_v47 }
 0x769   : > { %v5286_v7 = vmul.bf16 3216621497, %v8367_v41 }
 0x76a   : > { %v5285_v21 = vmul.bf16 3216621497, %v8370_v28  ;;  %v5537_v25 = vpop.f32.mrb[40].mxu0 }
 0x76b   : > { %6005 = vpow.bf16 %v5286_v7  ;;  %v4450_v58 = vpop.f32.mrb[41].mxu0  ;;  %v4459_v13 = vadd.f32 %v5537_v25, %v8354_v52 }
 0x76c   : > { %6007 = vpow.bf16 %v5285_v21  ;;  %v5538_v51 = vpop.f32.mrb[42].mxu0  ;;  %v4451_v35 = vadd.f32 %v8354_v52, %v4450_v58 }
 0x76d   : > { %v4462_v60 = vadd.f32 %v5538_v51, %v8354_v52  ;;  %v4453_v22 = vpop.f32.mrb[43].mxu0 }
 0x76e   : > { %v4454_v33 = vadd.f32 %v8354_v52, %v4453_v22 }
 0x76f   : > { %v8382_v32 = vpack.c.bf16 %v4462_v60, %v4459_v13 }
 0x770   : > { %v8384_v40 = vpack.c.bf16 %v4454_v33, %v4451_v35 }
 0x771   : > { %v5288_v24 = vmul.bf16 3216621497, %v8382_v32 }
 0x772   : > { %v5287_v53 = vmul.bf16 3216621497, %v8384_v40  ;;  %v5541_v2 = vpop.f32.mrb[44].mxu0 }
 0x773   : > { %6009 = vpow.bf16 %v5288_v24  ;;  %v4466_v59 = vpop.f32.mrb[45].mxu0  ;;  %v4475_v62 = vadd.f32 %v5541_v2, %v8354_v52 }
 0x774   : > { %6011 = vpow.bf16 %v5287_v53  ;;  %v5542_v37 = vpop.f32.mrb[46].mxu0  ;;  %v4467_v15 = vadd.f32 %v8354_v52, %v4466_v59 }
 0x775   : > { %v4478_v42 = vadd.f32 %v5542_v37, %v8354_v52  ;;  %v4469_v55 = vpop.f32.mrb[47].mxu0 }
 0x776   : > { %v6006_v45 = vpop.eup %6005  ;;  %v4470_v38 = vadd.f32 %v8354_v52, %v4469_v55 }
 0x777   : > { %v6008_v19 = vpop.eup %6007  ;;  %v4642_v29 = vadd.bf16 1065369472, %v6006_v45  ;;  %v8392_v26 = vpack.c.bf16 %v4478_v42, %v4475_v62 }
 0x778   : > { %v4641_v4 = vadd.bf16 1065369472, %v6008_v19  ;;  %v8394_v49 = vpack.c.bf16 %v4470_v38, %v4467_v15 }
 0x779   : > { %6013 = vrcp.bf16 %v4642_v29  ;;  %v5290_v44 = vmul.bf16 3216621497, %v8392_v26 }
 0x77a   : > { %6015 = vrcp.bf16 %v4641_v4  ;;  %v5289_v3 = vmul.bf16 3216621497, %v8394_v49  ;;  %v5545_v11 = vpop.f32.mrb[48].mxu0 }
 0x77b   : > { %6017 = vpow.bf16 %v5290_v44  ;;  %v4482_v48 = vpop.f32.mrb[49].mxu0  ;;  %v4491_v16 = vadd.f32 %v5545_v11, %v8354_v52 }
 0x77c   : > { %6019 = vpow.bf16 %v5289_v3  ;;  %v5546_v61 = vpop.f32.mrb[50].mxu0  ;;  %v4483_v63 = vadd.f32 %v8354_v52, %v4482_v48 }
 0x77d   : > { %v4494_v27 = vadd.f32 %v5546_v61, %v8354_v52  ;;  %v4485_v54 = vpop.f32.mrb[51].mxu0 }
 0x77e   : > { %v6010_v50 = vpop.eup %6009  ;;  %v4486_v8 = vadd.f32 %v8354_v52, %v4485_v54 }
 0x77f   : > { %v6012_v1 = vpop.eup %6011  ;;  %v4644_v20 = vadd.bf16 1065369472, %v6010_v50  ;;  %v8402_v57 = vpack.c.bf16 %v4494_v27, %v4491_v16 }
 0x780   : > { %v4643_v31 = vadd.bf16 1065369472, %v6012_v1  ;;  %v8404_v43 = vpack.c.bf16 %v4486_v8, %v4483_v63 }
 0x781   : > { %6021 = vrcp.bf16 %v4644_v20  ;;  %v5292_v39 = vmul.bf16 3216621497, %v8402_v57 }
 0x782   : > { %6023 = vrcp.bf16 %v4643_v31  ;;  %v5291_v36 = vmul.bf16 3216621497, %v8404_v43  ;;  %v5549_v14 = vpop.f32.mrb[52].mxu0 }
 0x783   : > { %6025 = vpow.bf16 %v5292_v39  ;;  %v4498_v17 = vpop.f32.mrb[53].mxu0  ;;  %v4507_v30 = vadd.f32 %v5549_v14, %v8354_v52 }
 0x784   : > { %v6014_v6 = vpop.eup %6013  ;;  %6027 = vpow.bf16 %v5291_v36  ;;  %v5550_v56 = vpop.f32.mrb[54].mxu0  ;;  %v4499_v9 = vadd.f32 %v8354_v52, %v4498_v17 }
 0x785   : > { %v6016_v5 = vpop.eup %6015  ;;  %v4660_v18 = vmul.bf16 1065369472, %v6014_v6  ;;  %v4510_v0 = vadd.f32 %v5550_v56, %v8354_v52  ;;  %v4501_v12 = vpop.f32.mrb[55].mxu0 }
 0x786   : > { %v6018_v34 = vpop.eup %6017  ;;  %v4658_v47 = vmul.bf16 1065369472, %v6016_v5  ;;  %v4502_v10 = vadd.f32 %v8354_v52, %v4501_v12 }
 0x787   : > { %v6020_v7 = vpop.eup %6019  ;;  %v4690_v21 = vmul.bf16 %v4660_v18, %v8367_v41  ;;  %v4646_v25 = vadd.bf16 1065369472, %v6018_v34  ;;  %v8413_v46 = vpack.c.bf16 %v4510_v0, %v4507_v30 }
 0x788   : > { %v4689_v58 = vmul.bf16 %v4658_v47, %v8370_v28  ;;  %v4645_v51 = vadd.bf16 1065369472, %v6020_v7  ;;  %v8416_v13 = vpack.c.bf16 %v4502_v10, %v4499_v9 }
 0x789   : > { %v4707_v60 = vunpack.c.l.bf16 %v4690_v21  ;;  %6029 = vrcp.bf16 %v4646_v25  ;;  %v5294_v22 = vmul.bf16 3216621497, %v8413_v46  ;;  %v4708_v59 = vunpack.c.h.bf16 %v4690_v21 }
 0x78a   : > { %v4705_v35 = vunpack.c.l.bf16 %v4689_v58  ;;  %v4706_v33 = vunpack.c.h.bf16 %v4689_v58  ;;  %6031 = vrcp.bf16 %v4645_v51  ;;  %v5293_v24 = vmul.bf16 3216621497, %v8416_v13  ;;  %v5553_v53 = vpop.f32.mrb[56].mxu0 }
 0x78b   : > { %6033 = vpow.bf16 %v5294_v22  ;;  %v4514_v41 = vpop.f32.mrb[57].mxu0  ;;  %v4523_v15 = vadd.f32 %v5553_v53, %v8354_v52  ;;  %v4740_v4 = vsel %vm2231_vm5, %v4707_v60, 0.0  ;;  %v4742_v50 = vsel %vm2231_vm5, %v4708_v59, 0.0 }
 0x78c   : > { %v6022_v2 = vpop.eup %6021  ;;  %v4737_v37 = vsel %vm2231_vm5, %v4705_v35, 0.0  ;;  %v4738_v28 = vsel %vm2231_vm5, %v4706_v33, 0.0  ;;  %6035 = vpow.bf16 %v5293_v24  ;;  %v5554_v62 = vpop.f32.mrb[58].mxu0  ;;  %v4515_v3 = vadd.f32 %v8354_v52, %v4514_v41 }
 0x78d   : > { %v6024_v42 = vpop.eup %6023  ;;  %v4739_v55 = vadd.f32 %v4738_v28, %v4737_v37  ;;  %v4664_v45 = vmul.bf16 1065369472, %v6022_v2  ;;  %v4526_v38 = vadd.f32 %v5554_v62, %v8354_v52  ;;  %v4517_v19 = vpop.f32.mrb[59].mxu0 }
 0x78e   : > { %v6026_v29 = vpop.eup %6025  ;;  %v4662_v44 = vmul.bf16 1065369472, %v6024_v42  ;;  %v4518_v11 = vadd.f32 %v8354_v52, %v4517_v19 }
 0x78f   : > { %v6028_v48 = vpop.eup %6027  ;;  %v4741_v61 = vadd.f32 %v4740_v4, %v4739_v55  ;;  %v4692_v16 = vmul.bf16 %v4664_v45, %v8382_v32  ;;  %v4648_v27 = vadd.bf16 1065369472, %v6026_v29  ;;  %v8428_v54 = vpack.c.bf16 %v4526_v38, %v4523_v15 }
 0x790   : > { %v4691_v63 = vmul.bf16 %v4662_v44, %v8384_v40  ;;  %v4647_v8 = vadd.bf16 1065369472, %v6028_v48  ;;  %v8432_v1 = vpack.c.bf16 %v4518_v11, %v4515_v3 }
 0x791   : > { %v4743_v20 = vadd.f32 %v4742_v50, %v4741_v61  ;;  %6037 = vrcp.bf16 %v4648_v27  ;;  %v5296_v36 = vmul.bf16 3216621497, %v8428_v54  ;;  %v4711_v17 = vunpack.c.l.bf16 %v4692_v16 }
 0x792   : > { %v4709_v31 = vunpack.c.l.bf16 %v4691_v63  ;;  %v4710_v39 = vunpack.c.h.bf16 %v4691_v63  ;;  %6039 = vrcp.bf16 %v4647_v8  ;;  %v5557_v14 = vpop.f32.mrb[60].mxu0  ;;  %v5295_v32 = vmul.bf16 3216621497, %v8432_v1 }
 0x793   : > { %v4530_v6 = vpop.f32.mrb[61].mxu0  ;;  %v4712_v5 = vunpack.c.h.bf16 %v4692_v16  ;;  %6041 = vpow.bf16 %v5296_v36  ;;  %v4539_v40 = vadd.f32 %v5557_v14, %v8354_v52  ;;  %v4748_v24 = vsel %vm2231_vm5, %v4711_v17, 0.0 }
 0x794   : > { %v6030_v56 = vpop.eup %6029  ;;  %v4744_v18 = vsel %vm2231_vm5, %v4709_v31, 0.0  ;;  %v5558_v30 = vpop.f32.mrb[62].mxu0  ;;  %6043 = vpow.bf16 %v5295_v32  ;;  %v4746_v7 = vsel %vm2231_vm5, %v4710_v39, 0.0  ;;  %v4531_v25 = vadd.f32 %v8354_v52, %v4530_v6 }
 0x795   : > { %v6032_v0 = vpop.eup %6031  ;;  %v4745_v12 = vadd.f32 %v4744_v18, %v4743_v20  ;;  %v4668_v34 = vmul.bf16 1065369472, %v6030_v56  ;;  %v4542_v47 = vadd.f32 %v5558_v30, %v8354_v52  ;;  %v4533_v9 = vpop.f32.mrb[63].mxu0  ;;  %v4750_v59 = vsel %vm2231_vm5, %v4712_v5, 0.0 }
 0x796   : > { %v6034_v10 = vpop.eup %6033  ;;  %v4666_v21 = vmul.bf16 1065369472, %v6032_v0  ;;  %v4534_v58 = vadd.f32 %v8354_v52, %v4533_v9 }
 0x797   : > { %v6036_v51 = vpop.eup %6035  ;;  %v4747_v60 = vadd.f32 %v4746_v7, %v4745_v12  ;;  %v4694_v22 = vmul.bf16 %v4668_v34, %v8392_v26  ;;  %v4650_v35 = vadd.bf16 1065369472, %v6034_v10  ;;  %v8443_v33 = vpack.c.bf16 %v4542_v47, %v4539_v40 }
 0x798   : > { %v4693_v53 = vmul.bf16 %v4666_v21, %v8394_v49  ;;  %v4649_v41 = vadd.bf16 1065369472, %v6036_v51  ;;  %v8447_v2 = vpack.c.bf16 %v4534_v58, %v4531_v25 }
 0x799   : > { %v4749_v37 = vadd.f32 %v4748_v24, %v4747_v60  ;;  %v4715_v28 = vunpack.c.l.bf16 %v4694_v22  ;;  %6045 = vrcp.bf16 %v4650_v35  ;;  %v5298_v26 = vmul.bf16 3216621497, %v8443_v33 }
 0x79a   : > { %v4713_v62 = vunpack.c.l.bf16 %v4693_v53  ;;  %v4714_v42 = vunpack.c.h.bf16 %v4693_v53  ;;  %6047 = vrcp.bf16 %v4649_v41  ;;  %v5561_v55 = vpop.f32.mrb[64].mxu0  ;;  %v4716_v15 = vunpack.c.h.bf16 %v4694_v22 }
 0x79b   : > { %v4751_v45 = vadd.f32 %v4750_v59, %v4749_v37  ;;  %v4761_v38 = vsel %vm2231_vm5, %v4715_v28, 0.0  ;;  %v5297_v49 = vmul.bf16 3216621497, %v8447_v2  ;;  %v4546_v19 = vpop.f32.mrb[65].mxu0  ;;  %6049 = vpow.bf16 %v5298_v26 }
 0x79c   : > { %v6038_v29 = vpop.eup %6037  ;;  %v4758_v4 = vsel %vm2231_vm5, %v4713_v62, 0.0  ;;  %v4759_v44 = vsel %vm2231_vm5, %v4714_v42, 0.0  ;;  %v4555_v3 = vadd.f32 %v5561_v55, %v8354_v52  ;;  %v5562_v11 = vpop.f32.mrb[66].mxu0  ;;  %v4547_v8 = vadd.f32 %v8354_v52, %v4546_v19 }
 0x79d   : > { %v6040_v48 = vpop.eup %6039  ;;  %v4752_v61 = vrot.slane %v4751_v45, 4  ;;  %v4760_v16 = vadd.f32 %v4759_v44, %v4758_v4  ;;  %v4672_v27 = vmul.bf16 1065369472, %v6038_v29  ;;  %6051 = vpow.bf16 %v5297_v49  ;;  %v4549_v50 = vpop.f32.mrb[67].mxu0 }
 0x79e   : > { %v4670_v63 = vmul.bf16 1065369472, %v6040_v48  ;;  %v4558_v20 = vadd.f32 %v5562_v11, %v8354_v52  ;;  %v4550_v31 = vadd.f32 %v8354_v52, %v4549_v50  ;;  %v6042_v39 = vpop.eup %6041  ;;  %v4763_v14 = vsel %vm2231_vm5, %v4716_v15, 0.0 }
 0x79f   : > { %v4753_v36 = vadd.f32 %v4752_v61, %v4751_v45  ;;  %v4762_v17 = vadd.f32 %v4761_v38, %v4760_v16  ;;  %v4696_v32 = vmul.bf16 %v4672_v27, %v8402_v57  ;;  %v6044_v6 = vpop.eup %6043  ;;  %v4652_v5 = vadd.bf16 1065369472, %v6042_v39 }
 0x7a0   : > { %v4695_v56 = vmul.bf16 %v4670_v63, %v8404_v43  ;;  %v8462_v18 = vpack.c.bf16 %v4558_v20, %v4555_v3  ;;  %v8464_v40 = vpack.c.bf16 %v4550_v31, %v4547_v8  ;;  %v4651_v52 = vadd.bf16 1065369472, %v6044_v6 }
 0x7a1   : > { %v4764_v30 = vadd.f32 %v4763_v14, %v4762_v17  ;;  %6053 = vrcp.bf16 %v4652_v5  ;;  %v4754_v34 = vrot.slane %v4753_v36, 2  ;;  %v4719_v10 = vunpack.c.l.bf16 %v4696_v32 }
 0x7a2   : > { %v4717_v0 = vunpack.c.l.bf16 %v4695_v56  ;;  %v4718_v12 = vunpack.c.h.bf16 %v4695_v56  ;;  %v5300_v47 = vmul.bf16 3216621497, %v8462_v18  ;;  %6055 = vrcp.bf16 %v4651_v52 }
 0x7a3   : > { %v5299_v43 = vmul.bf16 3216621497, %v8464_v40  ;;  %v4720_v21 = vunpack.c.h.bf16 %v4696_v32  ;;  %v4769_v41 = vsel %vm2231_vm5, %v4719_v10, 0.0  ;;  %v4755_v28 = vadd.f32 %v4754_v34, %v4753_v36 }
 0x7a4   : > { %v6046_v9 = vpop.eup %6045  ;;  %v4765_v57 = vsel %vm2231_vm5, %v4717_v0, 0.0  ;;  %6057 = vpow.bf16 %v5300_v47  ;;  %v4767_v51 = vsel %vm2231_vm5, %v4718_v12, 0.0 }
 0x7a5   : > { %v6048_v7 = vpop.eup %6047  ;;  %v4766_v25 = vadd.f32 %v4765_v57, %v4764_v30  ;;  %v4676_v58 = vmul.bf16 1065369472, %v6046_v9  ;;  %6059 = vpow.bf16 %v5299_v43  ;;  %v4771_v62 = vsel %vm2231_vm5, %v4720_v21, 0.0 }
 0x7a6   : > { %v4674_v60 = vmul.bf16 1065369472, %v6048_v7  ;;  %v6050_v22 = vpop.eup %6049  ;;  %v4756_v4 = vrot.slane %v4755_v28, 1 }
 0x7a7   : > { %v4768_v35 = vadd.f32 %v4767_v51, %v4766_v25  ;;  %v4698_v24 = vmul.bf16 %v4676_v58, %v8413_v46  ;;  %v4654_v37 = vadd.bf16 1065369472, %v6050_v22 }
 0x7a8   : > { %v6052_v53 = vpop.eup %6051  ;;  %v4697_v59 = vmul.bf16 %v4674_v60, %v8416_v13  ;;  %v4757_v20 = vadd.f32 %v4756_v4, %v4755_v28 }
 0x7a9   : > { %v4770_v42 = vadd.f32 %v4769_v41, %v4768_v35  ;;  %v4723_v26 = vunpack.c.l.bf16 %v4698_v24  ;;  %6061 = vrcp.bf16 %v4654_v37  ;;  %v4653_v15 = vadd.bf16 1065369472, %v6052_v53 }
 0x7aa   : > { %v4721_v55 = vunpack.c.l.bf16 %v4697_v59  ;;  %v4722_v45 = vunpack.c.h.bf16 %v4697_v59  ;;  %v4724_v49 = vunpack.c.h.bf16 %v4698_v24  ;;  %v4821_v0 = vmul.f32 0.015625, %v4757_v20 }
 0x7ab   : > { %v4772_v38 = vadd.f32 %v4771_v62, %v4770_v42  ;;  %6063 = vrcp.bf16 %v4653_v15  ;;  %v4782_v3 = vsel %vm2231_vm5, %v4723_v26, 0.0 }
 0x7ac   : > { %v4779_v19 = vsel %vm2231_vm5, %v4721_v55, 0.0  ;;  %v4780_v46 = vsel %vm2231_vm5, %v4722_v45, 0.0  ;;  %v6054_v29 = vpop.eup %6053  ;;  %v4784_v50 = vsel %vm2231_vm5, %v4724_v49, 0.0  ;;  %v4825_v21 = vpack.c.bf16 %v4821_v0, %v4821_v0 }
 0x7ad   : > { %v4773_v13 = vrot.slane %v4772_v38, 4  ;;  %v4781_v44 = vadd.f32 %v4780_v46, %v4779_v19  ;;  %v4680_v11 = vmul.bf16 1065369472, %v6054_v29  ;;  %v6056_v48 = vpop.eup %6055 }
 0x7ae   : > { %v4678_v63 = vmul.bf16 1065369472, %v6056_v48  ;;  %v4846_v37 = vunpack.c.l.b16 %v4825_v21 }
 0x7af   : > { %v4774_v61 = vadd.f32 %v4773_v13, %v4772_v38  ;;  %v4783_v16 = vadd.f32 %v4782_v3, %v4781_v44  ;;  %v6058_v27 = vpop.eup %6057  ;;  %v4700_v14 = vmul.bf16 %v4680_v11, %v8428_v54 }
 0x7b0   : > { %v6060_v8 = vpop.eup %6059  ;;  %v4656_v36 = vadd.bf16 1065369472, %v6058_v27  ;;  %v4699_v17 = vmul.bf16 %v4678_v63, %v8432_v1 }
 0x7b1   : > { %v4775_v31 = vrot.slane %v4774_v61, 2  ;;  %v4785_v39 = vadd.f32 %v4784_v50, %v4783_v16  ;;  %v4655_v32 = vadd.bf16 1065369472, %v6060_v8  ;;  %v4727_v52 = vunpack.c.l.bf16 %v4700_v14 }
 0x7b2   : > { %6065 = vrcp.bf16 %v4656_v36  ;;  %v4725_v56 = vunpack.c.l.bf16 %v4699_v17  ;;  %v4726_v5 = vunpack.c.h.bf16 %v4699_v17  ;;  %v4728_v43 = vunpack.c.h.bf16 %v4700_v14 }
 0x7b3   : > { %v4776_v6 = vadd.f32 %v4775_v31, %v4774_v61  ;;  %6067 = vrcp.bf16 %v4655_v32  ;;  %v4790_v51 = vsel %vm2231_vm5, %v4727_v52, 0.0 }
 0x7b4   : > { %v6062_v30 = vpop.eup %6061  ;;  %v4786_v34 = vsel %vm2231_vm5, %v4725_v56, 0.0  ;;  %v4788_v54 = vsel %vm2231_vm5, %v4726_v5, 0.0  ;;  %v4792_v24 = vsel %vm2231_vm5, %v4728_v43, 0.0 }
 0x7b5   : > { %v4777_v12 = vrot.slane %v4776_v6, 1  ;;  %v4684_v47 = vmul.bf16 1065369472, %v6062_v30  ;;  %v4787_v57 = vadd.f32 %v4786_v34, %v4785_v39 }
 0x7b6   : > { %v6064_v9 = vpop.eup %6063 }
 0x7b7   : > { %v4778_v10 = vadd.f32 %v4777_v12, %v4776_v6  ;;  %v4702_v1 = vmul.bf16 %v4684_v47, %v8443_v33  ;;  %v4682_v7 = vmul.bf16 1065369472, %v6064_v9  ;;  %v4789_v58 = vadd.f32 %v4788_v54, %v4787_v57 }
 0x7b9   : > { %v4822_v25 = vmul.f32 0.015625, %v4778_v10  ;;  %v4701_v60 = vmul.bf16 %v4682_v7, %v8447_v2  ;;  %v4791_v35 = vadd.f32 %v4790_v51, %v4789_v58  ;;  %v4731_v53 = vunpack.c.l.bf16 %v4702_v1  ;;  %v5301_v7 = vld [vmem:[%s8522_s9 + $0x7] ss:$0 sm:$0xff] }
 0x7ba   : > { %v4732_v33 = vunpack.c.h.bf16 %v4702_v1 }
 0x7bb   : > { %v4826_v22 = vpack.c.bf16 %v4822_v25, %v4822_v25  ;;  %v4729_v41 = vunpack.c.l.bf16 %v4701_v60  ;;  %v4730_v59 = vunpack.c.h.bf16 %v4701_v60  ;;  %v4793_v62 = vadd.f32 %v4792_v24, %v4791_v35 }
 0x7bc   : > { %v4803_v19 = vsel %vm2231_vm5, %v4731_v53, 0.0  ;;  %v4805_v44 = vsel %vm2231_vm5, %v4732_v33, 0.0 }
 0x7bd   : > { %v4847_v28 = vunpack.c.l.b16 %v4826_v22  ;;  %v6066_v42 = vpop.eup %6065  ;;  %v4800_v26 = vsel %vm2231_vm5, %v4729_v41, 0.0  ;;  %v4801_v55 = vsel %vm2231_vm5, %v4730_v59, 0.0  ;;  %v4794_v45 = vrot.slane %v4793_v62, 4 }
 0x7be   : > { %v4802_v15 = vadd.f32 %v4801_v55, %v4800_v26  ;;  %v4688_v38 = vmul.bf16 1065369472, %v6066_v42  ;;  %v6068_v49 = vpop.eup %6067 }
 0x7bf   : > { %v4850_v2 = vsel %vm3739_vm10, %v4847_v28, %v4846_v37  ;;  %v4795_v46 = vadd.f32 %v4794_v45, %v4793_v62  ;;  %v4686_v4 = vmul.bf16 1065369472, %v6068_v49 }
 0x7c0   : > { %v4804_v29 = vadd.f32 %v4803_v19, %v4802_v15  ;;  %v4704_v3 = vmul.bf16 %v4688_v38, %v8462_v18 }
 0x7c1   : > { %v4796_v13 = vrot.slane %v4795_v46, 2  ;;  %v4703_v11 = vmul.bf16 %v4686_v4, %v8464_v40 }
 0x7c2   : > { %v4806_v48 = vadd.f32 %v4805_v44, %v4804_v29  ;;  %v4735_v63 = vunpack.c.l.bf16 %v4704_v3  ;;  %v4736_v39 = vunpack.c.h.bf16 %v4704_v3 }
 0x7c3   : > { %v4797_v61 = vadd.f32 %v4796_v13, %v4795_v46  ;;  %v4733_v16 = vunpack.c.l.bf16 %v4703_v11  ;;  %v4734_v27 = vunpack.c.h.bf16 %v4703_v11 }
 0x7c4   : > { %v4811_v32 = vsel %vm2231_vm5, %v4735_v63, 0.0  ;;  %v4813_v40 = vsel %vm2231_vm5, %v4736_v39, 0.0 }
 0x7c5   : > { %v4798_v50 = vrot.slane %v4797_v61, 1  ;;  %v4807_v8 = vsel %vm2231_vm5, %v4733_v16, 0.0  ;;  %v4809_v36 = vsel %vm2231_vm5, %v4734_v27, 0.0 }
 0x7c6   : > { %v4808_v20 = vadd.f32 %v4807_v8, %v4806_v48 }
 0x7c7   : > { %v4799_v31 = vadd.f32 %v4798_v50, %v4797_v61 }
 0x7c8   : > { %v4810_v14 = vadd.f32 %v4809_v36, %v4808_v20 }
 0x7c9   : > { %v4823_v17 = vmul.f32 0.015625, %v4799_v31 }
 0x7ca   : > { %v4812_v18 = vadd.f32 %v4811_v32, %v4810_v14 }
 0x7cb   : > { %v4827_v6 = vpack.c.bf16 %v4823_v17, %v4823_v17 }
 0x7cc   : > { %v4814_v56 = vadd.f32 %v4813_v40, %v4812_v18 }
 0x7cd   : > { %v4848_v5 = vunpack.c.l.b16 %v4827_v6 }
 0x7ce   : > { %v4815_v30 = vrot.slane %v4814_v56, 4 }
 0x7cf   : > { %v4851_v0 = vsel %vm3741_vm11, %v4848_v5, %v4850_v2 }
 0x7d0   : > { %v4816_v12 = vadd.f32 %v4815_v30, %v4814_v56 }
 0x7d2   : > { %v4817_v52 = vrot.slane %v4816_v12, 2 }
 0x7d4   : > { %v4818_v34 = vadd.f32 %v4817_v52, %v4816_v12 }
 0x7d6   : > { %v4819_v47 = vrot.slane %v4818_v34, 1 }
 0x7d8   : > { %v4820_v9 = vadd.f32 %v4819_v47, %v4818_v34 }
 0x7da   : > { %v4824_v10 = vmul.f32 0.015625, %v4820_v9 }
 0x7dc   : > { %v4828_v57 = vpack.c.bf16 %v4824_v10, %v4824_v10 }
 0x7de   : > { %v4849_v43 = vunpack.c.l.b16 %v4828_v57 }
 0x7e0   : > { %v4852_v54 = vsel %vm3743_vm12, %v4849_v43, %v4851_v0 }
 0x7e1   : > { %v4853_v1 = vpack.c.b16 %v4852_v54, %v4852_v54 }
 0x7e3   : > { %5572 = vmatmul.mubr.msk.bf16.vlgmr.msra.gmra.mrb[68].mxu0 %vm2231_vm5, %v4853_v1 }
 0x8b6   : > { %v4915_v21 = vpop.f32.mrb[68].mxu0 }
 0x8b7   : > { %v4916_v25 = vadd.f32 %v5301_v7, %v4915_v21  ;;  %v5573_v58 = vpop.f32.mrb[69].mxu0 }
 0x8b8   : > { %v4918_v51 = vpop.f32.mrb[70].mxu0 }
 0x8b9   : > { %v4928_v60 = vrot.slane %v4916_v25, %v8227_v23  ;;  %v5574_v22 = vpop.f32.mrb[71].mxu0 }
 0x8bb   : > { %v4929_v35 = vcombine.high %v4928_v60, %v4928_v60  ;;  %v4936_v24 = vrot.slane %v4928_v60, %v8227_v23  ;;  %5307 = vst.sshfl [vmem:[%s362_s19] sm:$0x1 pattern:$0x73625140] %v4928_v60 }
 0x8bd   : > { %v4943_v53 = vrot.slane %v4929_v35, %v8227_v23  ;;  %v4944_v41 = vcombine.high %v4936_v24, %v4936_v24  ;;  %5308 = vst.sshfl [vmem:[%s362_s19 + $0x1] sm:$0x1 pattern:$0x73625140] %v4929_v35 }
 0x8bf   : > { %v4945_v59 = vcombine.high %v4943_v53, %v4943_v53  ;;  %4952 = vst [vmem:[%s362_s19 + $0x2] sm:$0x1] %v4944_v41 }
 0x8c1   : > { %4953 = vst [vmem:[%s362_s19 + $0x3] sm:$0x1] %v4945_v59 }
 0x8c2 PF: > { %s20_s13 = sadd.s32 1, %s6078_s13  }
 0x8c3   : > { %p17_p4 = scmp.ge.s32.totalorder %s20_s13, 4  }
 0x8c5   :  { %19 = sbr.rel (!%p17_p4) target bundleno = 1 (0x1), region = 93 }

</bundles_post_ra>
